<compile_context>
chip_gen: v7x
topology: tpu7x:2x2x1
jax: 0.10.0
libtpu: 0.0.40
codegen_flags: <defaults>
</compile_context>

<pallas_src>
import math
import jax
import jax.numpy as jnp
from jax import lax
from jax.experimental import pallas as pl
from jax.experimental.pallas import tpu as pltpu


# ----------------------------------------------------------------------------
# Fused Pallas kernel: 4-direction LSTM + beta mix + both self-attentions
# ----------------------------------------------------------------------------
def glad_fused_kernel(x_ref, lens_ref, wih_ref, whh_ref, b_ref, w2_ref, b2_ref, beta_ref,
                      h_ref, c_ref, xw_ref):
    # Direction order d: 0=slot_fwd, 1=global_fwd, 2=slot_bwd, 3=global_bwd.
    #   x_ref    (T, B, Din)    bf16  time-major input block
    #   lens_ref (B, 1)         int32 sequence lengths (real rows >= 1; padded rows may be 0)
    #   wih_ref  (4, Din, 4H)   bf16  per-direction input weights (gate order i|f|g|o)
    #   whh_ref  (4, H, 4H)     bf16  per-direction dense recurrent weights
    #   b_ref    (4, 1, 4H)     f32   per-direction b_ih + b_hh
    #   w2_ref   (2H, 2)        bf16  attention scorers (col 0 = slot, col 1 = global)
    #   b2_ref   (1, 2)         f32   scorer biases
    #   beta_ref (1, 1)         f32   SMEM scalar: sigmoid(beta_raw[slot])
    #   h_ref    (T, B, 2H)     f32   OUT: beta*local_h + (1-beta)*global_h (padded rows exactly 0)
    #   c_ref    (B, 2H)        f32   OUT: beta*attn_slot(h) + (1-beta)*attn_global(h)
    #   xw_ref   (4, T, B, 4H)  f32   scratch: hoisted x @ Wih + bias, per direction
    T, B, Din = x_ref.shape
    ND, H, H4 = whh_ref.shape
    H2 = 2 * H

    beta = beta_ref[0, 0]                       # f32 scalar from SMEM
    one_m_beta = 1.0 - beta
    lens = lens_ref[...]                        # (B, 1) int32

    # ---- hoisted input projection: flattened 2D matmuls (M = T*B rows on the MXU) ----
    x2 = x_ref[...].reshape(T * B, Din)         # bf16
    for d in range(4):
        proj = jnp.dot(x2, wih_ref[d], preferred_element_type=jnp.float32) + b_ref[d]
        xw_ref[d] = proj.reshape(T, B, H4)

    # ---- serial recurrence: 4 dense per-direction MXU dots per timestep ----
    def step(s, carry):
        hs, cs = carry                          # each: tuple of 4 (B, H) f32
        rs = T - 1 - s
        new_h, new_c, outs = [], [], []
        for d in range(4):
            t_d = s if d < 2 else rs            # forward dirs consume time s, backward T-1-s
            gx = xw_ref[d, t_d]                 # (B, 4H) f32 -- single read, no select
            g = gx + jnp.dot(hs[d].astype(jnp.bfloat16), whh_ref[d],
                             preferred_element_type=jnp.float32)
            i_g = jax.nn.sigmoid(g[:, 0:H])
            f_g = jax.nn.sigmoid(g[:, H:2 * H])
            g_g = jnp.tanh(g[:, 2 * H:3 * H])
            o_g = jax.nn.sigmoid(g[:, 3 * H:4 * H])
            c_new = f_g * cs[d] + i_g * g_g
            h_new = o_g * jnp.tanh(c_new)
            valid = lens > t_d                  # (B, 1) bool
            outs.append(jnp.where(valid, h_new, 0.0))        # padded timesteps -> exactly 0
            new_h.append(jnp.where(valid, h_new, hs[d]))     # freeze state past sequence end
            new_c.append(jnp.where(valid, c_new, cs[d]))
        # beta mix of slot/global; torch BiLSTM concat layout [fwd | bwd] along features
        h_ref[s, :, 0:H] = outs[0] * beta + outs[1] * one_m_beta
        h_ref[rs, :, H:H2] = outs[2] * beta + outs[3] * one_m_beta
        return (tuple(new_h), tuple(new_c))

    zeros = tuple(jnp.zeros((B, H), jnp.float32) for _ in range(4))
    lax.fori_loop(0, T, step, (zeros, zeros), unroll=(True if T <= 8 else 2))

    # ---- fused self-attentions (h still resident in VMEM) ----
    h_all = h_ref[...]                                              # (T, B, 2H) f32
    sc = jnp.dot(h_all.reshape(T * B, H2).astype(jnp.bfloat16), w2_ref[...],
                 preferred_element_type=jnp.float32)                # (T*B, 2) stacked scorers
    sc = sc.reshape(T, B, 2) + b2_ref[...]
    t_iota = lax.broadcasted_iota(jnp.int32, (T, B, 1), 0)
    valid = t_iota < lens[None]                                     # (T, B, 1)
    sc = jnp.where(valid, sc, -1e30)
    # masked softmax: reductions over the leading time axis (per-tile VPU ops, no XLU
    # cross-sublane reduce).  exp stays on a narrow 2-lane layout -- negligible vs. the LSTM.
    m = jnp.max(sc, axis=0, keepdims=True)                          # (1, B, 2)
    e = jnp.exp(sc - m)
    p = e * pl.reciprocal(jnp.sum(e, axis=0, keepdims=True), approx=True)   # (T, B, 2)
    ctx_slot = jnp.sum(p[:, :, 0:1] * h_all, axis=0)                # (B, 2H)
    ctx_glob = jnp.sum(p[:, :, 1:2] * h_all, axis=0)
    c_ref[...] = ctx_slot * beta + ctx_glob * one_m_beta


# ----------------------------------------------------------------------------
# Weight stacking + pallas_call wrapper
# ----------------------------------------------------------------------------
def _round_up(v, m):
    return (v + m - 1) // m * m


def _choose_batch_block(b_pad):
    """Largest batch tile (multiple of 8, <=128) that divides b_pad while keeping >= 2 grid
    blocks whenever b_pad >= 16, so both v7x TensorCores get work."""
    if b_pad <= 8:
        return b_pad
    cap = max(8, min(128, b_pad // 2))
    bb = 8
    for cand in range(8, cap + 1, 8):
        if b_pad % cand == 0:
            bb = cand
    return bb


def _stack_dir_weights(slot_p, glob_p):
    # direction order: 0=slot_fwd, 1=global_fwd, 2=slot_bwd, 3=global_bwd
    wihs = [slot_p['wih_f'], glob_p['wih_f'], slot_p['wih_b'], glob_p['wih_b']]
    whhs = [slot_p['whh_f'], glob_p['whh_f'], slot_p['whh_b'], glob_p['whh_b']]
    bs = [slot_p['b_f'], glob_p['b_f'], slot_p['b_b'], glob_p['b_b']]
    wih = jnp.stack(wihs).astype(jnp.bfloat16)       # (4, Din, 4H)
    whh = jnp.stack(whhs).astype(jnp.bfloat16)       # (4, H, 4H) dense per-direction
    b = jnp.stack(bs).astype(jnp.float32)            # (4, 1, 4H)
    return wih, whh, b


def glad_encoder_forward(params, x, x_len, slot):
    # Inference mode: F.dropout(training=False) / nn.Dropout in eval are identity.
    # NOTE: assumes all real x_len >= 1 (padding rows added here use len 0 and are sliced off).
    slot_idx = params['slots'].index(slot)
    beta = jax.nn.sigmoid(params['beta_raw'][slot_idx]).reshape(1, 1).astype(jnp.float32)

    B, T, Din = x.shape
    H = params['global_rnn']['whh_f'].shape[0]
    H2 = 2 * H

    wih, whh, bias = _stack_dir_weights(params['slot_rnn'][slot], params['global_rnn'])
    sw, sb = params['slot_attn'][slot]
    gw, gb = params['global_attn']
    w2 = jnp.concatenate([sw, gw], axis=1).astype(jnp.bfloat16)          # (2H, 2)
    b2 = jnp.concatenate([sb, gb]).reshape(1, 2).astype(jnp.float32)     # (1, 2)

    # pad batch to a multiple of 8, pick an MXU-filling batch tile
    b_pad = _round_up(B, 8)
    bb = _choose_batch_block(b_pad)
    nb = b_pad // bb

    x_p = jnp.pad(x, ((0, b_pad - B), (0, 0), (0, 0)))
    lens_p = jnp.pad(x_len.astype(jnp.int32).reshape(-1, 1), ((0, b_pad - B), (0, 0)))
    x_tm = jnp.transpose(x_p, (1, 0, 2)).astype(jnp.bfloat16)            # (T, B_pad, Din)

    # explicit VMEM budget (clamped to 48 MiB so it also fits v7x's 64 MiB part)
    est = (4 * T * bb * 4 * H * 4                      # xw scratch (f32)
           + 2 * T * bb * Din * 2                      # x block (bf16, double-buffered)
           + 2 * (T * bb * H2 * 4 + bb * H2 * 4)       # outputs (double-buffered)
           + 2 * 2 * (4 * Din * 4 * H + 4 * H * 4 * H) # weights (bf16, double-buffered)
           + 2 * 4 * 4 * H * 4 + 65536)
    vmem_limit = int(min(max(2 * est, 32 * 2 ** 20), 48 * 2 ** 20))

    h_tm, c = pl.pallas_call(
        glad_fused_kernel,
        out_shape=(jax.ShapeDtypeStruct((T, b_pad, H2), jnp.float32),
                   jax.ShapeDtypeStruct((b_pad, H2), jnp.float32)),
        grid=(nb,),
        in_specs=[
            pl.BlockSpec((T, bb, Din), lambda i: (0, i, 0)),
            pl.BlockSpec((bb, 1), lambda i: (i, 0)),
            pl.BlockSpec((4, Din, 4 * H), lambda i: (0, 0, 0)),
            pl.BlockSpec((4, H, 4 * H), lambda i: (0, 0, 0)),
            pl.BlockSpec((4, 1, 4 * H), lambda i: (0, 0, 0)),
            pl.BlockSpec((H2, 2), lambda i: (0, 0)),
            pl.BlockSpec((1, 2), lambda i: (0, 0)),
            pl.BlockSpec(memory_space=pltpu.MemorySpace.SMEM),           # beta scalar
        ],
        out_specs=(pl.BlockSpec((T, bb, H2), lambda i: (0, i, 0)),
                   pl.BlockSpec((bb, H2), lambda i: (i, 0))),
        scratch_shapes=[pltpu.VMEM((4, T, bb, 4 * H), jnp.float32)],
        compiler_params=pltpu.CompilerParams(
            dimension_semantics=("parallel",),
            vmem_limit_bytes=vmem_limit),
    )(x_tm, lens_p, wih, whh, bias, w2, b2, beta)

    h = jnp.transpose(h_tm, (1, 0, 2))[:B]       # batch-first layout required by the module
    return h, c[:B]


# ----------------------------------------------------------------------------
# Deterministic parameter initialization (matches PyTorch module shapes)
# ----------------------------------------------------------------------------
def init_lstm_params(key, din, dhid):
    bound = 1.0 / math.sqrt(dhid)
    keys = jax.random.split(key, 8)

    def u(k, shape):
        return jax.random.uniform(k, shape, jnp.float32, -bound, bound)

    return {
        # stored transposed relative to PyTorch (weight_ih_l0 is (4H, Din)) for x @ W
        'wih_f': u(keys[0], (din, 4 * dhid)),
        'whh_f': u(keys[1], (dhid, 4 * dhid)),
        'b_f':   u(keys[2], (1, 4 * dhid)) + u(keys[3], (1, 4 * dhid)),   # b_ih + b_hh
        'wih_b': u(keys[4], (din, 4 * dhid)),
        'whh_b': u(keys[5], (dhid, 4 * dhid)),
        'b_b':   u(keys[6], (1, 4 * dhid)) + u(keys[7], (1, 4 * dhid)),
    }


def init_attn_params(key, d_hid):
    bound = 1.0 / math.sqrt(d_hid)
    k0, k1 = jax.random.split(key)
    w = jax.random.uniform(k0, (d_hid, 1), jnp.float32, -bound, bound)   # Linear(d_hid,1).weight.T
    b = jax.random.uniform(k1, (1,), jnp.float32, -bound, bound)
    return (w, b)


def init_glad_params(key, din, dhid, slots):
    keys = jax.random.split(key, 3 + 2 * len(slots))
    params = {
        'slots': list(slots),
        'global_rnn': init_lstm_params(keys[0], din, dhid),
        'global_attn': init_attn_params(keys[1], 2 * dhid),
        'beta_raw': jax.random.uniform(keys[2], (len(slots),), jnp.float32, -0.01, 0.01),
        'slot_rnn': {}, 'slot_attn': {},
    }
    for i, s in enumerate(slots):
        params['slot_rnn'][s] = init_lstm_params(keys[3 + 2 * i], din, dhid)
        params['slot_attn'][s] = init_attn_params(keys[4 + 2 * i], 2 * dhid)
    return params


# ----------------------------------------------------------------------------
# Pure-JAX f32 reference (for correctness cross-check only)
# ----------------------------------------------------------------------------
def _ref_lstm_dir(x, lens, wih, whh, b):
    B, T, _ = x.shape
    H = whh.shape[0]

    def step(carry, t):
        h, c = carry
        m = (t < lens).astype(jnp.float32)[:, None]
        g = x[:, t, :] @ wih + h @ whh + b
        i = jax.nn.sigmoid(g[:, 0:H])
        f = jax.nn.sigmoid(g[:, H:2 * H])
        gg = jnp.tanh(g[:, 2 * H:3 * H])
        o = jax.nn.sigmoid(g[:, 3 * H:4 * H])
        c_new = f * c + i * gg
        h_new = o * jnp.tanh(c_new)
        out = h_new * m
        h = h_new * m + h * (1.0 - m)
        c = c_new * m + c * (1.0 - m)
        return (h, c), out

    init = (jnp.zeros((B, H), jnp.float32), jnp.zeros((B, H), jnp.float32))
    _, outs = lax.scan(step, init, jnp.arange(T))
    return jnp.transpose(outs, (1, 0, 2))


def _ref_bilstm(x, lens, p):
    B, T, _ = x.shape
    t_idx = jnp.arange(T)
    mask = (t_idx[None, :] < lens[:, None]).astype(jnp.float32)
    hf = _ref_lstm_dir(x, lens, p['wih_f'], p['whh_f'], p['b_f'])
    rev_idx = jnp.clip(lens[:, None] - 1 - t_idx[None, :], 0, T - 1)
    x_rev = jnp.take_along_axis(x, rev_idx[:, :, None], axis=1)
    hb_rev = _ref_lstm_dir(x_rev, lens, p['wih_b'], p['whh_b'], p['b_b'])
    hb = jnp.take_along_axis(hb_rev, rev_idx[:, :, None], axis=1) * mask[:, :, None]
    return jnp.concatenate([hf, hb], axis=-1)


def _ref_attn(h, lens, w, b):
    B, T, D = h.shape
    scores = jnp.dot(h, w)[:, :, 0] + b[0]
    scores = jnp.where(jnp.arange(T)[None, :] < lens[:, None], scores, -jnp.inf)
    p = jax.nn.softmax(scores, axis=1)
    return jnp.sum(p[:, :, None] * h, axis=1)


def reference_forward(params, x, x_len, slot):
    idx = params['slots'].index(slot)
    beta = jax.nn.sigmoid(params['beta_raw'][idx])
    local_h = _ref_bilstm(x, x_len, params['slot_rnn'][slot])
    global_h = _ref_bilstm(x, x_len, params['global_rnn'])
    h = local_h * beta + global_h * (1.0 - beta)
    ws, bs = params['slot_attn'][slot]
    wg, bg = params['global_attn']
    c = _ref_attn(h, x_len, ws, bs) * beta + _ref_attn(h, x_len, wg, bg) * (1.0 - beta)
    return h, c


if __name__ == "__main__":
    B, T, DIN, DHID = 2, 8, 32, 32
    slots = ("food", "area")

    key = jax.random.PRNGKey(0)
    k_param, k_x = jax.random.split(key)
    params = init_glad_params(k_param, DIN, DHID, slots)

    x = jax.random.normal(k_x, (B, T, DIN), jnp.float32)     # (batch, seq, din), batch_first
    x_len = jnp.array([T, 5], dtype=jnp.int32)               # all real lengths >= 1

    h, c = glad_encoder_forward(params, x, x_len, slot="food")
    h = jax.block_until_ready(h)
    c = jax.block_until_ready(c)

    assert h.shape == (B, T, 2 * DHID) and c.shape == (B, 2 * DHID)
    assert bool(jnp.all(jnp.isfinite(h))) and bool(jnp.all(jnp.isfinite(c)))
    # padded timesteps of h must be exactly zero (pack_padded semantics)
    assert bool(jnp.all(h[1, 5:, :] == 0.0))

    # cross-check against a pure-JAX f32 reference (loose tolerance: kernels use bf16 matmuls)
    h_ref, c_ref = reference_forward(params, x, x_len, slot="food")
    assert bool(jnp.allclose(h, h_ref, atol=5e-2, rtol=5e-2)), float(jnp.max(jnp.abs(h - h_ref)))
    assert bool(jnp.allclose(c, c_ref, atol=5e-2, rtol=5e-2)), float(jnp.max(jnp.abs(c - c_ref)))

    print("KERNEL_OK")
</pallas_src>

<mosaic_0001>
module attributes {stable_mosaic.version = 11 : i64} {
  func.func @glad_fused_kernel(%arg0: i32, %arg1: memref<8x8x32xbf16, #tpu.memory_space<vmem>>, %arg2: memref<8x1xi32, #tpu.memory_space<vmem>>, %arg3: memref<4x32x128xbf16, #tpu.memory_space<vmem>>, %arg4: memref<4x32x128xbf16, #tpu.memory_space<vmem>>, %arg5: memref<4x1x128xf32, #tpu.memory_space<vmem>>, %arg6: memref<64x2xbf16, #tpu.memory_space<vmem>>, %arg7: memref<1x2xf32, #tpu.memory_space<vmem>>, %arg8: memref<1x1xf32, #tpu.memory_space<smem>>, %arg9: memref<8x8x64xf32, #tpu.memory_space<vmem>>, %arg10: memref<8x64xf32, #tpu.memory_space<vmem>>, %arg11: memref<4x8x8x128xf32, #tpu.memory_space<vmem>>) attributes {dimension_semantics = [#tpu.dimension_semantics<parallel>], iteration_bounds = array<i64: 1>, scalar_prefetch = 0 : i64, scratch_operands = 1 : i64, tpu.core_type = #tpu.core_type<tc>, window_params = [{transform_indices = @transform_0, window_bounds = array<i64: 8, 8, 32>}, {transform_indices = @transform_1, window_bounds = array<i64: 8, 1>}, {pipeline_mode = #tpu.pipeline_mode<synchronous>, transform_indices = @transform_2, window_bounds = array<i64: 4, 32, 128>}, {pipeline_mode = #tpu.pipeline_mode<synchronous>, transform_indices = @transform_3, window_bounds = array<i64: 4, 32, 128>}, {pipeline_mode = #tpu.pipeline_mode<synchronous>, transform_indices = @transform_4, window_bounds = array<i64: 4, 1, 128>}, {pipeline_mode = #tpu.pipeline_mode<synchronous>, transform_indices = @transform_5, window_bounds = array<i64: 64, 2>}, {pipeline_mode = #tpu.pipeline_mode<synchronous>, transform_indices = @transform_6, window_bounds = array<i64: 1, 2>}, {transform_indices = @transform_7, window_bounds = array<i64: 1, 1>}, {transform_indices = @transform_8, window_bounds = array<i64: 8, 8, 64>}, {transform_indices = @transform_9, window_bounds = array<i64: 8, 64>}]} {
    %c0 = arith.constant 0 : index
    %c0_0 = arith.constant 0 : index
    %0 = memref.load %arg8[%c0, %c0_0] : memref<1x1xf32, #tpu.memory_space<smem>>
    %cst = arith.constant 1.000000e+00 : f32
    %1 = arith.subf %cst, %0 : f32
    %c0_1 = arith.constant 0 : index
    %c0_2 = arith.constant 0 : index
    %2 = vector.load %arg2[%c0_1, %c0_2] : memref<8x1xi32, #tpu.memory_space<vmem>>, vector<8x1xi32>
    %c0_3 = arith.constant 0 : index
    %c0_4 = arith.constant 0 : index
    %c0_5 = arith.constant 0 : index
    %3 = vector.load %arg1[%c0_3, %c0_4, %c0_5] : memref<8x8x32xbf16, #tpu.memory_space<vmem>>, vector<8x8x32xbf16>
    %4 = vector.shape_cast %3 : vector<8x8x32xbf16> to vector<64x32xbf16>
    %c0_6 = arith.constant 0 : index
    %c0_7 = arith.constant 0 : index
    %c0_8 = arith.constant 0 : index
    %5 = vector.load %arg3[%c0_6, %c0_7, %c0_8] : memref<4x32x128xbf16, #tpu.memory_space<vmem>>, vector<1x32x128xbf16>
    %6 = vector.shape_cast %5 : vector<1x32x128xbf16> to vector<32x128xbf16>
    %cst_9 = arith.constant dense<0.000000e+00> : vector<64x128xf32>
    %7 = tpu.matmul %4, %6, %cst_9 {dimension_numbers = #tpu.dot_dimension_numbers<[1], [0], [0], [1], [0, 0, 1, 1], [], []>} : vector<64x32xbf16>, vector<32x128xbf16>, vector<64x128xf32> -> vector<64x128xf32>
    %c0_10 = arith.constant 0 : index
    %c0_11 = arith.constant 0 : index
    %c0_12 = arith.constant 0 : index
    %8 = vector.load %arg5[%c0_10, %c0_11, %c0_12] : memref<4x1x128xf32, #tpu.memory_space<vmem>>, vector<1x1x128xf32>
    %9 = vector.shape_cast %8 : vector<1x1x128xf32> to vector<1x128xf32>
    %10 = vector.broadcast %9 : vector<1x128xf32> to vector<64x128xf32>
    %11 = arith.addf %7, %10 : vector<64x128xf32>
    %12 = vector.shape_cast %11 : vector<64x128xf32> to vector<8x8x128xf32>
    %c0_13 = arith.constant 0 : index
    %c0_14 = arith.constant 0 : index
    %c0_15 = arith.constant 0 : index
    %c0_16 = arith.constant 0 : index
    %13 = vector.load %arg11[%c0_13, %c0_14, %c0_15, %c0_16] : memref<4x8x8x128xf32, #tpu.memory_space<vmem>>, vector<1x8x8x128xf32>
    %14 = vector.shape_cast %13 : vector<1x8x8x128xf32> to vector<8x8x128xf32>
    %15 = vector.shape_cast %12 : vector<8x8x128xf32> to vector<1x8x8x128xf32>
    tpu.vector_store %arg11[%c0_13, %c0_14, %c0_15, %c0_16], %15 {strides = array<i32>} : memref<4x8x8x128xf32, #tpu.memory_space<vmem>>, vector<1x8x8x128xf32>,
    %c1 = arith.constant 1 : index
    %c0_17 = arith.constant 0 : index
    %c0_18 = arith.constant 0 : index
    %16 = vector.load %arg3[%c1, %c0_17, %c0_18] : memref<4x32x128xbf16, #tpu.memory_space<vmem>>, vector<1x32x128xbf16>
    %17 = vector.shape_cast %16 : vector<1x32x128xbf16> to vector<32x128xbf16>
    %cst_19 = arith.constant dense<0.000000e+00> : vector<64x128xf32>
    %18 = tpu.matmul %4, %17, %cst_19 {dimension_numbers = #tpu.dot_dimension_numbers<[1], [0], [0], [1], [0, 0, 1, 1], [], []>} : vector<64x32xbf16>, vector<32x128xbf16>, vector<64x128xf32> -> vector<64x128xf32>
    %c1_20 = arith.constant 1 : index
    %c0_21 = arith.constant 0 : index
    %c0_22 = arith.constant 0 : index
    %19 = vector.load %arg5[%c1_20, %c0_21, %c0_22] : memref<4x1x128xf32, #tpu.memory_space<vmem>>, vector<1x1x128xf32>
    %20 = vector.shape_cast %19 : vector<1x1x128xf32> to vector<1x128xf32>
    %21 = vector.broadcast %20 : vector<1x128xf32> to vector<64x128xf32>
    %22 = arith.addf %18, %21 : vector<64x128xf32>
    %23 = vector.shape_cast %22 : vector<64x128xf32> to vector<8x8x128xf32>
    %c1_23 = arith.constant 1 : index
    %c0_24 = arith.constant 0 : index
    %c0_25 = arith.constant 0 : index
    %c0_26 = arith.constant 0 : index
    %24 = vector.load %arg11[%c1_23, %c0_24, %c0_25, %c0_26] : memref<4x8x8x128xf32, #tpu.memory_space<vmem>>, vector<1x8x8x128xf32>
    %25 = vector.shape_cast %24 : vector<1x8x8x128xf32> to vector<8x8x128xf32>
    %26 = vector.shape_cast %23 : vector<8x8x128xf32> to vector<1x8x8x128xf32>
    tpu.vector_store %arg11[%c1_23, %c0_24, %c0_25, %c0_26], %26 {strides = array<i32>} : memref<4x8x8x128xf32, #tpu.memory_space<vmem>>, vector<1x8x8x128xf32>,
    %c2 = arith.constant 2 : index
    %c0_27 = arith.constant 0 : index
    %c0_28 = arith.constant 0 : index
    %27 = vector.load %arg3[%c2, %c0_27, %c0_28] : memref<4x32x128xbf16, #tpu.memory_space<vmem>>, vector<1x32x128xbf16>
    %28 = vector.shape_cast %27 : vector<1x32x128xbf16> to vector<32x128xbf16>
    %cst_29 = arith.constant dense<0.000000e+00> : vector<64x128xf32>
    %29 = tpu.matmul %4, %28, %cst_29 {dimension_numbers = #tpu.dot_dimension_numbers<[1], [0], [0], [1], [0, 0, 1, 1], [], []>} : vector<64x32xbf16>, vector<32x128xbf16>, vector<64x128xf32> -> vector<64x128xf32>
    %c2_30 = arith.constant 2 : index
    %c0_31 = arith.constant 0 : index
    %c0_32 = arith.constant 0 : index
    %30 = vector.load %arg5[%c2_30, %c0_31, %c0_32] : memref<4x1x128xf32, #tpu.memory_space<vmem>>, vector<1x1x128xf32>
    %31 = vector.shape_cast %30 : vector<1x1x128xf32> to vector<1x128xf32>
    %32 = vector.broadcast %31 : vector<1x128xf32> to vector<64x128xf32>
    %33 = arith.addf %29, %32 : vector<64x128xf32>
    %34 = vector.shape_cast %33 : vector<64x128xf32> to vector<8x8x128xf32>
    %c2_33 = arith.constant 2 : index
    %c0_34 = arith.constant 0 : index
    %c0_35 = arith.constant 0 : index
    %c0_36 = arith.constant 0 : index
    %35 = vector.load %arg11[%c2_33, %c0_34, %c0_35, %c0_36] : memref<4x8x8x128xf32, #tpu.memory_space<vmem>>, vector<1x8x8x128xf32>
    %36 = vector.shape_cast %35 : vector<1x8x8x128xf32> to vector<8x8x128xf32>
    %37 = vector.shape_cast %34 : vector<8x8x128xf32> to vector<1x8x8x128xf32>
    tpu.vector_store %arg11[%c2_33, %c0_34, %c0_35, %c0_36], %37 {strides = array<i32>} : memref<4x8x8x128xf32, #tpu.memory_space<vmem>>, vector<1x8x8x128xf32>,
    %c3 = arith.constant 3 : index
    %c0_37 = arith.constant 0 : index
    %c0_38 = arith.constant 0 : index
    %38 = vector.load %arg3[%c3, %c0_37, %c0_38] : memref<4x32x128xbf16, #tpu.memory_space<vmem>>, vector<1x32x128xbf16>
    %39 = vector.shape_cast %38 : vector<1x32x128xbf16> to vector<32x128xbf16>
    %cst_39 = arith.constant dense<0.000000e+00> : vector<64x128xf32>
    %40 = tpu.matmul %4, %39, %cst_39 {dimension_numbers = #tpu.dot_dimension_numbers<[1], [0], [0], [1], [0, 0, 1, 1], [], []>} : vector<64x32xbf16>, vector<32x128xbf16>, vector<64x128xf32> -> vector<64x128xf32>
    %c3_40 = arith.constant 3 : index
    %c0_41 = arith.constant 0 : index
    %c0_42 = arith.constant 0 : index
    %41 = vector.load %arg5[%c3_40, %c0_41, %c0_42] : memref<4x1x128xf32, #tpu.memory_space<vmem>>, vector<1x1x128xf32>
    %42 = vector.shape_cast %41 : vector<1x1x128xf32> to vector<1x128xf32>
    %43 = vector.broadcast %42 : vector<1x128xf32> to vector<64x128xf32>
    %44 = arith.addf %40, %43 : vector<64x128xf32>
    %45 = vector.shape_cast %44 : vector<64x128xf32> to vector<8x8x128xf32>
    %c3_43 = arith.constant 3 : index
    %c0_44 = arith.constant 0 : index
    %c0_45 = arith.constant 0 : index
    %c0_46 = arith.constant 0 : index
    %46 = vector.load %arg11[%c3_43, %c0_44, %c0_45, %c0_46] : memref<4x8x8x128xf32, #tpu.memory_space<vmem>>, vector<1x8x8x128xf32>
    %47 = vector.shape_cast %46 : vector<1x8x8x128xf32> to vector<8x8x128xf32>
    %48 = vector.shape_cast %45 : vector<8x8x128xf32> to vector<1x8x8x128xf32>
    tpu.vector_store %arg11[%c3_43, %c0_44, %c0_45, %c0_46], %48 {strides = array<i32>} : memref<4x8x8x128xf32, #tpu.memory_space<vmem>>, vector<1x8x8x128xf32>,
    %cst_47 = arith.constant 0.000000e+00 : f32
    %49 = vector.broadcast %cst_47 : f32 to vector<8x32xf32>
    %cst_48 = arith.constant 0.000000e+00 : f32
    %50 = vector.broadcast %cst_48 : f32 to vector<8x32xf32>
    %cst_49 = arith.constant 0.000000e+00 : f32
    %51 = vector.broadcast %cst_49 : f32 to vector<8x32xf32>
    %cst_50 = arith.constant 0.000000e+00 : f32
    %52 = vector.broadcast %cst_50 : f32 to vector<8x32xf32>
    %c0_i32 = arith.constant 0 : i32
    %c7_i32 = arith.constant 7 : i32
    %53 = arith.subi %c7_i32, %c0_i32 : i32
    %c0_51 = arith.constant 0 : index
    %54 = arith.index_cast %c0_i32 : i32 to index
    %c0_52 = arith.constant 0 : index
    %c0_53 = arith.constant 0 : index
    %55 = vector.load %arg11[%c0_51, %54, %c0_52, %c0_53] : memref<4x8x8x128xf32, #tpu.memory_space<vmem>>, vector<1x1x8x128xf32>
    %56 = vector.shape_cast %55 : vector<1x1x8x128xf32> to vector<8x128xf32>
    %57 = arith.truncf %49 : vector<8x32xf32> to vector<8x32xbf16>
    %c0_54 = arith.constant 0 : index
    %c0_55 = arith.constant 0 : index
    %c0_56 = arith.constant 0 : index
    %58 = vector.load %arg4[%c0_54, %c0_55, %c0_56] : memref<4x32x128xbf16, #tpu.memory_space<vmem>>, vector<1x32x128xbf16>
    %59 = vector.shape_cast %58 : vector<1x32x128xbf16> to vector<32x128xbf16>
    %cst_57 = arith.constant dense<0.000000e+00> : vector<8x128xf32>
    %60 = tpu.matmul %57, %59, %cst_57 {dimension_numbers = #tpu.dot_dimension_numbers<[1], [0], [0], [1], [0, 0, 1, 1], [], []>} : vector<8x32xbf16>, vector<32x128xbf16>, vector<8x128xf32> -> vector<8x128xf32>
    %61 = arith.addf %56, %60 : vector<8x128xf32>
    %62 = vector.extract_strided_slice %61 {offsets = [0, 0], sizes = [8, 32], strides = [1, 1]} : vector<8x128xf32> to vector<8x32xf32>
    %63 = arith.negf %62 : vector<8x32xf32>
    %64 = math.exp %63 : vector<8x32xf32>
    %cst_58 = arith.constant 1.000000e+00 : f32
    %65 = vector.broadcast %cst_58 : f32 to vector<8x32xf32>
    %66 = arith.addf %65, %64 : vector<8x32xf32>
    %67 = arith.divf %65, %66 : vector<8x32xf32>
    %68 = vector.extract_strided_slice %61 {offsets = [0, 32], sizes = [8, 32], strides = [1, 1]} : vector<8x128xf32> to vector<8x32xf32>
    %69 = arith.negf %68 : vector<8x32xf32>
    %70 = math.exp %69 : vector<8x32xf32>
    %cst_59 = arith.constant 1.000000e+00 : f32
    %71 = vector.broadcast %cst_59 : f32 to vector<8x32xf32>
    %72 = arith.addf %71, %70 : vector<8x32xf32>
    %73 = arith.divf %71, %72 : vector<8x32xf32>
    %74 = vector.extract_strided_slice %61 {offsets = [0, 64], sizes = [8, 32], strides = [1, 1]} : vector<8x128xf32> to vector<8x32xf32>
    %75 = math.tanh %74 : vector<8x32xf32>
    %76 = vector.extract_strided_slice %61 {offsets = [0, 96], sizes = [8, 32], strides = [1, 1]} : vector<8x128xf32> to vector<8x32xf32>
    %77 = arith.negf %76 : vector<8x32xf32>
    %78 = math.exp %77 : vector<8x32xf32>
    %cst_60 = arith.constant 1.000000e+00 : f32
    %79 = vector.broadcast %cst_60 : f32 to vector<8x32xf32>
    %80 = arith.addf %79, %78 : vector<8x32xf32>
    %81 = arith.divf %79, %80 : vector<8x32xf32>
    %82 = arith.mulf %73, %49 : vector<8x32xf32>
    %83 = arith.mulf %67, %75 : vector<8x32xf32>
    %84 = arith.addf %82, %83 : vector<8x32xf32>
    %85 = math.tanh %84 : vector<8x32xf32>
    %86 = arith.mulf %81, %85 : vector<8x32xf32>
    %87 = vector.broadcast %c0_i32 : i32 to vector<8x1xi32>
    %88 = arith.cmpi sgt, %2, %87 : vector<8x1xi32>
    %cst_61 = arith.constant 0.000000e+00 : f32
    %89 = vector.shape_cast %88 : vector<8x1xi1> to vector<8x1xi1>
    %90 = vector.broadcast %89 : vector<8x1xi1> to vector<8x32xi1>
    %91 = vector.broadcast %cst_61 : f32 to vector<8x32xf32>
    %92 = arith.select %90, %86, %91 : vector<8x32xi1>, vector<8x32xf32>
    %93 = vector.shape_cast %88 : vector<8x1xi1> to vector<8x1xi1>
    %94 = vector.broadcast %93 : vector<8x1xi1> to vector<8x32xi1>
    %95 = arith.select %94, %86, %49 : vector<8x32xi1>, vector<8x32xf32>
    %96 = vector.shape_cast %88 : vector<8x1xi1> to vector<8x1xi1>
    %97 = vector.broadcast %96 : vector<8x1xi1> to vector<8x32xi1>
    %98 = arith.select %97, %84, %49 : vector<8x32xi1>, vector<8x32xf32>
    %c1_62 = arith.constant 1 : index
    %99 = arith.index_cast %c0_i32 : i32 to index
    %c0_63 = arith.constant 0 : index
    %c0_64 = arith.constant 0 : index
    %100 = vector.load %arg11[%c1_62, %99, %c0_63, %c0_64] : memref<4x8x8x128xf32, #tpu.memory_space<vmem>>, vector<1x1x8x128xf32>
    %101 = vector.shape_cast %100 : vector<1x1x8x128xf32> to vector<8x128xf32>
    %102 = arith.truncf %50 : vector<8x32xf32> to vector<8x32xbf16>
    %c1_65 = arith.constant 1 : index
    %c0_66 = arith.constant 0 : index
    %c0_67 = arith.constant 0 : index
    %103 = vector.load %arg4[%c1_65, %c0_66, %c0_67] : memref<4x32x128xbf16, #tpu.memory_space<vmem>>, vector<1x32x128xbf16>
    %104 = vector.shape_cast %103 : vector<1x32x128xbf16> to vector<32x128xbf16>
    %cst_68 = arith.constant dense<0.000000e+00> : vector<8x128xf32>
    %105 = tpu.matmul %102, %104, %cst_68 {dimension_numbers = #tpu.dot_dimension_numbers<[1], [0], [0], [1], [0, 0, 1, 1], [], []>} : vector<8x32xbf16>, vector<32x128xbf16>, vector<8x128xf32> -> vector<8x128xf32>
    %106 = arith.addf %101, %105 : vector<8x128xf32>
    %107 = vector.extract_strided_slice %106 {offsets = [0, 0], sizes = [8, 32], strides = [1, 1]} : vector<8x128xf32> to vector<8x32xf32>
    %108 = arith.negf %107 : vector<8x32xf32>
    %109 = math.exp %108 : vector<8x32xf32>
    %cst_69 = arith.constant 1.000000e+00 : f32
    %110 = vector.broadcast %cst_69 : f32 to vector<8x32xf32>
    %111 = arith.addf %110, %109 : vector<8x32xf32>
    %112 = arith.divf %110, %111 : vector<8x32xf32>
    %113 = vector.extract_strided_slice %106 {offsets = [0, 32], sizes = [8, 32], strides = [1, 1]} : vector<8x128xf32> to vector<8x32xf32>
    %114 = arith.negf %113 : vector<8x32xf32>
    %115 = math.exp %114 : vector<8x32xf32>
    %cst_70 = arith.constant 1.000000e+00 : f32
    %116 = vector.broadcast %cst_70 : f32 to vector<8x32xf32>
    %117 = arith.addf %116, %115 : vector<8x32xf32>
    %118 = arith.divf %116, %117 : vector<8x32xf32>
    %119 = vector.extract_strided_slice %106 {offsets = [0, 64], sizes = [8, 32], strides = [1, 1]} : vector<8x128xf32> to vector<8x32xf32>
    %120 = math.tanh %119 : vector<8x32xf32>
    %121 = vector.extract_strided_slice %106 {offsets = [0, 96], sizes = [8, 32], strides = [1, 1]} : vector<8x128xf32> to vector<8x32xf32>
    %122 = arith.negf %121 : vector<8x32xf32>
    %123 = math.exp %122 : vector<8x32xf32>
    %cst_71 = arith.constant 1.000000e+00 : f32
    %124 = vector.broadcast %cst_71 : f32 to vector<8x32xf32>
    %125 = arith.addf %124, %123 : vector<8x32xf32>
    %126 = arith.divf %124, %125 : vector<8x32xf32>
    %127 = arith.mulf %118, %50 : vector<8x32xf32>
    %128 = arith.mulf %112, %120 : vector<8x32xf32>
    %129 = arith.addf %127, %128 : vector<8x32xf32>
    %130 = math.tanh %129 : vector<8x32xf32>
    %131 = arith.mulf %126, %130 : vector<8x32xf32>
    %132 = vector.broadcast %c0_i32 : i32 to vector<8x1xi32>
    %133 = arith.cmpi sgt, %2, %132 : vector<8x1xi32>
    %cst_72 = arith.constant 0.000000e+00 : f32
    %134 = vector.shape_cast %133 : vector<8x1xi1> to vector<8x1xi1>
    %135 = vector.broadcast %134 : vector<8x1xi1> to vector<8x32xi1>
    %136 = vector.broadcast %cst_72 : f32 to vector<8x32xf32>
    %137 = arith.select %135, %131, %136 : vector<8x32xi1>, vector<8x32xf32>
    %138 = vector.shape_cast %133 : vector<8x1xi1> to vector<8x1xi1>
    %139 = vector.broadcast %138 : vector<8x1xi1> to vector<8x32xi1>
    %140 = arith.select %139, %131, %50 : vector<8x32xi1>, vector<8x32xf32>
    %141 = vector.shape_cast %133 : vector<8x1xi1> to vector<8x1xi1>
    %142 = vector.broadcast %141 : vector<8x1xi1> to vector<8x32xi1>
    %143 = arith.select %142, %129, %50 : vector<8x32xi1>, vector<8x32xf32>
    %c2_73 = arith.constant 2 : index
    %144 = arith.index_cast %53 : i32 to index
    %c0_74 = arith.constant 0 : index
    %c0_75 = arith.constant 0 : index
    %145 = vector.load %arg11[%c2_73, %144, %c0_74, %c0_75] : memref<4x8x8x128xf32, #tpu.memory_space<vmem>>, vector<1x1x8x128xf32>
    %146 = vector.shape_cast %145 : vector<1x1x8x128xf32> to vector<8x128xf32>
    %147 = arith.truncf %51 : vector<8x32xf32> to vector<8x32xbf16>
    %c2_76 = arith.constant 2 : index
    %c0_77 = arith.constant 0 : index
    %c0_78 = arith.constant 0 : index
    %148 = vector.load %arg4[%c2_76, %c0_77, %c0_78] : memref<4x32x128xbf16, #tpu.memory_space<vmem>>, vector<1x32x128xbf16>
    %149 = vector.shape_cast %148 : vector<1x32x128xbf16> to vector<32x128xbf16>
    %cst_79 = arith.constant dense<0.000000e+00> : vector<8x128xf32>
    %150 = tpu.matmul %147, %149, %cst_79 {dimension_numbers = #tpu.dot_dimension_numbers<[1], [0], [0], [1], [0, 0, 1, 1], [], []>} : vector<8x32xbf16>, vector<32x128xbf16>, vector<8x128xf32> -> vector<8x128xf32>
    %151 = arith.addf %146, %150 : vector<8x128xf32>
    %152 = vector.extract_strided_slice %151 {offsets = [0, 0], sizes = [8, 32], strides = [1, 1]} : vector<8x128xf32> to vector<8x32xf32>
    %153 = arith.negf %152 : vector<8x32xf32>
    %154 = math.exp %153 : vector<8x32xf32>
    %cst_80 = arith.constant 1.000000e+00 : f32
    %155 = vector.broadcast %cst_80 : f32 to vector<8x32xf32>
    %156 = arith.addf %155, %154 : vector<8x32xf32>
    %157 = arith.divf %155, %156 : vector<8x32xf32>
    %158 = vector.extract_strided_slice %151 {offsets = [0, 32], sizes = [8, 32], strides = [1, 1]} : vector<8x128xf32> to vector<8x32xf32>
    %159 = arith.negf %158 : vector<8x32xf32>
    %160 = math.exp %159 : vector<8x32xf32>
    %cst_81 = arith.constant 1.000000e+00 : f32
    %161 = vector.broadcast %cst_81 : f32 to vector<8x32xf32>
    %162 = arith.addf %161, %160 : vector<8x32xf32>
    %163 = arith.divf %161, %162 : vector<8x32xf32>
    %164 = vector.extract_strided_slice %151 {offsets = [0, 64], sizes = [8, 32], strides = [1, 1]} : vector<8x128xf32> to vector<8x32xf32>
    %165 = math.tanh %164 : vector<8x32xf32>
    %166 = vector.extract_strided_slice %151 {offsets = [0, 96], sizes = [8, 32], strides = [1, 1]} : vector<8x128xf32> to vector<8x32xf32>
    %167 = arith.negf %166 : vector<8x32xf32>
    %168 = math.exp %167 : vector<8x32xf32>
    %cst_82 = arith.constant 1.000000e+00 : f32
    %169 = vector.broadcast %cst_82 : f32 to vector<8x32xf32>
    %170 = arith.addf %169, %168 : vector<8x32xf32>
    %171 = arith.divf %169, %170 : vector<8x32xf32>
    %172 = arith.mulf %163, %51 : vector<8x32xf32>
    %173 = arith.mulf %157, %165 : vector<8x32xf32>
    %174 = arith.addf %172, %173 : vector<8x32xf32>
    %175 = math.tanh %174 : vector<8x32xf32>
    %176 = arith.mulf %171, %175 : vector<8x32xf32>
    %177 = vector.broadcast %53 : i32 to vector<8x1xi32>
    %178 = arith.cmpi sgt, %2, %177 : vector<8x1xi32>
    %cst_83 = arith.constant 0.000000e+00 : f32
    %179 = vector.shape_cast %178 : vector<8x1xi1> to vector<8x1xi1>
    %180 = vector.broadcast %179 : vector<8x1xi1> to vector<8x32xi1>
    %181 = vector.broadcast %cst_83 : f32 to vector<8x32xf32>
    %182 = arith.select %180, %176, %181 : vector<8x32xi1>, vector<8x32xf32>
    %183 = vector.shape_cast %178 : vector<8x1xi1> to vector<8x1xi1>
    %184 = vector.broadcast %183 : vector<8x1xi1> to vector<8x32xi1>
    %185 = arith.select %184, %176, %51 : vector<8x32xi1>, vector<8x32xf32>
    %186 = vector.shape_cast %178 : vector<8x1xi1> to vector<8x1xi1>
    %187 = vector.broadcast %186 : vector<8x1xi1> to vector<8x32xi1>
    %188 = arith.select %187, %174, %51 : vector<8x32xi1>, vector<8x32xf32>
    %c3_84 = arith.constant 3 : index
    %189 = arith.index_cast %53 : i32 to index
    %c0_85 = arith.constant 0 : index
    %c0_86 = arith.constant 0 : index
    %190 = vector.load %arg11[%c3_84, %189, %c0_85, %c0_86] : memref<4x8x8x128xf32, #tpu.memory_space<vmem>>, vector<1x1x8x128xf32>
    %191 = vector.shape_cast %190 : vector<1x1x8x128xf32> to vector<8x128xf32>
    %192 = arith.truncf %52 : vector<8x32xf32> to vector<8x32xbf16>
    %c3_87 = arith.constant 3 : index
    %c0_88 = arith.constant 0 : index
    %c0_89 = arith.constant 0 : index
    %193 = vector.load %arg4[%c3_87, %c0_88, %c0_89] : memref<4x32x128xbf16, #tpu.memory_space<vmem>>, vector<1x32x128xbf16>
    %194 = vector.shape_cast %193 : vector<1x32x128xbf16> to vector<32x128xbf16>
    %cst_90 = arith.constant dense<0.000000e+00> : vector<8x128xf32>
    %195 = tpu.matmul %192, %194, %cst_90 {dimension_numbers = #tpu.dot_dimension_numbers<[1], [0], [0], [1], [0, 0, 1, 1], [], []>} : vector<8x32xbf16>, vector<32x128xbf16>, vector<8x128xf32> -> vector<8x128xf32>
    %196 = arith.addf %191, %195 : vector<8x128xf32>
    %197 = vector.extract_strided_slice %196 {offsets = [0, 0], sizes = [8, 32], strides = [1, 1]} : vector<8x128xf32> to vector<8x32xf32>
    %198 = arith.negf %197 : vector<8x32xf32>
    %199 = math.exp %198 : vector<8x32xf32>
    %cst_91 = arith.constant 1.000000e+00 : f32
    %200 = vector.broadcast %cst_91 : f32 to vector<8x32xf32>
    %201 = arith.addf %200, %199 : vector<8x32xf32>
    %202 = arith.divf %200, %201 : vector<8x32xf32>
    %203 = vector.extract_strided_slice %196 {offsets = [0, 32], sizes = [8, 32], strides = [1, 1]} : vector<8x128xf32> to vector<8x32xf32>
    %204 = arith.negf %203 : vector<8x32xf32>
    %205 = math.exp %204 : vector<8x32xf32>
    %cst_92 = arith.constant 1.000000e+00 : f32
    %206 = vector.broadcast %cst_92 : f32 to vector<8x32xf32>
    %207 = arith.addf %206, %205 : vector<8x32xf32>
    %208 = arith.divf %206, %207 : vector<8x32xf32>
    %209 = vector.extract_strided_slice %196 {offsets = [0, 64], sizes = [8, 32], strides = [1, 1]} : vector<8x128xf32> to vector<8x32xf32>
    %210 = math.tanh %209 : vector<8x32xf32>
    %211 = vector.extract_strided_slice %196 {offsets = [0, 96], sizes = [8, 32], strides = [1, 1]} : vector<8x128xf32> to vector<8x32xf32>
    %212 = arith.negf %211 : vector<8x32xf32>
    %213 = math.exp %212 : vector<8x32xf32>
    %cst_93 = arith.constant 1.000000e+00 : f32
    %214 = vector.broadcast %cst_93 : f32 to vector<8x32xf32>
    %215 = arith.addf %214, %213 : vector<8x32xf32>
    %216 = arith.divf %214, %215 : vector<8x32xf32>
    %217 = arith.mulf %208, %52 : vector<8x32xf32>
    %218 = arith.mulf %202, %210 : vector<8x32xf32>
    %219 = arith.addf %217, %218 : vector<8x32xf32>
    %220 = math.tanh %219 : vector<8x32xf32>
    %221 = arith.mulf %216, %220 : vector<8x32xf32>
    %222 = vector.broadcast %53 : i32 to vector<8x1xi32>
    %223 = arith.cmpi sgt, %2, %222 : vector<8x1xi32>
    %cst_94 = arith.constant 0.000000e+00 : f32
    %224 = vector.shape_cast %223 : vector<8x1xi1> to vector<8x1xi1>
    %225 = vector.broadcast %224 : vector<8x1xi1> to vector<8x32xi1>
    %226 = vector.broadcast %cst_94 : f32 to vector<8x32xf32>
    %227 = arith.select %225, %221, %226 : vector<8x32xi1>, vector<8x32xf32>
    %228 = vector.shape_cast %223 : vector<8x1xi1> to vector<8x1xi1>
    %229 = vector.broadcast %228 : vector<8x1xi1> to vector<8x32xi1>
    %230 = arith.select %229, %221, %52 : vector<8x32xi1>, vector<8x32xf32>
    %231 = vector.shape_cast %223 : vector<8x1xi1> to vector<8x1xi1>
    %232 = vector.broadcast %231 : vector<8x1xi1> to vector<8x32xi1>
    %233 = arith.select %232, %219, %52 : vector<8x32xi1>, vector<8x32xf32>
    %234 = vector.broadcast %0 : f32 to vector<8x32xf32>
    %235 = arith.mulf %92, %234 : vector<8x32xf32>
    %236 = vector.broadcast %1 : f32 to vector<8x32xf32>
    %237 = arith.mulf %137, %236 : vector<8x32xf32>
    %238 = arith.addf %235, %237 : vector<8x32xf32>
    %239 = arith.index_cast %c0_i32 : i32 to index
    %c0_95 = arith.constant 0 : index
    %c0_96 = arith.constant 0 : index
    %240 = vector.load %arg9[%239, %c0_95, %c0_96] : memref<8x8x64xf32, #tpu.memory_space<vmem>>, vector<1x8x32xf32>
    %241 = vector.shape_cast %240 : vector<1x8x32xf32> to vector<8x32xf32>
    %242 = vector.shape_cast %238 : vector<8x32xf32> to vector<1x8x32xf32>
    tpu.vector_store %arg9[%239, %c0_95, %c0_96], %242 {strides = array<i32>} : memref<8x8x64xf32, #tpu.memory_space<vmem>>, vector<1x8x32xf32>,
    %243 = vector.broadcast %0 : f32 to vector<8x32xf32>
    %244 = arith.mulf %182, %243 : vector<8x32xf32>
    %245 = vector.broadcast %1 : f32 to vector<8x32xf32>
    %246 = arith.mulf %227, %245 : vector<8x32xf32>
    %247 = arith.addf %244, %246 : vector<8x32xf32>
    %248 = arith.index_cast %53 : i32 to index
    %c0_97 = arith.constant 0 : index
    %c32 = arith.constant 32 : index
    %249 = vector.load %arg9[%248, %c0_97, %c32] : memref<8x8x64xf32, #tpu.memory_space<vmem>>, vector<1x8x32xf32>
    %250 = vector.shape_cast %249 : vector<1x8x32xf32> to vector<8x32xf32>
    %251 = vector.shape_cast %247 : vector<8x32xf32> to vector<1x8x32xf32>
    tpu.vector_store %arg9[%248, %c0_97, %c32], %251 {strides = array<i32>} : memref<8x8x64xf32, #tpu.memory_space<vmem>>, vector<1x8x32xf32>,
    %c1_i32 = arith.constant 1 : i32
    %c7_i32_98 = arith.constant 7 : i32
    %252 = arith.subi %c7_i32_98, %c1_i32 : i32
    %c0_99 = arith.constant 0 : index
    %253 = arith.index_cast %c1_i32 : i32 to index
    %c0_100 = arith.constant 0 : index
    %c0_101 = arith.constant 0 : index
    %254 = vector.load %arg11[%c0_99, %253, %c0_100, %c0_101] : memref<4x8x8x128xf32, #tpu.memory_space<vmem>>, vector<1x1x8x128xf32>
    %255 = vector.shape_cast %254 : vector<1x1x8x128xf32> to vector<8x128xf32>
    %256 = arith.truncf %95 : vector<8x32xf32> to vector<8x32xbf16>
    %c0_102 = arith.constant 0 : index
    %c0_103 = arith.constant 0 : index
    %c0_104 = arith.constant 0 : index
    %257 = vector.load %arg4[%c0_102, %c0_103, %c0_104] : memref<4x32x128xbf16, #tpu.memory_space<vmem>>, vector<1x32x128xbf16>
    %258 = vector.shape_cast %257 : vector<1x32x128xbf16> to vector<32x128xbf16>
    %cst_105 = arith.constant dense<0.000000e+00> : vector<8x128xf32>
    %259 = tpu.matmul %256, %258, %cst_105 {dimension_numbers = #tpu.dot_dimension_numbers<[1], [0], [0], [1], [0, 0, 1, 1], [], []>} : vector<8x32xbf16>, vector<32x128xbf16>, vector<8x128xf32> -> vector<8x128xf32>
    %260 = arith.addf %255, %259 : vector<8x128xf32>
    %261 = vector.extract_strided_slice %260 {offsets = [0, 0], sizes = [8, 32], strides = [1, 1]} : vector<8x128xf32> to vector<8x32xf32>
    %262 = arith.negf %261 : vector<8x32xf32>
    %263 = math.exp %262 : vector<8x32xf32>
    %cst_106 = arith.constant 1.000000e+00 : f32
    %264 = vector.broadcast %cst_106 : f32 to vector<8x32xf32>
    %265 = arith.addf %264, %263 : vector<8x32xf32>
    %266 = arith.divf %264, %265 : vector<8x32xf32>
    %267 = vector.extract_strided_slice %260 {offsets = [0, 32], sizes = [8, 32], strides = [1, 1]} : vector<8x128xf32> to vector<8x32xf32>
    %268 = arith.negf %267 : vector<8x32xf32>
    %269 = math.exp %268 : vector<8x32xf32>
    %cst_107 = arith.constant 1.000000e+00 : f32
    %270 = vector.broadcast %cst_107 : f32 to vector<8x32xf32>
    %271 = arith.addf %270, %269 : vector<8x32xf32>
    %272 = arith.divf %270, %271 : vector<8x32xf32>
    %273 = vector.extract_strided_slice %260 {offsets = [0, 64], sizes = [8, 32], strides = [1, 1]} : vector<8x128xf32> to vector<8x32xf32>
    %274 = math.tanh %273 : vector<8x32xf32>
    %275 = vector.extract_strided_slice %260 {offsets = [0, 96], sizes = [8, 32], strides = [1, 1]} : vector<8x128xf32> to vector<8x32xf32>
    %276 = arith.negf %275 : vector<8x32xf32>
    %277 = math.exp %276 : vector<8x32xf32>
    %cst_108 = arith.constant 1.000000e+00 : f32
    %278 = vector.broadcast %cst_108 : f32 to vector<8x32xf32>
    %279 = arith.addf %278, %277 : vector<8x32xf32>
    %280 = arith.divf %278, %279 : vector<8x32xf32>
    %281 = arith.mulf %272, %98 : vector<8x32xf32>
    %282 = arith.mulf %266, %274 : vector<8x32xf32>
    %283 = arith.addf %281, %282 : vector<8x32xf32>
    %284 = math.tanh %283 : vector<8x32xf32>
    %285 = arith.mulf %280, %284 : vector<8x32xf32>
    %286 = vector.broadcast %c1_i32 : i32 to vector<8x1xi32>
    %287 = arith.cmpi sgt, %2, %286 : vector<8x1xi32>
    %cst_109 = arith.constant 0.000000e+00 : f32
    %288 = vector.shape_cast %287 : vector<8x1xi1> to vector<8x1xi1>
    %289 = vector.broadcast %288 : vector<8x1xi1> to vector<8x32xi1>
    %290 = vector.broadcast %cst_109 : f32 to vector<8x32xf32>
    %291 = arith.select %289, %285, %290 : vector<8x32xi1>, vector<8x32xf32>
    %292 = vector.shape_cast %287 : vector<8x1xi1> to vector<8x1xi1>
    %293 = vector.broadcast %292 : vector<8x1xi1> to vector<8x32xi1>
    %294 = arith.select %293, %285, %95 : vector<8x32xi1>, vector<8x32xf32>
    %295 = vector.shape_cast %287 : vector<8x1xi1> to vector<8x1xi1>
    %296 = vector.broadcast %295 : vector<8x1xi1> to vector<8x32xi1>
    %297 = arith.select %296, %283, %98 : vector<8x32xi1>, vector<8x32xf32>
    %c1_110 = arith.constant 1 : index
    %298 = arith.index_cast %c1_i32 : i32 to index
    %c0_111 = arith.constant 0 : index
    %c0_112 = arith.constant 0 : index
    %299 = vector.load %arg11[%c1_110, %298, %c0_111, %c0_112] : memref<4x8x8x128xf32, #tpu.memory_space<vmem>>, vector<1x1x8x128xf32>
    %300 = vector.shape_cast %299 : vector<1x1x8x128xf32> to vector<8x128xf32>
    %301 = arith.truncf %140 : vector<8x32xf32> to vector<8x32xbf16>
    %c1_113 = arith.constant 1 : index
    %c0_114 = arith.constant 0 : index
    %c0_115 = arith.constant 0 : index
    %302 = vector.load %arg4[%c1_113, %c0_114, %c0_115] : memref<4x32x128xbf16, #tpu.memory_space<vmem>>, vector<1x32x128xbf16>
    %303 = vector.shape_cast %302 : vector<1x32x128xbf16> to vector<32x128xbf16>
    %cst_116 = arith.constant dense<0.000000e+00> : vector<8x128xf32>
    %304 = tpu.matmul %301, %303, %cst_116 {dimension_numbers = #tpu.dot_dimension_numbers<[1], [0], [0], [1], [0, 0, 1, 1], [], []>} : vector<8x32xbf16>, vector<32x128xbf16>, vector<8x128xf32> -> vector<8x128xf32>
    %305 = arith.addf %300, %304 : vector<8x128xf32>
    %306 = vector.extract_strided_slice %305 {offsets = [0, 0], sizes = [8, 32], strides = [1, 1]} : vector<8x128xf32> to vector<8x32xf32>
    %307 = arith.negf %306 : vector<8x32xf32>
    %308 = math.exp %307 : vector<8x32xf32>
    %cst_117 = arith.constant 1.000000e+00 : f32
    %309 = vector.broadcast %cst_117 : f32 to vector<8x32xf32>
    %310 = arith.addf %309, %308 : vector<8x32xf32>
    %311 = arith.divf %309, %310 : vector<8x32xf32>
    %312 = vector.extract_strided_slice %305 {offsets = [0, 32], sizes = [8, 32], strides = [1, 1]} : vector<8x128xf32> to vector<8x32xf32>
    %313 = arith.negf %312 : vector<8x32xf32>
    %314 = math.exp %313 : vector<8x32xf32>
    %cst_118 = arith.constant 1.000000e+00 : f32
    %315 = vector.broadcast %cst_118 : f32 to vector<8x32xf32>
    %316 = arith.addf %315, %314 : vector<8x32xf32>
    %317 = arith.divf %315, %316 : vector<8x32xf32>
    %318 = vector.extract_strided_slice %305 {offsets = [0, 64], sizes = [8, 32], strides = [1, 1]} : vector<8x128xf32> to vector<8x32xf32>
    %319 = math.tanh %318 : vector<8x32xf32>
    %320 = vector.extract_strided_slice %305 {offsets = [0, 96], sizes = [8, 32], strides = [1, 1]} : vector<8x128xf32> to vector<8x32xf32>
    %321 = arith.negf %320 : vector<8x32xf32>
    %322 = math.exp %321 : vector<8x32xf32>
    %cst_119 = arith.constant 1.000000e+00 : f32
    %323 = vector.broadcast %cst_119 : f32 to vector<8x32xf32>
    %324 = arith.addf %323, %322 : vector<8x32xf32>
    %325 = arith.divf %323, %324 : vector<8x32xf32>
    %326 = arith.mulf %317, %143 : vector<8x32xf32>
    %327 = arith.mulf %311, %319 : vector<8x32xf32>
    %328 = arith.addf %326, %327 : vector<8x32xf32>
    %329 = math.tanh %328 : vector<8x32xf32>
    %330 = arith.mulf %325, %329 : vector<8x32xf32>
    %331 = vector.broadcast %c1_i32 : i32 to vector<8x1xi32>
    %332 = arith.cmpi sgt, %2, %331 : vector<8x1xi32>
    %cst_120 = arith.constant 0.000000e+00 : f32
    %333 = vector.shape_cast %332 : vector<8x1xi1> to vector<8x1xi1>
    %334 = vector.broadcast %333 : vector<8x1xi1> to vector<8x32xi1>
    %335 = vector.broadcast %cst_120 : f32 to vector<8x32xf32>
    %336 = arith.select %334, %330, %335 : vector<8x32xi1>, vector<8x32xf32>
    %337 = vector.shape_cast %332 : vector<8x1xi1> to vector<8x1xi1>
    %338 = vector.broadcast %337 : vector<8x1xi1> to vector<8x32xi1>
    %339 = arith.select %338, %330, %140 : vector<8x32xi1>, vector<8x32xf32>
    %340 = vector.shape_cast %332 : vector<8x1xi1> to vector<8x1xi1>
    %341 = vector.broadcast %340 : vector<8x1xi1> to vector<8x32xi1>
    %342 = arith.select %341, %328, %143 : vector<8x32xi1>, vector<8x32xf32>
    %c2_121 = arith.constant 2 : index
    %343 = arith.index_cast %252 : i32 to index
    %c0_122 = arith.constant 0 : index
    %c0_123 = arith.constant 0 : index
    %344 = vector.load %arg11[%c2_121, %343, %c0_122, %c0_123] : memref<4x8x8x128xf32, #tpu.memory_space<vmem>>, vector<1x1x8x128xf32>
    %345 = vector.shape_cast %344 : vector<1x1x8x128xf32> to vector<8x128xf32>
    %346 = arith.truncf %185 : vector<8x32xf32> to vector<8x32xbf16>
    %c2_124 = arith.constant 2 : index
    %c0_125 = arith.constant 0 : index
    %c0_126 = arith.constant 0 : index
    %347 = vector.load %arg4[%c2_124, %c0_125, %c0_126] : memref<4x32x128xbf16, #tpu.memory_space<vmem>>, vector<1x32x128xbf16>
    %348 = vector.shape_cast %347 : vector<1x32x128xbf16> to vector<32x128xbf16>
    %cst_127 = arith.constant dense<0.000000e+00> : vector<8x128xf32>
    %349 = tpu.matmul %346, %348, %cst_127 {dimension_numbers = #tpu.dot_dimension_numbers<[1], [0], [0], [1], [0, 0, 1, 1], [], []>} : vector<8x32xbf16>, vector<32x128xbf16>, vector<8x128xf32> -> vector<8x128xf32>
    %350 = arith.addf %345, %349 : vector<8x128xf32>
    %351 = vector.extract_strided_slice %350 {offsets = [0, 0], sizes = [8, 32], strides = [1, 1]} : vector<8x128xf32> to vector<8x32xf32>
    %352 = arith.negf %351 : vector<8x32xf32>
    %353 = math.exp %352 : vector<8x32xf32>
    %cst_128 = arith.constant 1.000000e+00 : f32
    %354 = vector.broadcast %cst_128 : f32 to vector<8x32xf32>
    %355 = arith.addf %354, %353 : vector<8x32xf32>
    %356 = arith.divf %354, %355 : vector<8x32xf32>
    %357 = vector.extract_strided_slice %350 {offsets = [0, 32], sizes = [8, 32], strides = [1, 1]} : vector<8x128xf32> to vector<8x32xf32>
    %358 = arith.negf %357 : vector<8x32xf32>
    %359 = math.exp %358 : vector<8x32xf32>
    %cst_129 = arith.constant 1.000000e+00 : f32
    %360 = vector.broadcast %cst_129 : f32 to vector<8x32xf32>
    %361 = arith.addf %360, %359 : vector<8x32xf32>
    %362 = arith.divf %360, %361 : vector<8x32xf32>
    %363 = vector.extract_strided_slice %350 {offsets = [0, 64], sizes = [8, 32], strides = [1, 1]} : vector<8x128xf32> to vector<8x32xf32>
    %364 = math.tanh %363 : vector<8x32xf32>
    %365 = vector.extract_strided_slice %350 {offsets = [0, 96], sizes = [8, 32], strides = [1, 1]} : vector<8x128xf32> to vector<8x32xf32>
    %366 = arith.negf %365 : vector<8x32xf32>
    %367 = math.exp %366 : vector<8x32xf32>
    %cst_130 = arith.constant 1.000000e+00 : f32
    %368 = vector.broadcast %cst_130 : f32 to vector<8x32xf32>
    %369 = arith.addf %368, %367 : vector<8x32xf32>
    %370 = arith.divf %368, %369 : vector<8x32xf32>
    %371 = arith.mulf %362, %188 : vector<8x32xf32>
    %372 = arith.mulf %356, %364 : vector<8x32xf32>
    %373 = arith.addf %371, %372 : vector<8x32xf32>
    %374 = math.tanh %373 : vector<8x32xf32>
    %375 = arith.mulf %370, %374 : vector<8x32xf32>
    %376 = vector.broadcast %252 : i32 to vector<8x1xi32>
    %377 = arith.cmpi sgt, %2, %376 : vector<8x1xi32>
    %cst_131 = arith.constant 0.000000e+00 : f32
    %378 = vector.shape_cast %377 : vector<8x1xi1> to vector<8x1xi1>
    %379 = vector.broadcast %378 : vector<8x1xi1> to vector<8x32xi1>
    %380 = vector.broadcast %cst_131 : f32 to vector<8x32xf32>
    %381 = arith.select %379, %375, %380 : vector<8x32xi1>, vector<8x32xf32>
    %382 = vector.shape_cast %377 : vector<8x1xi1> to vector<8x1xi1>
    %383 = vector.broadcast %382 : vector<8x1xi1> to vector<8x32xi1>
    %384 = arith.select %383, %375, %185 : vector<8x32xi1>, vector<8x32xf32>
    %385 = vector.shape_cast %377 : vector<8x1xi1> to vector<8x1xi1>
    %386 = vector.broadcast %385 : vector<8x1xi1> to vector<8x32xi1>
    %387 = arith.select %386, %373, %188 : vector<8x32xi1>, vector<8x32xf32>
    %c3_132 = arith.constant 3 : index
    %388 = arith.index_cast %252 : i32 to index
    %c0_133 = arith.constant 0 : index
    %c0_134 = arith.constant 0 : index
    %389 = vector.load %arg11[%c3_132, %388, %c0_133, %c0_134] : memref<4x8x8x128xf32, #tpu.memory_space<vmem>>, vector<1x1x8x128xf32>
    %390 = vector.shape_cast %389 : vector<1x1x8x128xf32> to vector<8x128xf32>
    %391 = arith.truncf %230 : vector<8x32xf32> to vector<8x32xbf16>
    %c3_135 = arith.constant 3 : index
    %c0_136 = arith.constant 0 : index
    %c0_137 = arith.constant 0 : index
    %392 = vector.load %arg4[%c3_135, %c0_136, %c0_137] : memref<4x32x128xbf16, #tpu.memory_space<vmem>>, vector<1x32x128xbf16>
    %393 = vector.shape_cast %392 : vector<1x32x128xbf16> to vector<32x128xbf16>
    %cst_138 = arith.constant dense<0.000000e+00> : vector<8x128xf32>
    %394 = tpu.matmul %391, %393, %cst_138 {dimension_numbers = #tpu.dot_dimension_numbers<[1], [0], [0], [1], [0, 0, 1, 1], [], []>} : vector<8x32xbf16>, vector<32x128xbf16>, vector<8x128xf32> -> vector<8x128xf32>
    %395 = arith.addf %390, %394 : vector<8x128xf32>
    %396 = vector.extract_strided_slice %395 {offsets = [0, 0], sizes = [8, 32], strides = [1, 1]} : vector<8x128xf32> to vector<8x32xf32>
    %397 = arith.negf %396 : vector<8x32xf32>
    %398 = math.exp %397 : vector<8x32xf32>
    %cst_139 = arith.constant 1.000000e+00 : f32
    %399 = vector.broadcast %cst_139 : f32 to vector<8x32xf32>
    %400 = arith.addf %399, %398 : vector<8x32xf32>
    %401 = arith.divf %399, %400 : vector<8x32xf32>
    %402 = vector.extract_strided_slice %395 {offsets = [0, 32], sizes = [8, 32], strides = [1, 1]} : vector<8x128xf32> to vector<8x32xf32>
    %403 = arith.negf %402 : vector<8x32xf32>
    %404 = math.exp %403 : vector<8x32xf32>
    %cst_140 = arith.constant 1.000000e+00 : f32
    %405 = vector.broadcast %cst_140 : f32 to vector<8x32xf32>
    %406 = arith.addf %405, %404 : vector<8x32xf32>
    %407 = arith.divf %405, %406 : vector<8x32xf32>
    %408 = vector.extract_strided_slice %395 {offsets = [0, 64], sizes = [8, 32], strides = [1, 1]} : vector<8x128xf32> to vector<8x32xf32>
    %409 = math.tanh %408 : vector<8x32xf32>
    %410 = vector.extract_strided_slice %395 {offsets = [0, 96], sizes = [8, 32], strides = [1, 1]} : vector<8x128xf32> to vector<8x32xf32>
    %411 = arith.negf %410 : vector<8x32xf32>
    %412 = math.exp %411 : vector<8x32xf32>
    %cst_141 = arith.constant 1.000000e+00 : f32
    %413 = vector.broadcast %cst_141 : f32 to vector<8x32xf32>
    %414 = arith.addf %413, %412 : vector<8x32xf32>
    %415 = arith.divf %413, %414 : vector<8x32xf32>
    %416 = arith.mulf %407, %233 : vector<8x32xf32>
    %417 = arith.mulf %401, %409 : vector<8x32xf32>
    %418 = arith.addf %416, %417 : vector<8x32xf32>
    %419 = math.tanh %418 : vector<8x32xf32>
    %420 = arith.mulf %415, %419 : vector<8x32xf32>
    %421 = vector.broadcast %252 : i32 to vector<8x1xi32>
    %422 = arith.cmpi sgt, %2, %421 : vector<8x1xi32>
    %cst_142 = arith.constant 0.000000e+00 : f32
    %423 = vector.shape_cast %422 : vector<8x1xi1> to vector<8x1xi1>
    %424 = vector.broadcast %423 : vector<8x1xi1> to vector<8x32xi1>
    %425 = vector.broadcast %cst_142 : f32 to vector<8x32xf32>
    %426 = arith.select %424, %420, %425 : vector<8x32xi1>, vector<8x32xf32>
    %427 = vector.shape_cast %422 : vector<8x1xi1> to vector<8x1xi1>
    %428 = vector.broadcast %427 : vector<8x1xi1> to vector<8x32xi1>
    %429 = arith.select %428, %420, %230 : vector<8x32xi1>, vector<8x32xf32>
    %430 = vector.shape_cast %422 : vector<8x1xi1> to vector<8x1xi1>
    %431 = vector.broadcast %430 : vector<8x1xi1> to vector<8x32xi1>
    %432 = arith.select %431, %418, %233 : vector<8x32xi1>, vector<8x32xf32>
    %433 = vector.broadcast %0 : f32 to vector<8x32xf32>
    %434 = arith.mulf %291, %433 : vector<8x32xf32>
    %435 = vector.broadcast %1 : f32 to vector<8x32xf32>
    %436 = arith.mulf %336, %435 : vector<8x32xf32>
    %437 = arith.addf %434, %436 : vector<8x32xf32>
    %438 = arith.index_cast %c1_i32 : i32 to index
    %c0_143 = arith.constant 0 : index
    %c0_144 = arith.constant 0 : index
    %439 = vector.load %arg9[%438, %c0_143, %c0_144] : memref<8x8x64xf32, #tpu.memory_space<vmem>>, vector<1x8x32xf32>
    %440 = vector.shape_cast %439 : vector<1x8x32xf32> to vector<8x32xf32>
    %441 = vector.shape_cast %437 : vector<8x32xf32> to vector<1x8x32xf32>
    tpu.vector_store %arg9[%438, %c0_143, %c0_144], %441 {strides = array<i32>} : memref<8x8x64xf32, #tpu.memory_space<vmem>>, vector<1x8x32xf32>,
    %442 = vector.broadcast %0 : f32 to vector<8x32xf32>
    %443 = arith.mulf %381, %442 : vector<8x32xf32>
    %444 = vector.broadcast %1 : f32 to vector<8x32xf32>
    %445 = arith.mulf %426, %444 : vector<8x32xf32>
    %446 = arith.addf %443, %445 : vector<8x32xf32>
    %447 = arith.index_cast %252 : i32 to index
    %c0_145 = arith.constant 0 : index
    %c32_146 = arith.constant 32 : index
    %448 = vector.load %arg9[%447, %c0_145, %c32_146] : memref<8x8x64xf32, #tpu.memory_space<vmem>>, vector<1x8x32xf32>
    %449 = vector.shape_cast %448 : vector<1x8x32xf32> to vector<8x32xf32>
    %450 = vector.shape_cast %446 : vector<8x32xf32> to vector<1x8x32xf32>
    tpu.vector_store %arg9[%447, %c0_145, %c32_146], %450 {strides = array<i32>} : memref<8x8x64xf32, #tpu.memory_space<vmem>>, vector<1x8x32xf32>,
    %c2_i32 = arith.constant 2 : i32
    %c7_i32_147 = arith.constant 7 : i32
    %451 = arith.subi %c7_i32_147, %c2_i32 : i32
    %c0_148 = arith.constant 0 : index
    %452 = arith.index_cast %c2_i32 : i32 to index
    %c0_149 = arith.constant 0 : index
    %c0_150 = arith.constant 0 : index
    %453 = vector.load %arg11[%c0_148, %452, %c0_149, %c0_150] : memref<4x8x8x128xf32, #tpu.memory_space<vmem>>, vector<1x1x8x128xf32>
    %454 = vector.shape_cast %453 : vector<1x1x8x128xf32> to vector<8x128xf32>
    %455 = arith.truncf %294 : vector<8x32xf32> to vector<8x32xbf16>
    %c0_151 = arith.constant 0 : index
    %c0_152 = arith.constant 0 : index
    %c0_153 = arith.constant 0 : index
    %456 = vector.load %arg4[%c0_151, %c0_152, %c0_153] : memref<4x32x128xbf16, #tpu.memory_space<vmem>>, vector<1x32x128xbf16>
    %457 = vector.shape_cast %456 : vector<1x32x128xbf16> to vector<32x128xbf16>
    %cst_154 = arith.constant dense<0.000000e+00> : vector<8x128xf32>
    %458 = tpu.matmul %455, %457, %cst_154 {dimension_numbers = #tpu.dot_dimension_numbers<[1], [0], [0], [1], [0, 0, 1, 1], [], []>} : vector<8x32xbf16>, vector<32x128xbf16>, vector<8x128xf32> -> vector<8x128xf32>
    %459 = arith.addf %454, %458 : vector<8x128xf32>
    %460 = vector.extract_strided_slice %459 {offsets = [0, 0], sizes = [8, 32], strides = [1, 1]} : vector<8x128xf32> to vector<8x32xf32>
    %461 = arith.negf %460 : vector<8x32xf32>
    %462 = math.exp %461 : vector<8x32xf32>
    %cst_155 = arith.constant 1.000000e+00 : f32
    %463 = vector.broadcast %cst_155 : f32 to vector<8x32xf32>
    %464 = arith.addf %463, %462 : vector<8x32xf32>
    %465 = arith.divf %463, %464 : vector<8x32xf32>
    %466 = vector.extract_strided_slice %459 {offsets = [0, 32], sizes = [8, 32], strides = [1, 1]} : vector<8x128xf32> to vector<8x32xf32>
    %467 = arith.negf %466 : vector<8x32xf32>
    %468 = math.exp %467 : vector<8x32xf32>
    %cst_156 = arith.constant 1.000000e+00 : f32
    %469 = vector.broadcast %cst_156 : f32 to vector<8x32xf32>
    %470 = arith.addf %469, %468 : vector<8x32xf32>
    %471 = arith.divf %469, %470 : vector<8x32xf32>
    %472 = vector.extract_strided_slice %459 {offsets = [0, 64], sizes = [8, 32], strides = [1, 1]} : vector<8x128xf32> to vector<8x32xf32>
    %473 = math.tanh %472 : vector<8x32xf32>
    %474 = vector.extract_strided_slice %459 {offsets = [0, 96], sizes = [8, 32], strides = [1, 1]} : vector<8x128xf32> to vector<8x32xf32>
    %475 = arith.negf %474 : vector<8x32xf32>
    %476 = math.exp %475 : vector<8x32xf32>
    %cst_157 = arith.constant 1.000000e+00 : f32
    %477 = vector.broadcast %cst_157 : f32 to vector<8x32xf32>
    %478 = arith.addf %477, %476 : vector<8x32xf32>
    %479 = arith.divf %477, %478 : vector<8x32xf32>
    %480 = arith.mulf %471, %297 : vector<8x32xf32>
    %481 = arith.mulf %465, %473 : vector<8x32xf32>
    %482 = arith.addf %480, %481 : vector<8x32xf32>
    %483 = math.tanh %482 : vector<8x32xf32>
    %484 = arith.mulf %479, %483 : vector<8x32xf32>
    %485 = vector.broadcast %c2_i32 : i32 to vector<8x1xi32>
    %486 = arith.cmpi sgt, %2, %485 : vector<8x1xi32>
    %cst_158 = arith.constant 0.000000e+00 : f32
    %487 = vector.shape_cast %486 : vector<8x1xi1> to vector<8x1xi1>
    %488 = vector.broadcast %487 : vector<8x1xi1> to vector<8x32xi1>
    %489 = vector.broadcast %cst_158 : f32 to vector<8x32xf32>
    %490 = arith.select %488, %484, %489 : vector<8x32xi1>, vector<8x32xf32>
    %491 = vector.shape_cast %486 : vector<8x1xi1> to vector<8x1xi1>
    %492 = vector.broadcast %491 : vector<8x1xi1> to vector<8x32xi1>
    %493 = arith.select %492, %484, %294 : vector<8x32xi1>, vector<8x32xf32>
    %494 = vector.shape_cast %486 : vector<8x1xi1> to vector<8x1xi1>
    %495 = vector.broadcast %494 : vector<8x1xi1> to vector<8x32xi1>
    %496 = arith.select %495, %482, %297 : vector<8x32xi1>, vector<8x32xf32>
    %c1_159 = arith.constant 1 : index
    %497 = arith.index_cast %c2_i32 : i32 to index
    %c0_160 = arith.constant 0 : index
    %c0_161 = arith.constant 0 : index
    %498 = vector.load %arg11[%c1_159, %497, %c0_160, %c0_161] : memref<4x8x8x128xf32, #tpu.memory_space<vmem>>, vector<1x1x8x128xf32>
    %499 = vector.shape_cast %498 : vector<1x1x8x128xf32> to vector<8x128xf32>
    %500 = arith.truncf %339 : vector<8x32xf32> to vector<8x32xbf16>
    %c1_162 = arith.constant 1 : index
    %c0_163 = arith.constant 0 : index
    %c0_164 = arith.constant 0 : index
    %501 = vector.load %arg4[%c1_162, %c0_163, %c0_164] : memref<4x32x128xbf16, #tpu.memory_space<vmem>>, vector<1x32x128xbf16>
    %502 = vector.shape_cast %501 : vector<1x32x128xbf16> to vector<32x128xbf16>
    %cst_165 = arith.constant dense<0.000000e+00> : vector<8x128xf32>
    %503 = tpu.matmul %500, %502, %cst_165 {dimension_numbers = #tpu.dot_dimension_numbers<[1], [0], [0], [1], [0, 0, 1, 1], [], []>} : vector<8x32xbf16>, vector<32x128xbf16>, vector<8x128xf32> -> vector<8x128xf32>
    %504 = arith.addf %499, %503 : vector<8x128xf32>
    %505 = vector.extract_strided_slice %504 {offsets = [0, 0], sizes = [8, 32], strides = [1, 1]} : vector<8x128xf32> to vector<8x32xf32>
    %506 = arith.negf %505 : vector<8x32xf32>
    %507 = math.exp %506 : vector<8x32xf32>
    %cst_166 = arith.constant 1.000000e+00 : f32
    %508 = vector.broadcast %cst_166 : f32 to vector<8x32xf32>
    %509 = arith.addf %508, %507 : vector<8x32xf32>
    %510 = arith.divf %508, %509 : vector<8x32xf32>
    %511 = vector.extract_strided_slice %504 {offsets = [0, 32], sizes = [8, 32], strides = [1, 1]} : vector<8x128xf32> to vector<8x32xf32>
    %512 = arith.negf %511 : vector<8x32xf32>
    %513 = math.exp %512 : vector<8x32xf32>
    %cst_167 = arith.constant 1.000000e+00 : f32
    %514 = vector.broadcast %cst_167 : f32 to vector<8x32xf32>
    %515 = arith.addf %514, %513 : vector<8x32xf32>
    %516 = arith.divf %514, %515 : vector<8x32xf32>
    %517 = vector.extract_strided_slice %504 {offsets = [0, 64], sizes = [8, 32], strides = [1, 1]} : vector<8x128xf32> to vector<8x32xf32>
    %518 = math.tanh %517 : vector<8x32xf32>
    %519 = vector.extract_strided_slice %504 {offsets = [0, 96], sizes = [8, 32], strides = [1, 1]} : vector<8x128xf32> to vector<8x32xf32>
    %520 = arith.negf %519 : vector<8x32xf32>
    %521 = math.exp %520 : vector<8x32xf32>
    %cst_168 = arith.constant 1.000000e+00 : f32
    %522 = vector.broadcast %cst_168 : f32 to vector<8x32xf32>
    %523 = arith.addf %522, %521 : vector<8x32xf32>
    %524 = arith.divf %522, %523 : vector<8x32xf32>
    %525 = arith.mulf %516, %342 : vector<8x32xf32>
    %526 = arith.mulf %510, %518 : vector<8x32xf32>
    %527 = arith.addf %525, %526 : vector<8x32xf32>
    %528 = math.tanh %527 : vector<8x32xf32>
    %529 = arith.mulf %524, %528 : vector<8x32xf32>
    %530 = vector.broadcast %c2_i32 : i32 to vector<8x1xi32>
    %531 = arith.cmpi sgt, %2, %530 : vector<8x1xi32>
    %cst_169 = arith.constant 0.000000e+00 : f32
    %532 = vector.shape_cast %531 : vector<8x1xi1> to vector<8x1xi1>
    %533 = vector.broadcast %532 : vector<8x1xi1> to vector<8x32xi1>
    %534 = vector.broadcast %cst_169 : f32 to vector<8x32xf32>
    %535 = arith.select %533, %529, %534 : vector<8x32xi1>, vector<8x32xf32>
    %536 = vector.shape_cast %531 : vector<8x1xi1> to vector<8x1xi1>
    %537 = vector.broadcast %536 : vector<8x1xi1> to vector<8x32xi1>
    %538 = arith.select %537, %529, %339 : vector<8x32xi1>, vector<8x32xf32>
    %539 = vector.shape_cast %531 : vector<8x1xi1> to vector<8x1xi1>
    %540 = vector.broadcast %539 : vector<8x1xi1> to vector<8x32xi1>
    %541 = arith.select %540, %527, %342 : vector<8x32xi1>, vector<8x32xf32>
    %c2_170 = arith.constant 2 : index
    %542 = arith.index_cast %451 : i32 to index
    %c0_171 = arith.constant 0 : index
    %c0_172 = arith.constant 0 : index
    %543 = vector.load %arg11[%c2_170, %542, %c0_171, %c0_172] : memref<4x8x8x128xf32, #tpu.memory_space<vmem>>, vector<1x1x8x128xf32>
    %544 = vector.shape_cast %543 : vector<1x1x8x128xf32> to vector<8x128xf32>
    %545 = arith.truncf %384 : vector<8x32xf32> to vector<8x32xbf16>
    %c2_173 = arith.constant 2 : index
    %c0_174 = arith.constant 0 : index
    %c0_175 = arith.constant 0 : index
    %546 = vector.load %arg4[%c2_173, %c0_174, %c0_175] : memref<4x32x128xbf16, #tpu.memory_space<vmem>>, vector<1x32x128xbf16>
    %547 = vector.shape_cast %546 : vector<1x32x128xbf16> to vector<32x128xbf16>
    %cst_176 = arith.constant dense<0.000000e+00> : vector<8x128xf32>
    %548 = tpu.matmul %545, %547, %cst_176 {dimension_numbers = #tpu.dot_dimension_numbers<[1], [0], [0], [1], [0, 0, 1, 1], [], []>} : vector<8x32xbf16>, vector<32x128xbf16>, vector<8x128xf32> -> vector<8x128xf32>
    %549 = arith.addf %544, %548 : vector<8x128xf32>
    %550 = vector.extract_strided_slice %549 {offsets = [0, 0], sizes = [8, 32], strides = [1, 1]} : vector<8x128xf32> to vector<8x32xf32>
    %551 = arith.negf %550 : vector<8x32xf32>
    %552 = math.exp %551 : vector<8x32xf32>
    %cst_177 = arith.constant 1.000000e+00 : f32
    %553 = vector.broadcast %cst_177 : f32 to vector<8x32xf32>
    %554 = arith.addf %553, %552 : vector<8x32xf32>
    %555 = arith.divf %553, %554 : vector<8x32xf32>
    %556 = vector.extract_strided_slice %549 {offsets = [0, 32], sizes = [8, 32], strides = [1, 1]} : vector<8x128xf32> to vector<8x32xf32>
    %557 = arith.negf %556 : vector<8x32xf32>
    %558 = math.exp %557 : vector<8x32xf32>
    %cst_178 = arith.constant 1.000000e+00 : f32
    %559 = vector.broadcast %cst_178 : f32 to vector<8x32xf32>
    %560 = arith.addf %559, %558 : vector<8x32xf32>
    %561 = arith.divf %559, %560 : vector<8x32xf32>
    %562 = vector.extract_strided_slice %549 {offsets = [0, 64], sizes = [8, 32], strides = [1, 1]} : vector<8x128xf32> to vector<8x32xf32>
    %563 = math.tanh %562 : vector<8x32xf32>
    %564 = vector.extract_strided_slice %549 {offsets = [0, 96], sizes = [8, 32], strides = [1, 1]} : vector<8x128xf32> to vector<8x32xf32>
    %565 = arith.negf %564 : vector<8x32xf32>
    %566 = math.exp %565 : vector<8x32xf32>
    %cst_179 = arith.constant 1.000000e+00 : f32
    %567 = vector.broadcast %cst_179 : f32 to vector<8x32xf32>
    %568 = arith.addf %567, %566 : vector<8x32xf32>
    %569 = arith.divf %567, %568 : vector<8x32xf32>
    %570 = arith.mulf %561, %387 : vector<8x32xf32>
    %571 = arith.mulf %555, %563 : vector<8x32xf32>
    %572 = arith.addf %570, %571 : vector<8x32xf32>
    %573 = math.tanh %572 : vector<8x32xf32>
    %574 = arith.mulf %569, %573 : vector<8x32xf32>
    %575 = vector.broadcast %451 : i32 to vector<8x1xi32>
    %576 = arith.cmpi sgt, %2, %575 : vector<8x1xi32>
    %cst_180 = arith.constant 0.000000e+00 : f32
    %577 = vector.shape_cast %576 : vector<8x1xi1> to vector<8x1xi1>
    %578 = vector.broadcast %577 : vector<8x1xi1> to vector<8x32xi1>
    %579 = vector.broadcast %cst_180 : f32 to vector<8x32xf32>
    %580 = arith.select %578, %574, %579 : vector<8x32xi1>, vector<8x32xf32>
    %581 = vector.shape_cast %576 : vector<8x1xi1> to vector<8x1xi1>
    %582 = vector.broadcast %581 : vector<8x1xi1> to vector<8x32xi1>
    %583 = arith.select %582, %574, %384 : vector<8x32xi1>, vector<8x32xf32>
    %584 = vector.shape_cast %576 : vector<8x1xi1> to vector<8x1xi1>
    %585 = vector.broadcast %584 : vector<8x1xi1> to vector<8x32xi1>
    %586 = arith.select %585, %572, %387 : vector<8x32xi1>, vector<8x32xf32>
    %c3_181 = arith.constant 3 : index
    %587 = arith.index_cast %451 : i32 to index
    %c0_182 = arith.constant 0 : index
    %c0_183 = arith.constant 0 : index
    %588 = vector.load %arg11[%c3_181, %587, %c0_182, %c0_183] : memref<4x8x8x128xf32, #tpu.memory_space<vmem>>, vector<1x1x8x128xf32>
    %589 = vector.shape_cast %588 : vector<1x1x8x128xf32> to vector<8x128xf32>
    %590 = arith.truncf %429 : vector<8x32xf32> to vector<8x32xbf16>
    %c3_184 = arith.constant 3 : index
    %c0_185 = arith.constant 0 : index
    %c0_186 = arith.constant 0 : index
    %591 = vector.load %arg4[%c3_184, %c0_185, %c0_186] : memref<4x32x128xbf16, #tpu.memory_space<vmem>>, vector<1x32x128xbf16>
    %592 = vector.shape_cast %591 : vector<1x32x128xbf16> to vector<32x128xbf16>
    %cst_187 = arith.constant dense<0.000000e+00> : vector<8x128xf32>
    %593 = tpu.matmul %590, %592, %cst_187 {dimension_numbers = #tpu.dot_dimension_numbers<[1], [0], [0], [1], [0, 0, 1, 1], [], []>} : vector<8x32xbf16>, vector<32x128xbf16>, vector<8x128xf32> -> vector<8x128xf32>
    %594 = arith.addf %589, %593 : vector<8x128xf32>
    %595 = vector.extract_strided_slice %594 {offsets = [0, 0], sizes = [8, 32], strides = [1, 1]} : vector<8x128xf32> to vector<8x32xf32>
    %596 = arith.negf %595 : vector<8x32xf32>
    %597 = math.exp %596 : vector<8x32xf32>
    %cst_188 = arith.constant 1.000000e+00 : f32
    %598 = vector.broadcast %cst_188 : f32 to vector<8x32xf32>
    %599 = arith.addf %598, %597 : vector<8x32xf32>
    %600 = arith.divf %598, %599 : vector<8x32xf32>
    %601 = vector.extract_strided_slice %594 {offsets = [0, 32], sizes = [8, 32], strides = [1, 1]} : vector<8x128xf32> to vector<8x32xf32>
    %602 = arith.negf %601 : vector<8x32xf32>
    %603 = math.exp %602 : vector<8x32xf32>
    %cst_189 = arith.constant 1.000000e+00 : f32
    %604 = vector.broadcast %cst_189 : f32 to vector<8x32xf32>
    %605 = arith.addf %604, %603 : vector<8x32xf32>
    %606 = arith.divf %604, %605 : vector<8x32xf32>
    %607 = vector.extract_strided_slice %594 {offsets = [0, 64], sizes = [8, 32], strides = [1, 1]} : vector<8x128xf32> to vector<8x32xf32>
    %608 = math.tanh %607 : vector<8x32xf32>
    %609 = vector.extract_strided_slice %594 {offsets = [0, 96], sizes = [8, 32], strides = [1, 1]} : vector<8x128xf32> to vector<8x32xf32>
    %610 = arith.negf %609 : vector<8x32xf32>
    %611 = math.exp %610 : vector<8x32xf32>
    %cst_190 = arith.constant 1.000000e+00 : f32
    %612 = vector.broadcast %cst_190 : f32 to vector<8x32xf32>
    %613 = arith.addf %612, %611 : vector<8x32xf32>
    %614 = arith.divf %612, %613 : vector<8x32xf32>
    %615 = arith.mulf %606, %432 : vector<8x32xf32>
    %616 = arith.mulf %600, %608 : vector<8x32xf32>
    %617 = arith.addf %615, %616 : vector<8x32xf32>
    %618 = math.tanh %617 : vector<8x32xf32>
    %619 = arith.mulf %614, %618 : vector<8x32xf32>
    %620 = vector.broadcast %451 : i32 to vector<8x1xi32>
    %621 = arith.cmpi sgt, %2, %620 : vector<8x1xi32>
    %cst_191 = arith.constant 0.000000e+00 : f32
    %622 = vector.shape_cast %621 : vector<8x1xi1> to vector<8x1xi1>
    %623 = vector.broadcast %622 : vector<8x1xi1> to vector<8x32xi1>
    %624 = vector.broadcast %cst_191 : f32 to vector<8x32xf32>
    %625 = arith.select %623, %619, %624 : vector<8x32xi1>, vector<8x32xf32>
    %626 = vector.shape_cast %621 : vector<8x1xi1> to vector<8x1xi1>
    %627 = vector.broadcast %626 : vector<8x1xi1> to vector<8x32xi1>
    %628 = arith.select %627, %619, %429 : vector<8x32xi1>, vector<8x32xf32>
    %629 = vector.shape_cast %621 : vector<8x1xi1> to vector<8x1xi1>
    %630 = vector.broadcast %629 : vector<8x1xi1> to vector<8x32xi1>
    %631 = arith.select %630, %617, %432 : vector<8x32xi1>, vector<8x32xf32>
    %632 = vector.broadcast %0 : f32 to vector<8x32xf32>
    %633 = arith.mulf %490, %632 : vector<8x32xf32>
    %634 = vector.broadcast %1 : f32 to vector<8x32xf32>
    %635 = arith.mulf %535, %634 : vector<8x32xf32>
    %636 = arith.addf %633, %635 : vector<8x32xf32>
    %637 = arith.index_cast %c2_i32 : i32 to index
    %c0_192 = arith.constant 0 : index
    %c0_193 = arith.constant 0 : index
    %638 = vector.load %arg9[%637, %c0_192, %c0_193] : memref<8x8x64xf32, #tpu.memory_space<vmem>>, vector<1x8x32xf32>
    %639 = vector.shape_cast %638 : vector<1x8x32xf32> to vector<8x32xf32>
    %640 = vector.shape_cast %636 : vector<8x32xf32> to vector<1x8x32xf32>
    tpu.vector_store %arg9[%637, %c0_192, %c0_193], %640 {strides = array<i32>} : memref<8x8x64xf32, #tpu.memory_space<vmem>>, vector<1x8x32xf32>,
    %641 = vector.broadcast %0 : f32 to vector<8x32xf32>
    %642 = arith.mulf %580, %641 : vector<8x32xf32>
    %643 = vector.broadcast %1 : f32 to vector<8x32xf32>
    %644 = arith.mulf %625, %643 : vector<8x32xf32>
    %645 = arith.addf %642, %644 : vector<8x32xf32>
    %646 = arith.index_cast %451 : i32 to index
    %c0_194 = arith.constant 0 : index
    %c32_195 = arith.constant 32 : index
    %647 = vector.load %arg9[%646, %c0_194, %c32_195] : memref<8x8x64xf32, #tpu.memory_space<vmem>>, vector<1x8x32xf32>
    %648 = vector.shape_cast %647 : vector<1x8x32xf32> to vector<8x32xf32>
    %649 = vector.shape_cast %645 : vector<8x32xf32> to vector<1x8x32xf32>
    tpu.vector_store %arg9[%646, %c0_194, %c32_195], %649 {strides = array<i32>} : memref<8x8x64xf32, #tpu.memory_space<vmem>>, vector<1x8x32xf32>,
    %c3_i32 = arith.constant 3 : i32
    %c7_i32_196 = arith.constant 7 : i32
    %650 = arith.subi %c7_i32_196, %c3_i32 : i32
    %c0_197 = arith.constant 0 : index
    %651 = arith.index_cast %c3_i32 : i32 to index
    %c0_198 = arith.constant 0 : index
    %c0_199 = arith.constant 0 : index
    %652 = vector.load %arg11[%c0_197, %651, %c0_198, %c0_199] : memref<4x8x8x128xf32, #tpu.memory_space<vmem>>, vector<1x1x8x128xf32>
    %653 = vector.shape_cast %652 : vector<1x1x8x128xf32> to vector<8x128xf32>
    %654 = arith.truncf %493 : vector<8x32xf32> to vector<8x32xbf16>
    %c0_200 = arith.constant 0 : index
    %c0_201 = arith.constant 0 : index
    %c0_202 = arith.constant 0 : index
    %655 = vector.load %arg4[%c0_200, %c0_201, %c0_202] : memref<4x32x128xbf16, #tpu.memory_space<vmem>>, vector<1x32x128xbf16>
    %656 = vector.shape_cast %655 : vector<1x32x128xbf16> to vector<32x128xbf16>
    %cst_203 = arith.constant dense<0.000000e+00> : vector<8x128xf32>
    %657 = tpu.matmul %654, %656, %cst_203 {dimension_numbers = #tpu.dot_dimension_numbers<[1], [0], [0], [1], [0, 0, 1, 1], [], []>} : vector<8x32xbf16>, vector<32x128xbf16>, vector<8x128xf32> -> vector<8x128xf32>
    %658 = arith.addf %653, %657 : vector<8x128xf32>
    %659 = vector.extract_strided_slice %658 {offsets = [0, 0], sizes = [8, 32], strides = [1, 1]} : vector<8x128xf32> to vector<8x32xf32>
    %660 = arith.negf %659 : vector<8x32xf32>
    %661 = math.exp %660 : vector<8x32xf32>
    %cst_204 = arith.constant 1.000000e+00 : f32
    %662 = vector.broadcast %cst_204 : f32 to vector<8x32xf32>
    %663 = arith.addf %662, %661 : vector<8x32xf32>
    %664 = arith.divf %662, %663 : vector<8x32xf32>
    %665 = vector.extract_strided_slice %658 {offsets = [0, 32], sizes = [8, 32], strides = [1, 1]} : vector<8x128xf32> to vector<8x32xf32>
    %666 = arith.negf %665 : vector<8x32xf32>
    %667 = math.exp %666 : vector<8x32xf32>
    %cst_205 = arith.constant 1.000000e+00 : f32
    %668 = vector.broadcast %cst_205 : f32 to vector<8x32xf32>
    %669 = arith.addf %668, %667 : vector<8x32xf32>
    %670 = arith.divf %668, %669 : vector<8x32xf32>
    %671 = vector.extract_strided_slice %658 {offsets = [0, 64], sizes = [8, 32], strides = [1, 1]} : vector<8x128xf32> to vector<8x32xf32>
    %672 = math.tanh %671 : vector<8x32xf32>
    %673 = vector.extract_strided_slice %658 {offsets = [0, 96], sizes = [8, 32], strides = [1, 1]} : vector<8x128xf32> to vector<8x32xf32>
    %674 = arith.negf %673 : vector<8x32xf32>
    %675 = math.exp %674 : vector<8x32xf32>
    %cst_206 = arith.constant 1.000000e+00 : f32
    %676 = vector.broadcast %cst_206 : f32 to vector<8x32xf32>
    %677 = arith.addf %676, %675 : vector<8x32xf32>
    %678 = arith.divf %676, %677 : vector<8x32xf32>
    %679 = arith.mulf %670, %496 : vector<8x32xf32>
    %680 = arith.mulf %664, %672 : vector<8x32xf32>
    %681 = arith.addf %679, %680 : vector<8x32xf32>
    %682 = math.tanh %681 : vector<8x32xf32>
    %683 = arith.mulf %678, %682 : vector<8x32xf32>
    %684 = vector.broadcast %c3_i32 : i32 to vector<8x1xi32>
    %685 = arith.cmpi sgt, %2, %684 : vector<8x1xi32>
    %cst_207 = arith.constant 0.000000e+00 : f32
    %686 = vector.shape_cast %685 : vector<8x1xi1> to vector<8x1xi1>
    %687 = vector.broadcast %686 : vector<8x1xi1> to vector<8x32xi1>
    %688 = vector.broadcast %cst_207 : f32 to vector<8x32xf32>
    %689 = arith.select %687, %683, %688 : vector<8x32xi1>, vector<8x32xf32>
    %690 = vector.shape_cast %685 : vector<8x1xi1> to vector<8x1xi1>
    %691 = vector.broadcast %690 : vector<8x1xi1> to vector<8x32xi1>
    %692 = arith.select %691, %683, %493 : vector<8x32xi1>, vector<8x32xf32>
    %693 = vector.shape_cast %685 : vector<8x1xi1> to vector<8x1xi1>
    %694 = vector.broadcast %693 : vector<8x1xi1> to vector<8x32xi1>
    %695 = arith.select %694, %681, %496 : vector<8x32xi1>, vector<8x32xf32>
    %c1_208 = arith.constant 1 : index
    %696 = arith.index_cast %c3_i32 : i32 to index
    %c0_209 = arith.constant 0 : index
    %c0_210 = arith.constant 0 : index
    %697 = vector.load %arg11[%c1_208, %696, %c0_209, %c0_210] : memref<4x8x8x128xf32, #tpu.memory_space<vmem>>, vector<1x1x8x128xf32>
    %698 = vector.shape_cast %697 : vector<1x1x8x128xf32> to vector<8x128xf32>
    %699 = arith.truncf %538 : vector<8x32xf32> to vector<8x32xbf16>
    %c1_211 = arith.constant 1 : index
    %c0_212 = arith.constant 0 : index
    %c0_213 = arith.constant 0 : index
    %700 = vector.load %arg4[%c1_211, %c0_212, %c0_213] : memref<4x32x128xbf16, #tpu.memory_space<vmem>>, vector<1x32x128xbf16>
    %701 = vector.shape_cast %700 : vector<1x32x128xbf16> to vector<32x128xbf16>
    %cst_214 = arith.constant dense<0.000000e+00> : vector<8x128xf32>
    %702 = tpu.matmul %699, %701, %cst_214 {dimension_numbers = #tpu.dot_dimension_numbers<[1], [0], [0], [1], [0, 0, 1, 1], [], []>} : vector<8x32xbf16>, vector<32x128xbf16>, vector<8x128xf32> -> vector<8x128xf32>
    %703 = arith.addf %698, %702 : vector<8x128xf32>
    %704 = vector.extract_strided_slice %703 {offsets = [0, 0], sizes = [8, 32], strides = [1, 1]} : vector<8x128xf32> to vector<8x32xf32>
    %705 = arith.negf %704 : vector<8x32xf32>
    %706 = math.exp %705 : vector<8x32xf32>
    %cst_215 = arith.constant 1.000000e+00 : f32
    %707 = vector.broadcast %cst_215 : f32 to vector<8x32xf32>
    %708 = arith.addf %707, %706 : vector<8x32xf32>
    %709 = arith.divf %707, %708 : vector<8x32xf32>
    %710 = vector.extract_strided_slice %703 {offsets = [0, 32], sizes = [8, 32], strides = [1, 1]} : vector<8x128xf32> to vector<8x32xf32>
    %711 = arith.negf %710 : vector<8x32xf32>
    %712 = math.exp %711 : vector<8x32xf32>
    %cst_216 = arith.constant 1.000000e+00 : f32
    %713 = vector.broadcast %cst_216 : f32 to vector<8x32xf32>
    %714 = arith.addf %713, %712 : vector<8x32xf32>
    %715 = arith.divf %713, %714 : vector<8x32xf32>
    %716 = vector.extract_strided_slice %703 {offsets = [0, 64], sizes = [8, 32], strides = [1, 1]} : vector<8x128xf32> to vector<8x32xf32>
    %717 = math.tanh %716 : vector<8x32xf32>
    %718 = vector.extract_strided_slice %703 {offsets = [0, 96], sizes = [8, 32], strides = [1, 1]} : vector<8x128xf32> to vector<8x32xf32>
    %719 = arith.negf %718 : vector<8x32xf32>
    %720 = math.exp %719 : vector<8x32xf32>
    %cst_217 = arith.constant 1.000000e+00 : f32
    %721 = vector.broadcast %cst_217 : f32 to vector<8x32xf32>
    %722 = arith.addf %721, %720 : vector<8x32xf32>
    %723 = arith.divf %721, %722 : vector<8x32xf32>
    %724 = arith.mulf %715, %541 : vector<8x32xf32>
    %725 = arith.mulf %709, %717 : vector<8x32xf32>
    %726 = arith.addf %724, %725 : vector<8x32xf32>
    %727 = math.tanh %726 : vector<8x32xf32>
    %728 = arith.mulf %723, %727 : vector<8x32xf32>
    %729 = vector.broadcast %c3_i32 : i32 to vector<8x1xi32>
    %730 = arith.cmpi sgt, %2, %729 : vector<8x1xi32>
    %cst_218 = arith.constant 0.000000e+00 : f32
    %731 = vector.shape_cast %730 : vector<8x1xi1> to vector<8x1xi1>
    %732 = vector.broadcast %731 : vector<8x1xi1> to vector<8x32xi1>
    %733 = vector.broadcast %cst_218 : f32 to vector<8x32xf32>
    %734 = arith.select %732, %728, %733 : vector<8x32xi1>, vector<8x32xf32>
    %735 = vector.shape_cast %730 : vector<8x1xi1> to vector<8x1xi1>
    %736 = vector.broadcast %735 : vector<8x1xi1> to vector<8x32xi1>
    %737 = arith.select %736, %728, %538 : vector<8x32xi1>, vector<8x32xf32>
    %738 = vector.shape_cast %730 : vector<8x1xi1> to vector<8x1xi1>
    %739 = vector.broadcast %738 : vector<8x1xi1> to vector<8x32xi1>
    %740 = arith.select %739, %726, %541 : vector<8x32xi1>, vector<8x32xf32>
    %c2_219 = arith.constant 2 : index
    %741 = arith.index_cast %650 : i32 to index
    %c0_220 = arith.constant 0 : index
    %c0_221 = arith.constant 0 : index
    %742 = vector.load %arg11[%c2_219, %741, %c0_220, %c0_221] : memref<4x8x8x128xf32, #tpu.memory_space<vmem>>, vector<1x1x8x128xf32>
    %743 = vector.shape_cast %742 : vector<1x1x8x128xf32> to vector<8x128xf32>
    %744 = arith.truncf %583 : vector<8x32xf32> to vector<8x32xbf16>
    %c2_222 = arith.constant 2 : index
    %c0_223 = arith.constant 0 : index
    %c0_224 = arith.constant 0 : index
    %745 = vector.load %arg4[%c2_222, %c0_223, %c0_224] : memref<4x32x128xbf16, #tpu.memory_space<vmem>>, vector<1x32x128xbf16>
    %746 = vector.shape_cast %745 : vector<1x32x128xbf16> to vector<32x128xbf16>
    %cst_225 = arith.constant dense<0.000000e+00> : vector<8x128xf32>
    %747 = tpu.matmul %744, %746, %cst_225 {dimension_numbers = #tpu.dot_dimension_numbers<[1], [0], [0], [1], [0, 0, 1, 1], [], []>} : vector<8x32xbf16>, vector<32x128xbf16>, vector<8x128xf32> -> vector<8x128xf32>
    %748 = arith.addf %743, %747 : vector<8x128xf32>
    %749 = vector.extract_strided_slice %748 {offsets = [0, 0], sizes = [8, 32], strides = [1, 1]} : vector<8x128xf32> to vector<8x32xf32>
    %750 = arith.negf %749 : vector<8x32xf32>
    %751 = math.exp %750 : vector<8x32xf32>
    %cst_226 = arith.constant 1.000000e+00 : f32
    %752 = vector.broadcast %cst_226 : f32 to vector<8x32xf32>
    %753 = arith.addf %752, %751 : vector<8x32xf32>
    %754 = arith.divf %752, %753 : vector<8x32xf32>
    %755 = vector.extract_strided_slice %748 {offsets = [0, 32], sizes = [8, 32], strides = [1, 1]} : vector<8x128xf32> to vector<8x32xf32>
    %756 = arith.negf %755 : vector<8x32xf32>
    %757 = math.exp %756 : vector<8x32xf32>
    %cst_227 = arith.constant 1.000000e+00 : f32
    %758 = vector.broadcast %cst_227 : f32 to vector<8x32xf32>
    %759 = arith.addf %758, %757 : vector<8x32xf32>
    %760 = arith.divf %758, %759 : vector<8x32xf32>
    %761 = vector.extract_strided_slice %748 {offsets = [0, 64], sizes = [8, 32], strides = [1, 1]} : vector<8x128xf32> to vector<8x32xf32>
    %762 = math.tanh %761 : vector<8x32xf32>
    %763 = vector.extract_strided_slice %748 {offsets = [0, 96], sizes = [8, 32], strides = [1, 1]} : vector<8x128xf32> to vector<8x32xf32>
    %764 = arith.negf %763 : vector<8x32xf32>
    %765 = math.exp %764 : vector<8x32xf32>
    %cst_228 = arith.constant 1.000000e+00 : f32
    %766 = vector.broadcast %cst_228 : f32 to vector<8x32xf32>
    %767 = arith.addf %766, %765 : vector<8x32xf32>
    %768 = arith.divf %766, %767 : vector<8x32xf32>
    %769 = arith.mulf %760, %586 : vector<8x32xf32>
    %770 = arith.mulf %754, %762 : vector<8x32xf32>
    %771 = arith.addf %769, %770 : vector<8x32xf32>
    %772 = math.tanh %771 : vector<8x32xf32>
    %773 = arith.mulf %768, %772 : vector<8x32xf32>
    %774 = vector.broadcast %650 : i32 to vector<8x1xi32>
    %775 = arith.cmpi sgt, %2, %774 : vector<8x1xi32>
    %cst_229 = arith.constant 0.000000e+00 : f32
    %776 = vector.shape_cast %775 : vector<8x1xi1> to vector<8x1xi1>
    %777 = vector.broadcast %776 : vector<8x1xi1> to vector<8x32xi1>
    %778 = vector.broadcast %cst_229 : f32 to vector<8x32xf32>
    %779 = arith.select %777, %773, %778 : vector<8x32xi1>, vector<8x32xf32>
    %780 = vector.shape_cast %775 : vector<8x1xi1> to vector<8x1xi1>
    %781 = vector.broadcast %780 : vector<8x1xi1> to vector<8x32xi1>
    %782 = arith.select %781, %773, %583 : vector<8x32xi1>, vector<8x32xf32>
    %783 = vector.shape_cast %775 : vector<8x1xi1> to vector<8x1xi1>
    %784 = vector.broadcast %783 : vector<8x1xi1> to vector<8x32xi1>
    %785 = arith.select %784, %771, %586 : vector<8x32xi1>, vector<8x32xf32>
    %c3_230 = arith.constant 3 : index
    %786 = arith.index_cast %650 : i32 to index
    %c0_231 = arith.constant 0 : index
    %c0_232 = arith.constant 0 : index
    %787 = vector.load %arg11[%c3_230, %786, %c0_231, %c0_232] : memref<4x8x8x128xf32, #tpu.memory_space<vmem>>, vector<1x1x8x128xf32>
    %788 = vector.shape_cast %787 : vector<1x1x8x128xf32> to vector<8x128xf32>
    %789 = arith.truncf %628 : vector<8x32xf32> to vector<8x32xbf16>
    %c3_233 = arith.constant 3 : index
    %c0_234 = arith.constant 0 : index
    %c0_235 = arith.constant 0 : index
    %790 = vector.load %arg4[%c3_233, %c0_234, %c0_235] : memref<4x32x128xbf16, #tpu.memory_space<vmem>>, vector<1x32x128xbf16>
    %791 = vector.shape_cast %790 : vector<1x32x128xbf16> to vector<32x128xbf16>
    %cst_236 = arith.constant dense<0.000000e+00> : vector<8x128xf32>
    %792 = tpu.matmul %789, %791, %cst_236 {dimension_numbers = #tpu.dot_dimension_numbers<[1], [0], [0], [1], [0, 0, 1, 1], [], []>} : vector<8x32xbf16>, vector<32x128xbf16>, vector<8x128xf32> -> vector<8x128xf32>
    %793 = arith.addf %788, %792 : vector<8x128xf32>
    %794 = vector.extract_strided_slice %793 {offsets = [0, 0], sizes = [8, 32], strides = [1, 1]} : vector<8x128xf32> to vector<8x32xf32>
    %795 = arith.negf %794 : vector<8x32xf32>
    %796 = math.exp %795 : vector<8x32xf32>
    %cst_237 = arith.constant 1.000000e+00 : f32
    %797 = vector.broadcast %cst_237 : f32 to vector<8x32xf32>
    %798 = arith.addf %797, %796 : vector<8x32xf32>
    %799 = arith.divf %797, %798 : vector<8x32xf32>
    %800 = vector.extract_strided_slice %793 {offsets = [0, 32], sizes = [8, 32], strides = [1, 1]} : vector<8x128xf32> to vector<8x32xf32>
    %801 = arith.negf %800 : vector<8x32xf32>
    %802 = math.exp %801 : vector<8x32xf32>
    %cst_238 = arith.constant 1.000000e+00 : f32
    %803 = vector.broadcast %cst_238 : f32 to vector<8x32xf32>
    %804 = arith.addf %803, %802 : vector<8x32xf32>
    %805 = arith.divf %803, %804 : vector<8x32xf32>
    %806 = vector.extract_strided_slice %793 {offsets = [0, 64], sizes = [8, 32], strides = [1, 1]} : vector<8x128xf32> to vector<8x32xf32>
    %807 = math.tanh %806 : vector<8x32xf32>
    %808 = vector.extract_strided_slice %793 {offsets = [0, 96], sizes = [8, 32], strides = [1, 1]} : vector<8x128xf32> to vector<8x32xf32>
    %809 = arith.negf %808 : vector<8x32xf32>
    %810 = math.exp %809 : vector<8x32xf32>
    %cst_239 = arith.constant 1.000000e+00 : f32
    %811 = vector.broadcast %cst_239 : f32 to vector<8x32xf32>
    %812 = arith.addf %811, %810 : vector<8x32xf32>
    %813 = arith.divf %811, %812 : vector<8x32xf32>
    %814 = arith.mulf %805, %631 : vector<8x32xf32>
    %815 = arith.mulf %799, %807 : vector<8x32xf32>
    %816 = arith.addf %814, %815 : vector<8x32xf32>
    %817 = math.tanh %816 : vector<8x32xf32>
    %818 = arith.mulf %813, %817 : vector<8x32xf32>
    %819 = vector.broadcast %650 : i32 to vector<8x1xi32>
    %820 = arith.cmpi sgt, %2, %819 : vector<8x1xi32>
    %cst_240 = arith.constant 0.000000e+00 : f32
    %821 = vector.shape_cast %820 : vector<8x1xi1> to vector<8x1xi1>
    %822 = vector.broadcast %821 : vector<8x1xi1> to vector<8x32xi1>
    %823 = vector.broadcast %cst_240 : f32 to vector<8x32xf32>
    %824 = arith.select %822, %818, %823 : vector<8x32xi1>, vector<8x32xf32>
    %825 = vector.shape_cast %820 : vector<8x1xi1> to vector<8x1xi1>
    %826 = vector.broadcast %825 : vector<8x1xi1> to vector<8x32xi1>
    %827 = arith.select %826, %818, %628 : vector<8x32xi1>, vector<8x32xf32>
    %828 = vector.shape_cast %820 : vector<8x1xi1> to vector<8x1xi1>
    %829 = vector.broadcast %828 : vector<8x1xi1> to vector<8x32xi1>
    %830 = arith.select %829, %816, %631 : vector<8x32xi1>, vector<8x32xf32>
    %831 = vector.broadcast %0 : f32 to vector<8x32xf32>
    %832 = arith.mulf %689, %831 : vector<8x32xf32>
    %833 = vector.broadcast %1 : f32 to vector<8x32xf32>
    %834 = arith.mulf %734, %833 : vector<8x32xf32>
    %835 = arith.addf %832, %834 : vector<8x32xf32>
    %836 = arith.index_cast %c3_i32 : i32 to index
    %c0_241 = arith.constant 0 : index
    %c0_242 = arith.constant 0 : index
    %837 = vector.load %arg9[%836, %c0_241, %c0_242] : memref<8x8x64xf32, #tpu.memory_space<vmem>>, vector<1x8x32xf32>
    %838 = vector.shape_cast %837 : vector<1x8x32xf32> to vector<8x32xf32>
    %839 = vector.shape_cast %835 : vector<8x32xf32> to vector<1x8x32xf32>
    tpu.vector_store %arg9[%836, %c0_241, %c0_242], %839 {strides = array<i32>} : memref<8x8x64xf32, #tpu.memory_space<vmem>>, vector<1x8x32xf32>,
    %840 = vector.broadcast %0 : f32 to vector<8x32xf32>
    %841 = arith.mulf %779, %840 : vector<8x32xf32>
    %842 = vector.broadcast %1 : f32 to vector<8x32xf32>
    %843 = arith.mulf %824, %842 : vector<8x32xf32>
    %844 = arith.addf %841, %843 : vector<8x32xf32>
    %845 = arith.index_cast %650 : i32 to index
    %c0_243 = arith.constant 0 : index
    %c32_244 = arith.constant 32 : index
    %846 = vector.load %arg9[%845, %c0_243, %c32_244] : memref<8x8x64xf32, #tpu.memory_space<vmem>>, vector<1x8x32xf32>
    %847 = vector.shape_cast %846 : vector<1x8x32xf32> to vector<8x32xf32>
    %848 = vector.shape_cast %844 : vector<8x32xf32> to vector<1x8x32xf32>
    tpu.vector_store %arg9[%845, %c0_243, %c32_244], %848 {strides = array<i32>} : memref<8x8x64xf32, #tpu.memory_space<vmem>>, vector<1x8x32xf32>,
    %c4_i32 = arith.constant 4 : i32
    %c7_i32_245 = arith.constant 7 : i32
    %849 = arith.subi %c7_i32_245, %c4_i32 : i32
    %c0_246 = arith.constant 0 : index
    %850 = arith.index_cast %c4_i32 : i32 to index
    %c0_247 = arith.constant 0 : index
    %c0_248 = arith.constant 0 : index
    %851 = vector.load %arg11[%c0_246, %850, %c0_247, %c0_248] : memref<4x8x8x128xf32, #tpu.memory_space<vmem>>, vector<1x1x8x128xf32>
    %852 = vector.shape_cast %851 : vector<1x1x8x128xf32> to vector<8x128xf32>
    %853 = arith.truncf %692 : vector<8x32xf32> to vector<8x32xbf16>
    %c0_249 = arith.constant 0 : index
    %c0_250 = arith.constant 0 : index
    %c0_251 = arith.constant 0 : index
    %854 = vector.load %arg4[%c0_249, %c0_250, %c0_251] : memref<4x32x128xbf16, #tpu.memory_space<vmem>>, vector<1x32x128xbf16>
    %855 = vector.shape_cast %854 : vector<1x32x128xbf16> to vector<32x128xbf16>
    %cst_252 = arith.constant dense<0.000000e+00> : vector<8x128xf32>
    %856 = tpu.matmul %853, %855, %cst_252 {dimension_numbers = #tpu.dot_dimension_numbers<[1], [0], [0], [1], [0, 0, 1, 1], [], []>} : vector<8x32xbf16>, vector<32x128xbf16>, vector<8x128xf32> -> vector<8x128xf32>
    %857 = arith.addf %852, %856 : vector<8x128xf32>
    %858 = vector.extract_strided_slice %857 {offsets = [0, 0], sizes = [8, 32], strides = [1, 1]} : vector<8x128xf32> to vector<8x32xf32>
    %859 = arith.negf %858 : vector<8x32xf32>
    %860 = math.exp %859 : vector<8x32xf32>
    %cst_253 = arith.constant 1.000000e+00 : f32
    %861 = vector.broadcast %cst_253 : f32 to vector<8x32xf32>
    %862 = arith.addf %861, %860 : vector<8x32xf32>
    %863 = arith.divf %861, %862 : vector<8x32xf32>
    %864 = vector.extract_strided_slice %857 {offsets = [0, 32], sizes = [8, 32], strides = [1, 1]} : vector<8x128xf32> to vector<8x32xf32>
    %865 = arith.negf %864 : vector<8x32xf32>
    %866 = math.exp %865 : vector<8x32xf32>
    %cst_254 = arith.constant 1.000000e+00 : f32
    %867 = vector.broadcast %cst_254 : f32 to vector<8x32xf32>
    %868 = arith.addf %867, %866 : vector<8x32xf32>
    %869 = arith.divf %867, %868 : vector<8x32xf32>
    %870 = vector.extract_strided_slice %857 {offsets = [0, 64], sizes = [8, 32], strides = [1, 1]} : vector<8x128xf32> to vector<8x32xf32>
    %871 = math.tanh %870 : vector<8x32xf32>
    %872 = vector.extract_strided_slice %857 {offsets = [0, 96], sizes = [8, 32], strides = [1, 1]} : vector<8x128xf32> to vector<8x32xf32>
    %873 = arith.negf %872 : vector<8x32xf32>
    %874 = math.exp %873 : vector<8x32xf32>
    %cst_255 = arith.constant 1.000000e+00 : f32
    %875 = vector.broadcast %cst_255 : f32 to vector<8x32xf32>
    %876 = arith.addf %875, %874 : vector<8x32xf32>
    %877 = arith.divf %875, %876 : vector<8x32xf32>
    %878 = arith.mulf %869, %695 : vector<8x32xf32>
    %879 = arith.mulf %863, %871 : vector<8x32xf32>
    %880 = arith.addf %878, %879 : vector<8x32xf32>
    %881 = math.tanh %880 : vector<8x32xf32>
    %882 = arith.mulf %877, %881 : vector<8x32xf32>
    %883 = vector.broadcast %c4_i32 : i32 to vector<8x1xi32>
    %884 = arith.cmpi sgt, %2, %883 : vector<8x1xi32>
    %cst_256 = arith.constant 0.000000e+00 : f32
    %885 = vector.shape_cast %884 : vector<8x1xi1> to vector<8x1xi1>
    %886 = vector.broadcast %885 : vector<8x1xi1> to vector<8x32xi1>
    %887 = vector.broadcast %cst_256 : f32 to vector<8x32xf32>
    %888 = arith.select %886, %882, %887 : vector<8x32xi1>, vector<8x32xf32>
    %889 = vector.shape_cast %884 : vector<8x1xi1> to vector<8x1xi1>
    %890 = vector.broadcast %889 : vector<8x1xi1> to vector<8x32xi1>
    %891 = arith.select %890, %882, %692 : vector<8x32xi1>, vector<8x32xf32>
    %892 = vector.shape_cast %884 : vector<8x1xi1> to vector<8x1xi1>
    %893 = vector.broadcast %892 : vector<8x1xi1> to vector<8x32xi1>
    %894 = arith.select %893, %880, %695 : vector<8x32xi1>, vector<8x32xf32>
    %c1_257 = arith.constant 1 : index
    %895 = arith.index_cast %c4_i32 : i32 to index
    %c0_258 = arith.constant 0 : index
    %c0_259 = arith.constant 0 : index
    %896 = vector.load %arg11[%c1_257, %895, %c0_258, %c0_259] : memref<4x8x8x128xf32, #tpu.memory_space<vmem>>, vector<1x1x8x128xf32>
    %897 = vector.shape_cast %896 : vector<1x1x8x128xf32> to vector<8x128xf32>
    %898 = arith.truncf %737 : vector<8x32xf32> to vector<8x32xbf16>
    %c1_260 = arith.constant 1 : index
    %c0_261 = arith.constant 0 : index
    %c0_262 = arith.constant 0 : index
    %899 = vector.load %arg4[%c1_260, %c0_261, %c0_262] : memref<4x32x128xbf16, #tpu.memory_space<vmem>>, vector<1x32x128xbf16>
    %900 = vector.shape_cast %899 : vector<1x32x128xbf16> to vector<32x128xbf16>
    %cst_263 = arith.constant dense<0.000000e+00> : vector<8x128xf32>
    %901 = tpu.matmul %898, %900, %cst_263 {dimension_numbers = #tpu.dot_dimension_numbers<[1], [0], [0], [1], [0, 0, 1, 1], [], []>} : vector<8x32xbf16>, vector<32x128xbf16>, vector<8x128xf32> -> vector<8x128xf32>
    %902 = arith.addf %897, %901 : vector<8x128xf32>
    %903 = vector.extract_strided_slice %902 {offsets = [0, 0], sizes = [8, 32], strides = [1, 1]} : vector<8x128xf32> to vector<8x32xf32>
    %904 = arith.negf %903 : vector<8x32xf32>
    %905 = math.exp %904 : vector<8x32xf32>
    %cst_264 = arith.constant 1.000000e+00 : f32
    %906 = vector.broadcast %cst_264 : f32 to vector<8x32xf32>
    %907 = arith.addf %906, %905 : vector<8x32xf32>
    %908 = arith.divf %906, %907 : vector<8x32xf32>
    %909 = vector.extract_strided_slice %902 {offsets = [0, 32], sizes = [8, 32], strides = [1, 1]} : vector<8x128xf32> to vector<8x32xf32>
    %910 = arith.negf %909 : vector<8x32xf32>
    %911 = math.exp %910 : vector<8x32xf32>
    %cst_265 = arith.constant 1.000000e+00 : f32
    %912 = vector.broadcast %cst_265 : f32 to vector<8x32xf32>
    %913 = arith.addf %912, %911 : vector<8x32xf32>
    %914 = arith.divf %912, %913 : vector<8x32xf32>
    %915 = vector.extract_strided_slice %902 {offsets = [0, 64], sizes = [8, 32], strides = [1, 1]} : vector<8x128xf32> to vector<8x32xf32>
    %916 = math.tanh %915 : vector<8x32xf32>
    %917 = vector.extract_strided_slice %902 {offsets = [0, 96], sizes = [8, 32], strides = [1, 1]} : vector<8x128xf32> to vector<8x32xf32>
    %918 = arith.negf %917 : vector<8x32xf32>
    %919 = math.exp %918 : vector<8x32xf32>
    %cst_266 = arith.constant 1.000000e+00 : f32
    %920 = vector.broadcast %cst_266 : f32 to vector<8x32xf32>
    %921 = arith.addf %920, %919 : vector<8x32xf32>
    %922 = arith.divf %920, %921 : vector<8x32xf32>
    %923 = arith.mulf %914, %740 : vector<8x32xf32>
    %924 = arith.mulf %908, %916 : vector<8x32xf32>
    %925 = arith.addf %923, %924 : vector<8x32xf32>
    %926 = math.tanh %925 : vector<8x32xf32>
    %927 = arith.mulf %922, %926 : vector<8x32xf32>
    %928 = vector.broadcast %c4_i32 : i32 to vector<8x1xi32>
    %929 = arith.cmpi sgt, %2, %928 : vector<8x1xi32>
    %cst_267 = arith.constant 0.000000e+00 : f32
    %930 = vector.shape_cast %929 : vector<8x1xi1> to vector<8x1xi1>
    %931 = vector.broadcast %930 : vector<8x1xi1> to vector<8x32xi1>
    %932 = vector.broadcast %cst_267 : f32 to vector<8x32xf32>
    %933 = arith.select %931, %927, %932 : vector<8x32xi1>, vector<8x32xf32>
    %934 = vector.shape_cast %929 : vector<8x1xi1> to vector<8x1xi1>
    %935 = vector.broadcast %934 : vector<8x1xi1> to vector<8x32xi1>
    %936 = arith.select %935, %927, %737 : vector<8x32xi1>, vector<8x32xf32>
    %937 = vector.shape_cast %929 : vector<8x1xi1> to vector<8x1xi1>
    %938 = vector.broadcast %937 : vector<8x1xi1> to vector<8x32xi1>
    %939 = arith.select %938, %925, %740 : vector<8x32xi1>, vector<8x32xf32>
    %c2_268 = arith.constant 2 : index
    %940 = arith.index_cast %849 : i32 to index
    %c0_269 = arith.constant 0 : index
    %c0_270 = arith.constant 0 : index
    %941 = vector.load %arg11[%c2_268, %940, %c0_269, %c0_270] : memref<4x8x8x128xf32, #tpu.memory_space<vmem>>, vector<1x1x8x128xf32>
    %942 = vector.shape_cast %941 : vector<1x1x8x128xf32> to vector<8x128xf32>
    %943 = arith.truncf %782 : vector<8x32xf32> to vector<8x32xbf16>
    %c2_271 = arith.constant 2 : index
    %c0_272 = arith.constant 0 : index
    %c0_273 = arith.constant 0 : index
    %944 = vector.load %arg4[%c2_271, %c0_272, %c0_273] : memref<4x32x128xbf16, #tpu.memory_space<vmem>>, vector<1x32x128xbf16>
    %945 = vector.shape_cast %944 : vector<1x32x128xbf16> to vector<32x128xbf16>
    %cst_274 = arith.constant dense<0.000000e+00> : vector<8x128xf32>
    %946 = tpu.matmul %943, %945, %cst_274 {dimension_numbers = #tpu.dot_dimension_numbers<[1], [0], [0], [1], [0, 0, 1, 1], [], []>} : vector<8x32xbf16>, vector<32x128xbf16>, vector<8x128xf32> -> vector<8x128xf32>
    %947 = arith.addf %942, %946 : vector<8x128xf32>
    %948 = vector.extract_strided_slice %947 {offsets = [0, 0], sizes = [8, 32], strides = [1, 1]} : vector<8x128xf32> to vector<8x32xf32>
    %949 = arith.negf %948 : vector<8x32xf32>
    %950 = math.exp %949 : vector<8x32xf32>
    %cst_275 = arith.constant 1.000000e+00 : f32
    %951 = vector.broadcast %cst_275 : f32 to vector<8x32xf32>
    %952 = arith.addf %951, %950 : vector<8x32xf32>
    %953 = arith.divf %951, %952 : vector<8x32xf32>
    %954 = vector.extract_strided_slice %947 {offsets = [0, 32], sizes = [8, 32], strides = [1, 1]} : vector<8x128xf32> to vector<8x32xf32>
    %955 = arith.negf %954 : vector<8x32xf32>
    %956 = math.exp %955 : vector<8x32xf32>
    %cst_276 = arith.constant 1.000000e+00 : f32
    %957 = vector.broadcast %cst_276 : f32 to vector<8x32xf32>
    %958 = arith.addf %957, %956 : vector<8x32xf32>
    %959 = arith.divf %957, %958 : vector<8x32xf32>
    %960 = vector.extract_strided_slice %947 {offsets = [0, 64], sizes = [8, 32], strides = [1, 1]} : vector<8x128xf32> to vector<8x32xf32>
    %961 = math.tanh %960 : vector<8x32xf32>
    %962 = vector.extract_strided_slice %947 {offsets = [0, 96], sizes = [8, 32], strides = [1, 1]} : vector<8x128xf32> to vector<8x32xf32>
    %963 = arith.negf %962 : vector<8x32xf32>
    %964 = math.exp %963 : vector<8x32xf32>
    %cst_277 = arith.constant 1.000000e+00 : f32
    %965 = vector.broadcast %cst_277 : f32 to vector<8x32xf32>
    %966 = arith.addf %965, %964 : vector<8x32xf32>
    %967 = arith.divf %965, %966 : vector<8x32xf32>
    %968 = arith.mulf %959, %785 : vector<8x32xf32>
    %969 = arith.mulf %953, %961 : vector<8x32xf32>
    %970 = arith.addf %968, %969 : vector<8x32xf32>
    %971 = math.tanh %970 : vector<8x32xf32>
    %972 = arith.mulf %967, %971 : vector<8x32xf32>
    %973 = vector.broadcast %849 : i32 to vector<8x1xi32>
    %974 = arith.cmpi sgt, %2, %973 : vector<8x1xi32>
    %cst_278 = arith.constant 0.000000e+00 : f32
    %975 = vector.shape_cast %974 : vector<8x1xi1> to vector<8x1xi1>
    %976 = vector.broadcast %975 : vector<8x1xi1> to vector<8x32xi1>
    %977 = vector.broadcast %cst_278 : f32 to vector<8x32xf32>
    %978 = arith.select %976, %972, %977 : vector<8x32xi1>, vector<8x32xf32>
    %979 = vector.shape_cast %974 : vector<8x1xi1> to vector<8x1xi1>
    %980 = vector.broadcast %979 : vector<8x1xi1> to vector<8x32xi1>
    %981 = arith.select %980, %972, %782 : vector<8x32xi1>, vector<8x32xf32>
    %982 = vector.shape_cast %974 : vector<8x1xi1> to vector<8x1xi1>
    %983 = vector.broadcast %982 : vector<8x1xi1> to vector<8x32xi1>
    %984 = arith.select %983, %970, %785 : vector<8x32xi1>, vector<8x32xf32>
    %c3_279 = arith.constant 3 : index
    %985 = arith.index_cast %849 : i32 to index
    %c0_280 = arith.constant 0 : index
    %c0_281 = arith.constant 0 : index
    %986 = vector.load %arg11[%c3_279, %985, %c0_280, %c0_281] : memref<4x8x8x128xf32, #tpu.memory_space<vmem>>, vector<1x1x8x128xf32>
    %987 = vector.shape_cast %986 : vector<1x1x8x128xf32> to vector<8x128xf32>
    %988 = arith.truncf %827 : vector<8x32xf32> to vector<8x32xbf16>
    %c3_282 = arith.constant 3 : index
    %c0_283 = arith.constant 0 : index
    %c0_284 = arith.constant 0 : index
    %989 = vector.load %arg4[%c3_282, %c0_283, %c0_284] : memref<4x32x128xbf16, #tpu.memory_space<vmem>>, vector<1x32x128xbf16>
    %990 = vector.shape_cast %989 : vector<1x32x128xbf16> to vector<32x128xbf16>
    %cst_285 = arith.constant dense<0.000000e+00> : vector<8x128xf32>
    %991 = tpu.matmul %988, %990, %cst_285 {dimension_numbers = #tpu.dot_dimension_numbers<[1], [0], [0], [1], [0, 0, 1, 1], [], []>} : vector<8x32xbf16>, vector<32x128xbf16>, vector<8x128xf32> -> vector<8x128xf32>
    %992 = arith.addf %987, %991 : vector<8x128xf32>
    %993 = vector.extract_strided_slice %992 {offsets = [0, 0], sizes = [8, 32], strides = [1, 1]} : vector<8x128xf32> to vector<8x32xf32>
    %994 = arith.negf %993 : vector<8x32xf32>
    %995 = math.exp %994 : vector<8x32xf32>
    %cst_286 = arith.constant 1.000000e+00 : f32
    %996 = vector.broadcast %cst_286 : f32 to vector<8x32xf32>
    %997 = arith.addf %996, %995 : vector<8x32xf32>
    %998 = arith.divf %996, %997 : vector<8x32xf32>
    %999 = vector.extract_strided_slice %992 {offsets = [0, 32], sizes = [8, 32], strides = [1, 1]} : vector<8x128xf32> to vector<8x32xf32>
    %1000 = arith.negf %999 : vector<8x32xf32>
    %1001 = math.exp %1000 : vector<8x32xf32>
    %cst_287 = arith.constant 1.000000e+00 : f32
    %1002 = vector.broadcast %cst_287 : f32 to vector<8x32xf32>
    %1003 = arith.addf %1002, %1001 : vector<8x32xf32>
    %1004 = arith.divf %1002, %1003 : vector<8x32xf32>
    %1005 = vector.extract_strided_slice %992 {offsets = [0, 64], sizes = [8, 32], strides = [1, 1]} : vector<8x128xf32> to vector<8x32xf32>
    %1006 = math.tanh %1005 : vector<8x32xf32>
    %1007 = vector.extract_strided_slice %992 {offsets = [0, 96], sizes = [8, 32], strides = [1, 1]} : vector<8x128xf32> to vector<8x32xf32>
    %1008 = arith.negf %1007 : vector<8x32xf32>
    %1009 = math.exp %1008 : vector<8x32xf32>
    %cst_288 = arith.constant 1.000000e+00 : f32
    %1010 = vector.broadcast %cst_288 : f32 to vector<8x32xf32>
    %1011 = arith.addf %1010, %1009 : vector<8x32xf32>
    %1012 = arith.divf %1010, %1011 : vector<8x32xf32>
    %1013 = arith.mulf %1004, %830 : vector<8x32xf32>
    %1014 = arith.mulf %998, %1006 : vector<8x32xf32>
    %1015 = arith.addf %1013, %1014 : vector<8x32xf32>
    %1016 = math.tanh %1015 : vector<8x32xf32>
    %1017 = arith.mulf %1012, %1016 : vector<8x32xf32>
    %1018 = vector.broadcast %849 : i32 to vector<8x1xi32>
    %1019 = arith.cmpi sgt, %2, %1018 : vector<8x1xi32>
    %cst_289 = arith.constant 0.000000e+00 : f32
    %1020 = vector.shape_cast %1019 : vector<8x1xi1> to vector<8x1xi1>
    %1021 = vector.broadcast %1020 : vector<8x1xi1> to vector<8x32xi1>
    %1022 = vector.broadcast %cst_289 : f32 to vector<8x32xf32>
    %1023 = arith.select %1021, %1017, %1022 : vector<8x32xi1>, vector<8x32xf32>
    %1024 = vector.shape_cast %1019 : vector<8x1xi1> to vector<8x1xi1>
    %1025 = vector.broadcast %1024 : vector<8x1xi1> to vector<8x32xi1>
    %1026 = arith.select %1025, %1017, %827 : vector<8x32xi1>, vector<8x32xf32>
    %1027 = vector.shape_cast %1019 : vector<8x1xi1> to vector<8x1xi1>
    %1028 = vector.broadcast %1027 : vector<8x1xi1> to vector<8x32xi1>
    %1029 = arith.select %1028, %1015, %830 : vector<8x32xi1>, vector<8x32xf32>
    %1030 = vector.broadcast %0 : f32 to vector<8x32xf32>
    %1031 = arith.mulf %888, %1030 : vector<8x32xf32>
    %1032 = vector.broadcast %1 : f32 to vector<8x32xf32>
    %1033 = arith.mulf %933, %1032 : vector<8x32xf32>
    %1034 = arith.addf %1031, %1033 : vector<8x32xf32>
    %1035 = arith.index_cast %c4_i32 : i32 to index
    %c0_290 = arith.constant 0 : index
    %c0_291 = arith.constant 0 : index
    %1036 = vector.load %arg9[%1035, %c0_290, %c0_291] : memref<8x8x64xf32, #tpu.memory_space<vmem>>, vector<1x8x32xf32>
    %1037 = vector.shape_cast %1036 : vector<1x8x32xf32> to vector<8x32xf32>
    %1038 = vector.shape_cast %1034 : vector<8x32xf32> to vector<1x8x32xf32>
    tpu.vector_store %arg9[%1035, %c0_290, %c0_291], %1038 {strides = array<i32>} : memref<8x8x64xf32, #tpu.memory_space<vmem>>, vector<1x8x32xf32>,
    %1039 = vector.broadcast %0 : f32 to vector<8x32xf32>
    %1040 = arith.mulf %978, %1039 : vector<8x32xf32>
    %1041 = vector.broadcast %1 : f32 to vector<8x32xf32>
    %1042 = arith.mulf %1023, %1041 : vector<8x32xf32>
    %1043 = arith.addf %1040, %1042 : vector<8x32xf32>
    %1044 = arith.index_cast %849 : i32 to index
    %c0_292 = arith.constant 0 : index
    %c32_293 = arith.constant 32 : index
    %1045 = vector.load %arg9[%1044, %c0_292, %c32_293] : memref<8x8x64xf32, #tpu.memory_space<vmem>>, vector<1x8x32xf32>
    %1046 = vector.shape_cast %1045 : vector<1x8x32xf32> to vector<8x32xf32>
    %1047 = vector.shape_cast %1043 : vector<8x32xf32> to vector<1x8x32xf32>
    tpu.vector_store %arg9[%1044, %c0_292, %c32_293], %1047 {strides = array<i32>} : memref<8x8x64xf32, #tpu.memory_space<vmem>>, vector<1x8x32xf32>,
    %c5_i32 = arith.constant 5 : i32
    %c7_i32_294 = arith.constant 7 : i32
    %1048 = arith.subi %c7_i32_294, %c5_i32 : i32
    %c0_295 = arith.constant 0 : index
    %1049 = arith.index_cast %c5_i32 : i32 to index
    %c0_296 = arith.constant 0 : index
    %c0_297 = arith.constant 0 : index
    %1050 = vector.load %arg11[%c0_295, %1049, %c0_296, %c0_297] : memref<4x8x8x128xf32, #tpu.memory_space<vmem>>, vector<1x1x8x128xf32>
    %1051 = vector.shape_cast %1050 : vector<1x1x8x128xf32> to vector<8x128xf32>
    %1052 = arith.truncf %891 : vector<8x32xf32> to vector<8x32xbf16>
    %c0_298 = arith.constant 0 : index
    %c0_299 = arith.constant 0 : index
    %c0_300 = arith.constant 0 : index
    %1053 = vector.load %arg4[%c0_298, %c0_299, %c0_300] : memref<4x32x128xbf16, #tpu.memory_space<vmem>>, vector<1x32x128xbf16>
    %1054 = vector.shape_cast %1053 : vector<1x32x128xbf16> to vector<32x128xbf16>
    %cst_301 = arith.constant dense<0.000000e+00> : vector<8x128xf32>
    %1055 = tpu.matmul %1052, %1054, %cst_301 {dimension_numbers = #tpu.dot_dimension_numbers<[1], [0], [0], [1], [0, 0, 1, 1], [], []>} : vector<8x32xbf16>, vector<32x128xbf16>, vector<8x128xf32> -> vector<8x128xf32>
    %1056 = arith.addf %1051, %1055 : vector<8x128xf32>
    %1057 = vector.extract_strided_slice %1056 {offsets = [0, 0], sizes = [8, 32], strides = [1, 1]} : vector<8x128xf32> to vector<8x32xf32>
    %1058 = arith.negf %1057 : vector<8x32xf32>
    %1059 = math.exp %1058 : vector<8x32xf32>
    %cst_302 = arith.constant 1.000000e+00 : f32
    %1060 = vector.broadcast %cst_302 : f32 to vector<8x32xf32>
    %1061 = arith.addf %1060, %1059 : vector<8x32xf32>
    %1062 = arith.divf %1060, %1061 : vector<8x32xf32>
    %1063 = vector.extract_strided_slice %1056 {offsets = [0, 32], sizes = [8, 32], strides = [1, 1]} : vector<8x128xf32> to vector<8x32xf32>
    %1064 = arith.negf %1063 : vector<8x32xf32>
    %1065 = math.exp %1064 : vector<8x32xf32>
    %cst_303 = arith.constant 1.000000e+00 : f32
    %1066 = vector.broadcast %cst_303 : f32 to vector<8x32xf32>
    %1067 = arith.addf %1066, %1065 : vector<8x32xf32>
    %1068 = arith.divf %1066, %1067 : vector<8x32xf32>
    %1069 = vector.extract_strided_slice %1056 {offsets = [0, 64], sizes = [8, 32], strides = [1, 1]} : vector<8x128xf32> to vector<8x32xf32>
    %1070 = math.tanh %1069 : vector<8x32xf32>
    %1071 = vector.extract_strided_slice %1056 {offsets = [0, 96], sizes = [8, 32], strides = [1, 1]} : vector<8x128xf32> to vector<8x32xf32>
    %1072 = arith.negf %1071 : vector<8x32xf32>
    %1073 = math.exp %1072 : vector<8x32xf32>
    %cst_304 = arith.constant 1.000000e+00 : f32
    %1074 = vector.broadcast %cst_304 : f32 to vector<8x32xf32>
    %1075 = arith.addf %1074, %1073 : vector<8x32xf32>
    %1076 = arith.divf %1074, %1075 : vector<8x32xf32>
    %1077 = arith.mulf %1068, %894 : vector<8x32xf32>
    %1078 = arith.mulf %1062, %1070 : vector<8x32xf32>
    %1079 = arith.addf %1077, %1078 : vector<8x32xf32>
    %1080 = math.tanh %1079 : vector<8x32xf32>
    %1081 = arith.mulf %1076, %1080 : vector<8x32xf32>
    %1082 = vector.broadcast %c5_i32 : i32 to vector<8x1xi32>
    %1083 = arith.cmpi sgt, %2, %1082 : vector<8x1xi32>
    %cst_305 = arith.constant 0.000000e+00 : f32
    %1084 = vector.shape_cast %1083 : vector<8x1xi1> to vector<8x1xi1>
    %1085 = vector.broadcast %1084 : vector<8x1xi1> to vector<8x32xi1>
    %1086 = vector.broadcast %cst_305 : f32 to vector<8x32xf32>
    %1087 = arith.select %1085, %1081, %1086 : vector<8x32xi1>, vector<8x32xf32>
    %1088 = vector.shape_cast %1083 : vector<8x1xi1> to vector<8x1xi1>
    %1089 = vector.broadcast %1088 : vector<8x1xi1> to vector<8x32xi1>
    %1090 = arith.select %1089, %1081, %891 : vector<8x32xi1>, vector<8x32xf32>
    %1091 = vector.shape_cast %1083 : vector<8x1xi1> to vector<8x1xi1>
    %1092 = vector.broadcast %1091 : vector<8x1xi1> to vector<8x32xi1>
    %1093 = arith.select %1092, %1079, %894 : vector<8x32xi1>, vector<8x32xf32>
    %c1_306 = arith.constant 1 : index
    %1094 = arith.index_cast %c5_i32 : i32 to index
    %c0_307 = arith.constant 0 : index
    %c0_308 = arith.constant 0 : index
    %1095 = vector.load %arg11[%c1_306, %1094, %c0_307, %c0_308] : memref<4x8x8x128xf32, #tpu.memory_space<vmem>>, vector<1x1x8x128xf32>
    %1096 = vector.shape_cast %1095 : vector<1x1x8x128xf32> to vector<8x128xf32>
    %1097 = arith.truncf %936 : vector<8x32xf32> to vector<8x32xbf16>
    %c1_309 = arith.constant 1 : index
    %c0_310 = arith.constant 0 : index
    %c0_311 = arith.constant 0 : index
    %1098 = vector.load %arg4[%c1_309, %c0_310, %c0_311] : memref<4x32x128xbf16, #tpu.memory_space<vmem>>, vector<1x32x128xbf16>
    %1099 = vector.shape_cast %1098 : vector<1x32x128xbf16> to vector<32x128xbf16>
    %cst_312 = arith.constant dense<0.000000e+00> : vector<8x128xf32>
    %1100 = tpu.matmul %1097, %1099, %cst_312 {dimension_numbers = #tpu.dot_dimension_numbers<[1], [0], [0], [1], [0, 0, 1, 1], [], []>} : vector<8x32xbf16>, vector<32x128xbf16>, vector<8x128xf32> -> vector<8x128xf32>
    %1101 = arith.addf %1096, %1100 : vector<8x128xf32>
    %1102 = vector.extract_strided_slice %1101 {offsets = [0, 0], sizes = [8, 32], strides = [1, 1]} : vector<8x128xf32> to vector<8x32xf32>
    %1103 = arith.negf %1102 : vector<8x32xf32>
    %1104 = math.exp %1103 : vector<8x32xf32>
    %cst_313 = arith.constant 1.000000e+00 : f32
    %1105 = vector.broadcast %cst_313 : f32 to vector<8x32xf32>
    %1106 = arith.addf %1105, %1104 : vector<8x32xf32>
    %1107 = arith.divf %1105, %1106 : vector<8x32xf32>
    %1108 = vector.extract_strided_slice %1101 {offsets = [0, 32], sizes = [8, 32], strides = [1, 1]} : vector<8x128xf32> to vector<8x32xf32>
    %1109 = arith.negf %1108 : vector<8x32xf32>
    %1110 = math.exp %1109 : vector<8x32xf32>
    %cst_314 = arith.constant 1.000000e+00 : f32
    %1111 = vector.broadcast %cst_314 : f32 to vector<8x32xf32>
    %1112 = arith.addf %1111, %1110 : vector<8x32xf32>
    %1113 = arith.divf %1111, %1112 : vector<8x32xf32>
    %1114 = vector.extract_strided_slice %1101 {offsets = [0, 64], sizes = [8, 32], strides = [1, 1]} : vector<8x128xf32> to vector<8x32xf32>
    %1115 = math.tanh %1114 : vector<8x32xf32>
    %1116 = vector.extract_strided_slice %1101 {offsets = [0, 96], sizes = [8, 32], strides = [1, 1]} : vector<8x128xf32> to vector<8x32xf32>
    %1117 = arith.negf %1116 : vector<8x32xf32>
    %1118 = math.exp %1117 : vector<8x32xf32>
    %cst_315 = arith.constant 1.000000e+00 : f32
    %1119 = vector.broadcast %cst_315 : f32 to vector<8x32xf32>
    %1120 = arith.addf %1119, %1118 : vector<8x32xf32>
    %1121 = arith.divf %1119, %1120 : vector<8x32xf32>
    %1122 = arith.mulf %1113, %939 : vector<8x32xf32>
    %1123 = arith.mulf %1107, %1115 : vector<8x32xf32>
    %1124 = arith.addf %1122, %1123 : vector<8x32xf32>
    %1125 = math.tanh %1124 : vector<8x32xf32>
    %1126 = arith.mulf %1121, %1125 : vector<8x32xf32>
    %1127 = vector.broadcast %c5_i32 : i32 to vector<8x1xi32>
    %1128 = arith.cmpi sgt, %2, %1127 : vector<8x1xi32>
    %cst_316 = arith.constant 0.000000e+00 : f32
    %1129 = vector.shape_cast %1128 : vector<8x1xi1> to vector<8x1xi1>
    %1130 = vector.broadcast %1129 : vector<8x1xi1> to vector<8x32xi1>
    %1131 = vector.broadcast %cst_316 : f32 to vector<8x32xf32>
    %1132 = arith.select %1130, %1126, %1131 : vector<8x32xi1>, vector<8x32xf32>
    %1133 = vector.shape_cast %1128 : vector<8x1xi1> to vector<8x1xi1>
    %1134 = vector.broadcast %1133 : vector<8x1xi1> to vector<8x32xi1>
    %1135 = arith.select %1134, %1126, %936 : vector<8x32xi1>, vector<8x32xf32>
    %1136 = vector.shape_cast %1128 : vector<8x1xi1> to vector<8x1xi1>
    %1137 = vector.broadcast %1136 : vector<8x1xi1> to vector<8x32xi1>
    %1138 = arith.select %1137, %1124, %939 : vector<8x32xi1>, vector<8x32xf32>
    %c2_317 = arith.constant 2 : index
    %1139 = arith.index_cast %1048 : i32 to index
    %c0_318 = arith.constant 0 : index
    %c0_319 = arith.constant 0 : index
    %1140 = vector.load %arg11[%c2_317, %1139, %c0_318, %c0_319] : memref<4x8x8x128xf32, #tpu.memory_space<vmem>>, vector<1x1x8x128xf32>
    %1141 = vector.shape_cast %1140 : vector<1x1x8x128xf32> to vector<8x128xf32>
    %1142 = arith.truncf %981 : vector<8x32xf32> to vector<8x32xbf16>
    %c2_320 = arith.constant 2 : index
    %c0_321 = arith.constant 0 : index
    %c0_322 = arith.constant 0 : index
    %1143 = vector.load %arg4[%c2_320, %c0_321, %c0_322] : memref<4x32x128xbf16, #tpu.memory_space<vmem>>, vector<1x32x128xbf16>
    %1144 = vector.shape_cast %1143 : vector<1x32x128xbf16> to vector<32x128xbf16>
    %cst_323 = arith.constant dense<0.000000e+00> : vector<8x128xf32>
    %1145 = tpu.matmul %1142, %1144, %cst_323 {dimension_numbers = #tpu.dot_dimension_numbers<[1], [0], [0], [1], [0, 0, 1, 1], [], []>} : vector<8x32xbf16>, vector<32x128xbf16>, vector<8x128xf32> -> vector<8x128xf32>
    %1146 = arith.addf %1141, %1145 : vector<8x128xf32>
    %1147 = vector.extract_strided_slice %1146 {offsets = [0, 0], sizes = [8, 32], strides = [1, 1]} : vector<8x128xf32> to vector<8x32xf32>
    %1148 = arith.negf %1147 : vector<8x32xf32>
    %1149 = math.exp %1148 : vector<8x32xf32>
    %cst_324 = arith.constant 1.000000e+00 : f32
    %1150 = vector.broadcast %cst_324 : f32 to vector<8x32xf32>
    %1151 = arith.addf %1150, %1149 : vector<8x32xf32>
    %1152 = arith.divf %1150, %1151 : vector<8x32xf32>
    %1153 = vector.extract_strided_slice %1146 {offsets = [0, 32], sizes = [8, 32], strides = [1, 1]} : vector<8x128xf32> to vector<8x32xf32>
    %1154 = arith.negf %1153 : vector<8x32xf32>
    %1155 = math.exp %1154 : vector<8x32xf32>
    %cst_325 = arith.constant 1.000000e+00 : f32
    %1156 = vector.broadcast %cst_325 : f32 to vector<8x32xf32>
    %1157 = arith.addf %1156, %1155 : vector<8x32xf32>
    %1158 = arith.divf %1156, %1157 : vector<8x32xf32>
    %1159 = vector.extract_strided_slice %1146 {offsets = [0, 64], sizes = [8, 32], strides = [1, 1]} : vector<8x128xf32> to vector<8x32xf32>
    %1160 = math.tanh %1159 : vector<8x32xf32>
    %1161 = vector.extract_strided_slice %1146 {offsets = [0, 96], sizes = [8, 32], strides = [1, 1]} : vector<8x128xf32> to vector<8x32xf32>
    %1162 = arith.negf %1161 : vector<8x32xf32>
    %1163 = math.exp %1162 : vector<8x32xf32>
    %cst_326 = arith.constant 1.000000e+00 : f32
    %1164 = vector.broadcast %cst_326 : f32 to vector<8x32xf32>
    %1165 = arith.addf %1164, %1163 : vector<8x32xf32>
    %1166 = arith.divf %1164, %1165 : vector<8x32xf32>
    %1167 = arith.mulf %1158, %984 : vector<8x32xf32>
    %1168 = arith.mulf %1152, %1160 : vector<8x32xf32>
    %1169 = arith.addf %1167, %1168 : vector<8x32xf32>
    %1170 = math.tanh %1169 : vector<8x32xf32>
    %1171 = arith.mulf %1166, %1170 : vector<8x32xf32>
    %1172 = vector.broadcast %1048 : i32 to vector<8x1xi32>
    %1173 = arith.cmpi sgt, %2, %1172 : vector<8x1xi32>
    %cst_327 = arith.constant 0.000000e+00 : f32
    %1174 = vector.shape_cast %1173 : vector<8x1xi1> to vector<8x1xi1>
    %1175 = vector.broadcast %1174 : vector<8x1xi1> to vector<8x32xi1>
    %1176 = vector.broadcast %cst_327 : f32 to vector<8x32xf32>
    %1177 = arith.select %1175, %1171, %1176 : vector<8x32xi1>, vector<8x32xf32>
    %1178 = vector.shape_cast %1173 : vector<8x1xi1> to vector<8x1xi1>
    %1179 = vector.broadcast %1178 : vector<8x1xi1> to vector<8x32xi1>
    %1180 = arith.select %1179, %1171, %981 : vector<8x32xi1>, vector<8x32xf32>
    %1181 = vector.shape_cast %1173 : vector<8x1xi1> to vector<8x1xi1>
    %1182 = vector.broadcast %1181 : vector<8x1xi1> to vector<8x32xi1>
    %1183 = arith.select %1182, %1169, %984 : vector<8x32xi1>, vector<8x32xf32>
    %c3_328 = arith.constant 3 : index
    %1184 = arith.index_cast %1048 : i32 to index
    %c0_329 = arith.constant 0 : index
    %c0_330 = arith.constant 0 : index
    %1185 = vector.load %arg11[%c3_328, %1184, %c0_329, %c0_330] : memref<4x8x8x128xf32, #tpu.memory_space<vmem>>, vector<1x1x8x128xf32>
    %1186 = vector.shape_cast %1185 : vector<1x1x8x128xf32> to vector<8x128xf32>
    %1187 = arith.truncf %1026 : vector<8x32xf32> to vector<8x32xbf16>
    %c3_331 = arith.constant 3 : index
    %c0_332 = arith.constant 0 : index
    %c0_333 = arith.constant 0 : index
    %1188 = vector.load %arg4[%c3_331, %c0_332, %c0_333] : memref<4x32x128xbf16, #tpu.memory_space<vmem>>, vector<1x32x128xbf16>
    %1189 = vector.shape_cast %1188 : vector<1x32x128xbf16> to vector<32x128xbf16>
    %cst_334 = arith.constant dense<0.000000e+00> : vector<8x128xf32>
    %1190 = tpu.matmul %1187, %1189, %cst_334 {dimension_numbers = #tpu.dot_dimension_numbers<[1], [0], [0], [1], [0, 0, 1, 1], [], []>} : vector<8x32xbf16>, vector<32x128xbf16>, vector<8x128xf32> -> vector<8x128xf32>
    %1191 = arith.addf %1186, %1190 : vector<8x128xf32>
    %1192 = vector.extract_strided_slice %1191 {offsets = [0, 0], sizes = [8, 32], strides = [1, 1]} : vector<8x128xf32> to vector<8x32xf32>
    %1193 = arith.negf %1192 : vector<8x32xf32>
    %1194 = math.exp %1193 : vector<8x32xf32>
    %cst_335 = arith.constant 1.000000e+00 : f32
    %1195 = vector.broadcast %cst_335 : f32 to vector<8x32xf32>
    %1196 = arith.addf %1195, %1194 : vector<8x32xf32>
    %1197 = arith.divf %1195, %1196 : vector<8x32xf32>
    %1198 = vector.extract_strided_slice %1191 {offsets = [0, 32], sizes = [8, 32], strides = [1, 1]} : vector<8x128xf32> to vector<8x32xf32>
    %1199 = arith.negf %1198 : vector<8x32xf32>
    %1200 = math.exp %1199 : vector<8x32xf32>
    %cst_336 = arith.constant 1.000000e+00 : f32
    %1201 = vector.broadcast %cst_336 : f32 to vector<8x32xf32>
    %1202 = arith.addf %1201, %1200 : vector<8x32xf32>
    %1203 = arith.divf %1201, %1202 : vector<8x32xf32>
    %1204 = vector.extract_strided_slice %1191 {offsets = [0, 64], sizes = [8, 32], strides = [1, 1]} : vector<8x128xf32> to vector<8x32xf32>
    %1205 = math.tanh %1204 : vector<8x32xf32>
    %1206 = vector.extract_strided_slice %1191 {offsets = [0, 96], sizes = [8, 32], strides = [1, 1]} : vector<8x128xf32> to vector<8x32xf32>
    %1207 = arith.negf %1206 : vector<8x32xf32>
    %1208 = math.exp %1207 : vector<8x32xf32>
    %cst_337 = arith.constant 1.000000e+00 : f32
    %1209 = vector.broadcast %cst_337 : f32 to vector<8x32xf32>
    %1210 = arith.addf %1209, %1208 : vector<8x32xf32>
    %1211 = arith.divf %1209, %1210 : vector<8x32xf32>
    %1212 = arith.mulf %1203, %1029 : vector<8x32xf32>
    %1213 = arith.mulf %1197, %1205 : vector<8x32xf32>
    %1214 = arith.addf %1212, %1213 : vector<8x32xf32>
    %1215 = math.tanh %1214 : vector<8x32xf32>
    %1216 = arith.mulf %1211, %1215 : vector<8x32xf32>
    %1217 = vector.broadcast %1048 : i32 to vector<8x1xi32>
    %1218 = arith.cmpi sgt, %2, %1217 : vector<8x1xi32>
    %cst_338 = arith.constant 0.000000e+00 : f32
    %1219 = vector.shape_cast %1218 : vector<8x1xi1> to vector<8x1xi1>
    %1220 = vector.broadcast %1219 : vector<8x1xi1> to vector<8x32xi1>
    %1221 = vector.broadcast %cst_338 : f32 to vector<8x32xf32>
    %1222 = arith.select %1220, %1216, %1221 : vector<8x32xi1>, vector<8x32xf32>
    %1223 = vector.shape_cast %1218 : vector<8x1xi1> to vector<8x1xi1>
    %1224 = vector.broadcast %1223 : vector<8x1xi1> to vector<8x32xi1>
    %1225 = arith.select %1224, %1216, %1026 : vector<8x32xi1>, vector<8x32xf32>
    %1226 = vector.shape_cast %1218 : vector<8x1xi1> to vector<8x1xi1>
    %1227 = vector.broadcast %1226 : vector<8x1xi1> to vector<8x32xi1>
    %1228 = arith.select %1227, %1214, %1029 : vector<8x32xi1>, vector<8x32xf32>
    %1229 = vector.broadcast %0 : f32 to vector<8x32xf32>
    %1230 = arith.mulf %1087, %1229 : vector<8x32xf32>
    %1231 = vector.broadcast %1 : f32 to vector<8x32xf32>
    %1232 = arith.mulf %1132, %1231 : vector<8x32xf32>
    %1233 = arith.addf %1230, %1232 : vector<8x32xf32>
    %1234 = arith.index_cast %c5_i32 : i32 to index
    %c0_339 = arith.constant 0 : index
    %c0_340 = arith.constant 0 : index
    %1235 = vector.load %arg9[%1234, %c0_339, %c0_340] : memref<8x8x64xf32, #tpu.memory_space<vmem>>, vector<1x8x32xf32>
    %1236 = vector.shape_cast %1235 : vector<1x8x32xf32> to vector<8x32xf32>
    %1237 = vector.shape_cast %1233 : vector<8x32xf32> to vector<1x8x32xf32>
    tpu.vector_store %arg9[%1234, %c0_339, %c0_340], %1237 {strides = array<i32>} : memref<8x8x64xf32, #tpu.memory_space<vmem>>, vector<1x8x32xf32>,
    %1238 = vector.broadcast %0 : f32 to vector<8x32xf32>
    %1239 = arith.mulf %1177, %1238 : vector<8x32xf32>
    %1240 = vector.broadcast %1 : f32 to vector<8x32xf32>
    %1241 = arith.mulf %1222, %1240 : vector<8x32xf32>
    %1242 = arith.addf %1239, %1241 : vector<8x32xf32>
    %1243 = arith.index_cast %1048 : i32 to index
    %c0_341 = arith.constant 0 : index
    %c32_342 = arith.constant 32 : index
    %1244 = vector.load %arg9[%1243, %c0_341, %c32_342] : memref<8x8x64xf32, #tpu.memory_space<vmem>>, vector<1x8x32xf32>
    %1245 = vector.shape_cast %1244 : vector<1x8x32xf32> to vector<8x32xf32>
    %1246 = vector.shape_cast %1242 : vector<8x32xf32> to vector<1x8x32xf32>
    tpu.vector_store %arg9[%1243, %c0_341, %c32_342], %1246 {strides = array<i32>} : memref<8x8x64xf32, #tpu.memory_space<vmem>>, vector<1x8x32xf32>,
    %c6_i32 = arith.constant 6 : i32
    %c7_i32_343 = arith.constant 7 : i32
    %1247 = arith.subi %c7_i32_343, %c6_i32 : i32
    %c0_344 = arith.constant 0 : index
    %1248 = arith.index_cast %c6_i32 : i32 to index
    %c0_345 = arith.constant 0 : index
    %c0_346 = arith.constant 0 : index
    %1249 = vector.load %arg11[%c0_344, %1248, %c0_345, %c0_346] : memref<4x8x8x128xf32, #tpu.memory_space<vmem>>, vector<1x1x8x128xf32>
    %1250 = vector.shape_cast %1249 : vector<1x1x8x128xf32> to vector<8x128xf32>
    %1251 = arith.truncf %1090 : vector<8x32xf32> to vector<8x32xbf16>
    %c0_347 = arith.constant 0 : index
    %c0_348 = arith.constant 0 : index
    %c0_349 = arith.constant 0 : index
    %1252 = vector.load %arg4[%c0_347, %c0_348, %c0_349] : memref<4x32x128xbf16, #tpu.memory_space<vmem>>, vector<1x32x128xbf16>
    %1253 = vector.shape_cast %1252 : vector<1x32x128xbf16> to vector<32x128xbf16>
    %cst_350 = arith.constant dense<0.000000e+00> : vector<8x128xf32>
    %1254 = tpu.matmul %1251, %1253, %cst_350 {dimension_numbers = #tpu.dot_dimension_numbers<[1], [0], [0], [1], [0, 0, 1, 1], [], []>} : vector<8x32xbf16>, vector<32x128xbf16>, vector<8x128xf32> -> vector<8x128xf32>
    %1255 = arith.addf %1250, %1254 : vector<8x128xf32>
    %1256 = vector.extract_strided_slice %1255 {offsets = [0, 0], sizes = [8, 32], strides = [1, 1]} : vector<8x128xf32> to vector<8x32xf32>
    %1257 = arith.negf %1256 : vector<8x32xf32>
    %1258 = math.exp %1257 : vector<8x32xf32>
    %cst_351 = arith.constant 1.000000e+00 : f32
    %1259 = vector.broadcast %cst_351 : f32 to vector<8x32xf32>
    %1260 = arith.addf %1259, %1258 : vector<8x32xf32>
    %1261 = arith.divf %1259, %1260 : vector<8x32xf32>
    %1262 = vector.extract_strided_slice %1255 {offsets = [0, 32], sizes = [8, 32], strides = [1, 1]} : vector<8x128xf32> to vector<8x32xf32>
    %1263 = arith.negf %1262 : vector<8x32xf32>
    %1264 = math.exp %1263 : vector<8x32xf32>
    %cst_352 = arith.constant 1.000000e+00 : f32
    %1265 = vector.broadcast %cst_352 : f32 to vector<8x32xf32>
    %1266 = arith.addf %1265, %1264 : vector<8x32xf32>
    %1267 = arith.divf %1265, %1266 : vector<8x32xf32>
    %1268 = vector.extract_strided_slice %1255 {offsets = [0, 64], sizes = [8, 32], strides = [1, 1]} : vector<8x128xf32> to vector<8x32xf32>
    %1269 = math.tanh %1268 : vector<8x32xf32>
    %1270 = vector.extract_strided_slice %1255 {offsets = [0, 96], sizes = [8, 32], strides = [1, 1]} : vector<8x128xf32> to vector<8x32xf32>
    %1271 = arith.negf %1270 : vector<8x32xf32>
    %1272 = math.exp %1271 : vector<8x32xf32>
    %cst_353 = arith.constant 1.000000e+00 : f32
    %1273 = vector.broadcast %cst_353 : f32 to vector<8x32xf32>
    %1274 = arith.addf %1273, %1272 : vector<8x32xf32>
    %1275 = arith.divf %1273, %1274 : vector<8x32xf32>
    %1276 = arith.mulf %1267, %1093 : vector<8x32xf32>
    %1277 = arith.mulf %1261, %1269 : vector<8x32xf32>
    %1278 = arith.addf %1276, %1277 : vector<8x32xf32>
    %1279 = math.tanh %1278 : vector<8x32xf32>
    %1280 = arith.mulf %1275, %1279 : vector<8x32xf32>
    %1281 = vector.broadcast %c6_i32 : i32 to vector<8x1xi32>
    %1282 = arith.cmpi sgt, %2, %1281 : vector<8x1xi32>
    %cst_354 = arith.constant 0.000000e+00 : f32
    %1283 = vector.shape_cast %1282 : vector<8x1xi1> to vector<8x1xi1>
    %1284 = vector.broadcast %1283 : vector<8x1xi1> to vector<8x32xi1>
    %1285 = vector.broadcast %cst_354 : f32 to vector<8x32xf32>
    %1286 = arith.select %1284, %1280, %1285 : vector<8x32xi1>, vector<8x32xf32>
    %1287 = vector.shape_cast %1282 : vector<8x1xi1> to vector<8x1xi1>
    %1288 = vector.broadcast %1287 : vector<8x1xi1> to vector<8x32xi1>
    %1289 = arith.select %1288, %1280, %1090 : vector<8x32xi1>, vector<8x32xf32>
    %1290 = vector.shape_cast %1282 : vector<8x1xi1> to vector<8x1xi1>
    %1291 = vector.broadcast %1290 : vector<8x1xi1> to vector<8x32xi1>
    %1292 = arith.select %1291, %1278, %1093 : vector<8x32xi1>, vector<8x32xf32>
    %c1_355 = arith.constant 1 : index
    %1293 = arith.index_cast %c6_i32 : i32 to index
    %c0_356 = arith.constant 0 : index
    %c0_357 = arith.constant 0 : index
    %1294 = vector.load %arg11[%c1_355, %1293, %c0_356, %c0_357] : memref<4x8x8x128xf32, #tpu.memory_space<vmem>>, vector<1x1x8x128xf32>
    %1295 = vector.shape_cast %1294 : vector<1x1x8x128xf32> to vector<8x128xf32>
    %1296 = arith.truncf %1135 : vector<8x32xf32> to vector<8x32xbf16>
    %c1_358 = arith.constant 1 : index
    %c0_359 = arith.constant 0 : index
    %c0_360 = arith.constant 0 : index
    %1297 = vector.load %arg4[%c1_358, %c0_359, %c0_360] : memref<4x32x128xbf16, #tpu.memory_space<vmem>>, vector<1x32x128xbf16>
    %1298 = vector.shape_cast %1297 : vector<1x32x128xbf16> to vector<32x128xbf16>
    %cst_361 = arith.constant dense<0.000000e+00> : vector<8x128xf32>
    %1299 = tpu.matmul %1296, %1298, %cst_361 {dimension_numbers = #tpu.dot_dimension_numbers<[1], [0], [0], [1], [0, 0, 1, 1], [], []>} : vector<8x32xbf16>, vector<32x128xbf16>, vector<8x128xf32> -> vector<8x128xf32>
    %1300 = arith.addf %1295, %1299 : vector<8x128xf32>
    %1301 = vector.extract_strided_slice %1300 {offsets = [0, 0], sizes = [8, 32], strides = [1, 1]} : vector<8x128xf32> to vector<8x32xf32>
    %1302 = arith.negf %1301 : vector<8x32xf32>
    %1303 = math.exp %1302 : vector<8x32xf32>
    %cst_362 = arith.constant 1.000000e+00 : f32
    %1304 = vector.broadcast %cst_362 : f32 to vector<8x32xf32>
    %1305 = arith.addf %1304, %1303 : vector<8x32xf32>
    %1306 = arith.divf %1304, %1305 : vector<8x32xf32>
    %1307 = vector.extract_strided_slice %1300 {offsets = [0, 32], sizes = [8, 32], strides = [1, 1]} : vector<8x128xf32> to vector<8x32xf32>
    %1308 = arith.negf %1307 : vector<8x32xf32>
    %1309 = math.exp %1308 : vector<8x32xf32>
    %cst_363 = arith.constant 1.000000e+00 : f32
    %1310 = vector.broadcast %cst_363 : f32 to vector<8x32xf32>
    %1311 = arith.addf %1310, %1309 : vector<8x32xf32>
    %1312 = arith.divf %1310, %1311 : vector<8x32xf32>
    %1313 = vector.extract_strided_slice %1300 {offsets = [0, 64], sizes = [8, 32], strides = [1, 1]} : vector<8x128xf32> to vector<8x32xf32>
    %1314 = math.tanh %1313 : vector<8x32xf32>
    %1315 = vector.extract_strided_slice %1300 {offsets = [0, 96], sizes = [8, 32], strides = [1, 1]} : vector<8x128xf32> to vector<8x32xf32>
    %1316 = arith.negf %1315 : vector<8x32xf32>
    %1317 = math.exp %1316 : vector<8x32xf32>
    %cst_364 = arith.constant 1.000000e+00 : f32
    %1318 = vector.broadcast %cst_364 : f32 to vector<8x32xf32>
    %1319 = arith.addf %1318, %1317 : vector<8x32xf32>
    %1320 = arith.divf %1318, %1319 : vector<8x32xf32>
    %1321 = arith.mulf %1312, %1138 : vector<8x32xf32>
    %1322 = arith.mulf %1306, %1314 : vector<8x32xf32>
    %1323 = arith.addf %1321, %1322 : vector<8x32xf32>
    %1324 = math.tanh %1323 : vector<8x32xf32>
    %1325 = arith.mulf %1320, %1324 : vector<8x32xf32>
    %1326 = vector.broadcast %c6_i32 : i32 to vector<8x1xi32>
    %1327 = arith.cmpi sgt, %2, %1326 : vector<8x1xi32>
    %cst_365 = arith.constant 0.000000e+00 : f32
    %1328 = vector.shape_cast %1327 : vector<8x1xi1> to vector<8x1xi1>
    %1329 = vector.broadcast %1328 : vector<8x1xi1> to vector<8x32xi1>
    %1330 = vector.broadcast %cst_365 : f32 to vector<8x32xf32>
    %1331 = arith.select %1329, %1325, %1330 : vector<8x32xi1>, vector<8x32xf32>
    %1332 = vector.shape_cast %1327 : vector<8x1xi1> to vector<8x1xi1>
    %1333 = vector.broadcast %1332 : vector<8x1xi1> to vector<8x32xi1>
    %1334 = arith.select %1333, %1325, %1135 : vector<8x32xi1>, vector<8x32xf32>
    %1335 = vector.shape_cast %1327 : vector<8x1xi1> to vector<8x1xi1>
    %1336 = vector.broadcast %1335 : vector<8x1xi1> to vector<8x32xi1>
    %1337 = arith.select %1336, %1323, %1138 : vector<8x32xi1>, vector<8x32xf32>
    %c2_366 = arith.constant 2 : index
    %1338 = arith.index_cast %1247 : i32 to index
    %c0_367 = arith.constant 0 : index
    %c0_368 = arith.constant 0 : index
    %1339 = vector.load %arg11[%c2_366, %1338, %c0_367, %c0_368] : memref<4x8x8x128xf32, #tpu.memory_space<vmem>>, vector<1x1x8x128xf32>
    %1340 = vector.shape_cast %1339 : vector<1x1x8x128xf32> to vector<8x128xf32>
    %1341 = arith.truncf %1180 : vector<8x32xf32> to vector<8x32xbf16>
    %c2_369 = arith.constant 2 : index
    %c0_370 = arith.constant 0 : index
    %c0_371 = arith.constant 0 : index
    %1342 = vector.load %arg4[%c2_369, %c0_370, %c0_371] : memref<4x32x128xbf16, #tpu.memory_space<vmem>>, vector<1x32x128xbf16>
    %1343 = vector.shape_cast %1342 : vector<1x32x128xbf16> to vector<32x128xbf16>
    %cst_372 = arith.constant dense<0.000000e+00> : vector<8x128xf32>
    %1344 = tpu.matmul %1341, %1343, %cst_372 {dimension_numbers = #tpu.dot_dimension_numbers<[1], [0], [0], [1], [0, 0, 1, 1], [], []>} : vector<8x32xbf16>, vector<32x128xbf16>, vector<8x128xf32> -> vector<8x128xf32>
    %1345 = arith.addf %1340, %1344 : vector<8x128xf32>
    %1346 = vector.extract_strided_slice %1345 {offsets = [0, 0], sizes = [8, 32], strides = [1, 1]} : vector<8x128xf32> to vector<8x32xf32>
    %1347 = arith.negf %1346 : vector<8x32xf32>
    %1348 = math.exp %1347 : vector<8x32xf32>
    %cst_373 = arith.constant 1.000000e+00 : f32
    %1349 = vector.broadcast %cst_373 : f32 to vector<8x32xf32>
    %1350 = arith.addf %1349, %1348 : vector<8x32xf32>
    %1351 = arith.divf %1349, %1350 : vector<8x32xf32>
    %1352 = vector.extract_strided_slice %1345 {offsets = [0, 32], sizes = [8, 32], strides = [1, 1]} : vector<8x128xf32> to vector<8x32xf32>
    %1353 = arith.negf %1352 : vector<8x32xf32>
    %1354 = math.exp %1353 : vector<8x32xf32>
    %cst_374 = arith.constant 1.000000e+00 : f32
    %1355 = vector.broadcast %cst_374 : f32 to vector<8x32xf32>
    %1356 = arith.addf %1355, %1354 : vector<8x32xf32>
    %1357 = arith.divf %1355, %1356 : vector<8x32xf32>
    %1358 = vector.extract_strided_slice %1345 {offsets = [0, 64], sizes = [8, 32], strides = [1, 1]} : vector<8x128xf32> to vector<8x32xf32>
    %1359 = math.tanh %1358 : vector<8x32xf32>
    %1360 = vector.extract_strided_slice %1345 {offsets = [0, 96], sizes = [8, 32], strides = [1, 1]} : vector<8x128xf32> to vector<8x32xf32>
    %1361 = arith.negf %1360 : vector<8x32xf32>
    %1362 = math.exp %1361 : vector<8x32xf32>
    %cst_375 = arith.constant 1.000000e+00 : f32
    %1363 = vector.broadcast %cst_375 : f32 to vector<8x32xf32>
    %1364 = arith.addf %1363, %1362 : vector<8x32xf32>
    %1365 = arith.divf %1363, %1364 : vector<8x32xf32>
    %1366 = arith.mulf %1357, %1183 : vector<8x32xf32>
    %1367 = arith.mulf %1351, %1359 : vector<8x32xf32>
    %1368 = arith.addf %1366, %1367 : vector<8x32xf32>
    %1369 = math.tanh %1368 : vector<8x32xf32>
    %1370 = arith.mulf %1365, %1369 : vector<8x32xf32>
    %1371 = vector.broadcast %1247 : i32 to vector<8x1xi32>
    %1372 = arith.cmpi sgt, %2, %1371 : vector<8x1xi32>
    %cst_376 = arith.constant 0.000000e+00 : f32
    %1373 = vector.shape_cast %1372 : vector<8x1xi1> to vector<8x1xi1>
    %1374 = vector.broadcast %1373 : vector<8x1xi1> to vector<8x32xi1>
    %1375 = vector.broadcast %cst_376 : f32 to vector<8x32xf32>
    %1376 = arith.select %1374, %1370, %1375 : vector<8x32xi1>, vector<8x32xf32>
    %1377 = vector.shape_cast %1372 : vector<8x1xi1> to vector<8x1xi1>
    %1378 = vector.broadcast %1377 : vector<8x1xi1> to vector<8x32xi1>
    %1379 = arith.select %1378, %1370, %1180 : vector<8x32xi1>, vector<8x32xf32>
    %1380 = vector.shape_cast %1372 : vector<8x1xi1> to vector<8x1xi1>
    %1381 = vector.broadcast %1380 : vector<8x1xi1> to vector<8x32xi1>
    %1382 = arith.select %1381, %1368, %1183 : vector<8x32xi1>, vector<8x32xf32>
    %c3_377 = arith.constant 3 : index
    %1383 = arith.index_cast %1247 : i32 to index
    %c0_378 = arith.constant 0 : index
    %c0_379 = arith.constant 0 : index
    %1384 = vector.load %arg11[%c3_377, %1383, %c0_378, %c0_379] : memref<4x8x8x128xf32, #tpu.memory_space<vmem>>, vector<1x1x8x128xf32>
    %1385 = vector.shape_cast %1384 : vector<1x1x8x128xf32> to vector<8x128xf32>
    %1386 = arith.truncf %1225 : vector<8x32xf32> to vector<8x32xbf16>
    %c3_380 = arith.constant 3 : index
    %c0_381 = arith.constant 0 : index
    %c0_382 = arith.constant 0 : index
    %1387 = vector.load %arg4[%c3_380, %c0_381, %c0_382] : memref<4x32x128xbf16, #tpu.memory_space<vmem>>, vector<1x32x128xbf16>
    %1388 = vector.shape_cast %1387 : vector<1x32x128xbf16> to vector<32x128xbf16>
    %cst_383 = arith.constant dense<0.000000e+00> : vector<8x128xf32>
    %1389 = tpu.matmul %1386, %1388, %cst_383 {dimension_numbers = #tpu.dot_dimension_numbers<[1], [0], [0], [1], [0, 0, 1, 1], [], []>} : vector<8x32xbf16>, vector<32x128xbf16>, vector<8x128xf32> -> vector<8x128xf32>
    %1390 = arith.addf %1385, %1389 : vector<8x128xf32>
    %1391 = vector.extract_strided_slice %1390 {offsets = [0, 0], sizes = [8, 32], strides = [1, 1]} : vector<8x128xf32> to vector<8x32xf32>
    %1392 = arith.negf %1391 : vector<8x32xf32>
    %1393 = math.exp %1392 : vector<8x32xf32>
    %cst_384 = arith.constant 1.000000e+00 : f32
    %1394 = vector.broadcast %cst_384 : f32 to vector<8x32xf32>
    %1395 = arith.addf %1394, %1393 : vector<8x32xf32>
    %1396 = arith.divf %1394, %1395 : vector<8x32xf32>
    %1397 = vector.extract_strided_slice %1390 {offsets = [0, 32], sizes = [8, 32], strides = [1, 1]} : vector<8x128xf32> to vector<8x32xf32>
    %1398 = arith.negf %1397 : vector<8x32xf32>
    %1399 = math.exp %1398 : vector<8x32xf32>
    %cst_385 = arith.constant 1.000000e+00 : f32
    %1400 = vector.broadcast %cst_385 : f32 to vector<8x32xf32>
    %1401 = arith.addf %1400, %1399 : vector<8x32xf32>
    %1402 = arith.divf %1400, %1401 : vector<8x32xf32>
    %1403 = vector.extract_strided_slice %1390 {offsets = [0, 64], sizes = [8, 32], strides = [1, 1]} : vector<8x128xf32> to vector<8x32xf32>
    %1404 = math.tanh %1403 : vector<8x32xf32>
    %1405 = vector.extract_strided_slice %1390 {offsets = [0, 96], sizes = [8, 32], strides = [1, 1]} : vector<8x128xf32> to vector<8x32xf32>
    %1406 = arith.negf %1405 : vector<8x32xf32>
    %1407 = math.exp %1406 : vector<8x32xf32>
    %cst_386 = arith.constant 1.000000e+00 : f32
    %1408 = vector.broadcast %cst_386 : f32 to vector<8x32xf32>
    %1409 = arith.addf %1408, %1407 : vector<8x32xf32>
    %1410 = arith.divf %1408, %1409 : vector<8x32xf32>
    %1411 = arith.mulf %1402, %1228 : vector<8x32xf32>
    %1412 = arith.mulf %1396, %1404 : vector<8x32xf32>
    %1413 = arith.addf %1411, %1412 : vector<8x32xf32>
    %1414 = math.tanh %1413 : vector<8x32xf32>
    %1415 = arith.mulf %1410, %1414 : vector<8x32xf32>
    %1416 = vector.broadcast %1247 : i32 to vector<8x1xi32>
    %1417 = arith.cmpi sgt, %2, %1416 : vector<8x1xi32>
    %cst_387 = arith.constant 0.000000e+00 : f32
    %1418 = vector.shape_cast %1417 : vector<8x1xi1> to vector<8x1xi1>
    %1419 = vector.broadcast %1418 : vector<8x1xi1> to vector<8x32xi1>
    %1420 = vector.broadcast %cst_387 : f32 to vector<8x32xf32>
    %1421 = arith.select %1419, %1415, %1420 : vector<8x32xi1>, vector<8x32xf32>
    %1422 = vector.shape_cast %1417 : vector<8x1xi1> to vector<8x1xi1>
    %1423 = vector.broadcast %1422 : vector<8x1xi1> to vector<8x32xi1>
    %1424 = arith.select %1423, %1415, %1225 : vector<8x32xi1>, vector<8x32xf32>
    %1425 = vector.shape_cast %1417 : vector<8x1xi1> to vector<8x1xi1>
    %1426 = vector.broadcast %1425 : vector<8x1xi1> to vector<8x32xi1>
    %1427 = arith.select %1426, %1413, %1228 : vector<8x32xi1>, vector<8x32xf32>
    %1428 = vector.broadcast %0 : f32 to vector<8x32xf32>
    %1429 = arith.mulf %1286, %1428 : vector<8x32xf32>
    %1430 = vector.broadcast %1 : f32 to vector<8x32xf32>
    %1431 = arith.mulf %1331, %1430 : vector<8x32xf32>
    %1432 = arith.addf %1429, %1431 : vector<8x32xf32>
    %1433 = arith.index_cast %c6_i32 : i32 to index
    %c0_388 = arith.constant 0 : index
    %c0_389 = arith.constant 0 : index
    %1434 = vector.load %arg9[%1433, %c0_388, %c0_389] : memref<8x8x64xf32, #tpu.memory_space<vmem>>, vector<1x8x32xf32>
    %1435 = vector.shape_cast %1434 : vector<1x8x32xf32> to vector<8x32xf32>
    %1436 = vector.shape_cast %1432 : vector<8x32xf32> to vector<1x8x32xf32>
    tpu.vector_store %arg9[%1433, %c0_388, %c0_389], %1436 {strides = array<i32>} : memref<8x8x64xf32, #tpu.memory_space<vmem>>, vector<1x8x32xf32>,
    %1437 = vector.broadcast %0 : f32 to vector<8x32xf32>
    %1438 = arith.mulf %1376, %1437 : vector<8x32xf32>
    %1439 = vector.broadcast %1 : f32 to vector<8x32xf32>
    %1440 = arith.mulf %1421, %1439 : vector<8x32xf32>
    %1441 = arith.addf %1438, %1440 : vector<8x32xf32>
    %1442 = arith.index_cast %1247 : i32 to index
    %c0_390 = arith.constant 0 : index
    %c32_391 = arith.constant 32 : index
    %1443 = vector.load %arg9[%1442, %c0_390, %c32_391] : memref<8x8x64xf32, #tpu.memory_space<vmem>>, vector<1x8x32xf32>
    %1444 = vector.shape_cast %1443 : vector<1x8x32xf32> to vector<8x32xf32>
    %1445 = vector.shape_cast %1441 : vector<8x32xf32> to vector<1x8x32xf32>
    tpu.vector_store %arg9[%1442, %c0_390, %c32_391], %1445 {strides = array<i32>} : memref<8x8x64xf32, #tpu.memory_space<vmem>>, vector<1x8x32xf32>,
    %c7_i32_392 = arith.constant 7 : i32
    %c7_i32_393 = arith.constant 7 : i32
    %1446 = arith.subi %c7_i32_393, %c7_i32_392 : i32
    %c0_394 = arith.constant 0 : index
    %1447 = arith.index_cast %c7_i32_392 : i32 to index
    %c0_395 = arith.constant 0 : index
    %c0_396 = arith.constant 0 : index
    %1448 = vector.load %arg11[%c0_394, %1447, %c0_395, %c0_396] : memref<4x8x8x128xf32, #tpu.memory_space<vmem>>, vector<1x1x8x128xf32>
    %1449 = vector.shape_cast %1448 : vector<1x1x8x128xf32> to vector<8x128xf32>
    %1450 = arith.truncf %1289 : vector<8x32xf32> to vector<8x32xbf16>
    %c0_397 = arith.constant 0 : index
    %c0_398 = arith.constant 0 : index
    %c0_399 = arith.constant 0 : index
    %1451 = vector.load %arg4[%c0_397, %c0_398, %c0_399] : memref<4x32x128xbf16, #tpu.memory_space<vmem>>, vector<1x32x128xbf16>
    %1452 = vector.shape_cast %1451 : vector<1x32x128xbf16> to vector<32x128xbf16>
    %cst_400 = arith.constant dense<0.000000e+00> : vector<8x128xf32>
    %1453 = tpu.matmul %1450, %1452, %cst_400 {dimension_numbers = #tpu.dot_dimension_numbers<[1], [0], [0], [1], [0, 0, 1, 1], [], []>} : vector<8x32xbf16>, vector<32x128xbf16>, vector<8x128xf32> -> vector<8x128xf32>
    %1454 = arith.addf %1449, %1453 : vector<8x128xf32>
    %1455 = vector.extract_strided_slice %1454 {offsets = [0, 0], sizes = [8, 32], strides = [1, 1]} : vector<8x128xf32> to vector<8x32xf32>
    %1456 = arith.negf %1455 : vector<8x32xf32>
    %1457 = math.exp %1456 : vector<8x32xf32>
    %cst_401 = arith.constant 1.000000e+00 : f32
    %1458 = vector.broadcast %cst_401 : f32 to vector<8x32xf32>
    %1459 = arith.addf %1458, %1457 : vector<8x32xf32>
    %1460 = arith.divf %1458, %1459 : vector<8x32xf32>
    %1461 = vector.extract_strided_slice %1454 {offsets = [0, 32], sizes = [8, 32], strides = [1, 1]} : vector<8x128xf32> to vector<8x32xf32>
    %1462 = arith.negf %1461 : vector<8x32xf32>
    %1463 = math.exp %1462 : vector<8x32xf32>
    %cst_402 = arith.constant 1.000000e+00 : f32
    %1464 = vector.broadcast %cst_402 : f32 to vector<8x32xf32>
    %1465 = arith.addf %1464, %1463 : vector<8x32xf32>
    %1466 = arith.divf %1464, %1465 : vector<8x32xf32>
    %1467 = vector.extract_strided_slice %1454 {offsets = [0, 64], sizes = [8, 32], strides = [1, 1]} : vector<8x128xf32> to vector<8x32xf32>
    %1468 = math.tanh %1467 : vector<8x32xf32>
    %1469 = vector.extract_strided_slice %1454 {offsets = [0, 96], sizes = [8, 32], strides = [1, 1]} : vector<8x128xf32> to vector<8x32xf32>
    %1470 = arith.negf %1469 : vector<8x32xf32>
    %1471 = math.exp %1470 : vector<8x32xf32>
    %cst_403 = arith.constant 1.000000e+00 : f32
    %1472 = vector.broadcast %cst_403 : f32 to vector<8x32xf32>
    %1473 = arith.addf %1472, %1471 : vector<8x32xf32>
    %1474 = arith.divf %1472, %1473 : vector<8x32xf32>
    %1475 = arith.mulf %1466, %1292 : vector<8x32xf32>
    %1476 = arith.mulf %1460, %1468 : vector<8x32xf32>
    %1477 = arith.addf %1475, %1476 : vector<8x32xf32>
    %1478 = math.tanh %1477 : vector<8x32xf32>
    %1479 = arith.mulf %1474, %1478 : vector<8x32xf32>
    %1480 = vector.broadcast %c7_i32_392 : i32 to vector<8x1xi32>
    %1481 = arith.cmpi sgt, %2, %1480 : vector<8x1xi32>
    %cst_404 = arith.constant 0.000000e+00 : f32
    %1482 = vector.shape_cast %1481 : vector<8x1xi1> to vector<8x1xi1>
    %1483 = vector.broadcast %1482 : vector<8x1xi1> to vector<8x32xi1>
    %1484 = vector.broadcast %cst_404 : f32 to vector<8x32xf32>
    %1485 = arith.select %1483, %1479, %1484 : vector<8x32xi1>, vector<8x32xf32>
    %1486 = vector.shape_cast %1481 : vector<8x1xi1> to vector<8x1xi1>
    %1487 = vector.broadcast %1486 : vector<8x1xi1> to vector<8x32xi1>
    %1488 = arith.select %1487, %1479, %1289 : vector<8x32xi1>, vector<8x32xf32>
    %1489 = vector.shape_cast %1481 : vector<8x1xi1> to vector<8x1xi1>
    %1490 = vector.broadcast %1489 : vector<8x1xi1> to vector<8x32xi1>
    %1491 = arith.select %1490, %1477, %1292 : vector<8x32xi1>, vector<8x32xf32>
    %c1_405 = arith.constant 1 : index
    %1492 = arith.index_cast %c7_i32_392 : i32 to index
    %c0_406 = arith.constant 0 : index
    %c0_407 = arith.constant 0 : index
    %1493 = vector.load %arg11[%c1_405, %1492, %c0_406, %c0_407] : memref<4x8x8x128xf32, #tpu.memory_space<vmem>>, vector<1x1x8x128xf32>
    %1494 = vector.shape_cast %1493 : vector<1x1x8x128xf32> to vector<8x128xf32>
    %1495 = arith.truncf %1334 : vector<8x32xf32> to vector<8x32xbf16>
    %c1_408 = arith.constant 1 : index
    %c0_409 = arith.constant 0 : index
    %c0_410 = arith.constant 0 : index
    %1496 = vector.load %arg4[%c1_408, %c0_409, %c0_410] : memref<4x32x128xbf16, #tpu.memory_space<vmem>>, vector<1x32x128xbf16>
    %1497 = vector.shape_cast %1496 : vector<1x32x128xbf16> to vector<32x128xbf16>
    %cst_411 = arith.constant dense<0.000000e+00> : vector<8x128xf32>
    %1498 = tpu.matmul %1495, %1497, %cst_411 {dimension_numbers = #tpu.dot_dimension_numbers<[1], [0], [0], [1], [0, 0, 1, 1], [], []>} : vector<8x32xbf16>, vector<32x128xbf16>, vector<8x128xf32> -> vector<8x128xf32>
    %1499 = arith.addf %1494, %1498 : vector<8x128xf32>
    %1500 = vector.extract_strided_slice %1499 {offsets = [0, 0], sizes = [8, 32], strides = [1, 1]} : vector<8x128xf32> to vector<8x32xf32>
    %1501 = arith.negf %1500 : vector<8x32xf32>
    %1502 = math.exp %1501 : vector<8x32xf32>
    %cst_412 = arith.constant 1.000000e+00 : f32
    %1503 = vector.broadcast %cst_412 : f32 to vector<8x32xf32>
    %1504 = arith.addf %1503, %1502 : vector<8x32xf32>
    %1505 = arith.divf %1503, %1504 : vector<8x32xf32>
    %1506 = vector.extract_strided_slice %1499 {offsets = [0, 32], sizes = [8, 32], strides = [1, 1]} : vector<8x128xf32> to vector<8x32xf32>
    %1507 = arith.negf %1506 : vector<8x32xf32>
    %1508 = math.exp %1507 : vector<8x32xf32>
    %cst_413 = arith.constant 1.000000e+00 : f32
    %1509 = vector.broadcast %cst_413 : f32 to vector<8x32xf32>
    %1510 = arith.addf %1509, %1508 : vector<8x32xf32>
    %1511 = arith.divf %1509, %1510 : vector<8x32xf32>
    %1512 = vector.extract_strided_slice %1499 {offsets = [0, 64], sizes = [8, 32], strides = [1, 1]} : vector<8x128xf32> to vector<8x32xf32>
    %1513 = math.tanh %1512 : vector<8x32xf32>
    %1514 = vector.extract_strided_slice %1499 {offsets = [0, 96], sizes = [8, 32], strides = [1, 1]} : vector<8x128xf32> to vector<8x32xf32>
    %1515 = arith.negf %1514 : vector<8x32xf32>
    %1516 = math.exp %1515 : vector<8x32xf32>
    %cst_414 = arith.constant 1.000000e+00 : f32
    %1517 = vector.broadcast %cst_414 : f32 to vector<8x32xf32>
    %1518 = arith.addf %1517, %1516 : vector<8x32xf32>
    %1519 = arith.divf %1517, %1518 : vector<8x32xf32>
    %1520 = arith.mulf %1511, %1337 : vector<8x32xf32>
    %1521 = arith.mulf %1505, %1513 : vector<8x32xf32>
    %1522 = arith.addf %1520, %1521 : vector<8x32xf32>
    %1523 = math.tanh %1522 : vector<8x32xf32>
    %1524 = arith.mulf %1519, %1523 : vector<8x32xf32>
    %1525 = vector.broadcast %c7_i32_392 : i32 to vector<8x1xi32>
    %1526 = arith.cmpi sgt, %2, %1525 : vector<8x1xi32>
    %cst_415 = arith.constant 0.000000e+00 : f32
    %1527 = vector.shape_cast %1526 : vector<8x1xi1> to vector<8x1xi1>
    %1528 = vector.broadcast %1527 : vector<8x1xi1> to vector<8x32xi1>
    %1529 = vector.broadcast %cst_415 : f32 to vector<8x32xf32>
    %1530 = arith.select %1528, %1524, %1529 : vector<8x32xi1>, vector<8x32xf32>
    %1531 = vector.shape_cast %1526 : vector<8x1xi1> to vector<8x1xi1>
    %1532 = vector.broadcast %1531 : vector<8x1xi1> to vector<8x32xi1>
    %1533 = arith.select %1532, %1524, %1334 : vector<8x32xi1>, vector<8x32xf32>
    %1534 = vector.shape_cast %1526 : vector<8x1xi1> to vector<8x1xi1>
    %1535 = vector.broadcast %1534 : vector<8x1xi1> to vector<8x32xi1>
    %1536 = arith.select %1535, %1522, %1337 : vector<8x32xi1>, vector<8x32xf32>
    %c2_416 = arith.constant 2 : index
    %1537 = arith.index_cast %1446 : i32 to index
    %c0_417 = arith.constant 0 : index
    %c0_418 = arith.constant 0 : index
    %1538 = vector.load %arg11[%c2_416, %1537, %c0_417, %c0_418] : memref<4x8x8x128xf32, #tpu.memory_space<vmem>>, vector<1x1x8x128xf32>
    %1539 = vector.shape_cast %1538 : vector<1x1x8x128xf32> to vector<8x128xf32>
    %1540 = arith.truncf %1379 : vector<8x32xf32> to vector<8x32xbf16>
    %c2_419 = arith.constant 2 : index
    %c0_420 = arith.constant 0 : index
    %c0_421 = arith.constant 0 : index
    %1541 = vector.load %arg4[%c2_419, %c0_420, %c0_421] : memref<4x32x128xbf16, #tpu.memory_space<vmem>>, vector<1x32x128xbf16>
    %1542 = vector.shape_cast %1541 : vector<1x32x128xbf16> to vector<32x128xbf16>
    %cst_422 = arith.constant dense<0.000000e+00> : vector<8x128xf32>
    %1543 = tpu.matmul %1540, %1542, %cst_422 {dimension_numbers = #tpu.dot_dimension_numbers<[1], [0], [0], [1], [0, 0, 1, 1], [], []>} : vector<8x32xbf16>, vector<32x128xbf16>, vector<8x128xf32> -> vector<8x128xf32>
    %1544 = arith.addf %1539, %1543 : vector<8x128xf32>
    %1545 = vector.extract_strided_slice %1544 {offsets = [0, 0], sizes = [8, 32], strides = [1, 1]} : vector<8x128xf32> to vector<8x32xf32>
    %1546 = arith.negf %1545 : vector<8x32xf32>
    %1547 = math.exp %1546 : vector<8x32xf32>
    %cst_423 = arith.constant 1.000000e+00 : f32
    %1548 = vector.broadcast %cst_423 : f32 to vector<8x32xf32>
    %1549 = arith.addf %1548, %1547 : vector<8x32xf32>
    %1550 = arith.divf %1548, %1549 : vector<8x32xf32>
    %1551 = vector.extract_strided_slice %1544 {offsets = [0, 32], sizes = [8, 32], strides = [1, 1]} : vector<8x128xf32> to vector<8x32xf32>
    %1552 = arith.negf %1551 : vector<8x32xf32>
    %1553 = math.exp %1552 : vector<8x32xf32>
    %cst_424 = arith.constant 1.000000e+00 : f32
    %1554 = vector.broadcast %cst_424 : f32 to vector<8x32xf32>
    %1555 = arith.addf %1554, %1553 : vector<8x32xf32>
    %1556 = arith.divf %1554, %1555 : vector<8x32xf32>
    %1557 = vector.extract_strided_slice %1544 {offsets = [0, 64], sizes = [8, 32], strides = [1, 1]} : vector<8x128xf32> to vector<8x32xf32>
    %1558 = math.tanh %1557 : vector<8x32xf32>
    %1559 = vector.extract_strided_slice %1544 {offsets = [0, 96], sizes = [8, 32], strides = [1, 1]} : vector<8x128xf32> to vector<8x32xf32>
    %1560 = arith.negf %1559 : vector<8x32xf32>
    %1561 = math.exp %1560 : vector<8x32xf32>
    %cst_425 = arith.constant 1.000000e+00 : f32
    %1562 = vector.broadcast %cst_425 : f32 to vector<8x32xf32>
    %1563 = arith.addf %1562, %1561 : vector<8x32xf32>
    %1564 = arith.divf %1562, %1563 : vector<8x32xf32>
    %1565 = arith.mulf %1556, %1382 : vector<8x32xf32>
    %1566 = arith.mulf %1550, %1558 : vector<8x32xf32>
    %1567 = arith.addf %1565, %1566 : vector<8x32xf32>
    %1568 = math.tanh %1567 : vector<8x32xf32>
    %1569 = arith.mulf %1564, %1568 : vector<8x32xf32>
    %1570 = vector.broadcast %1446 : i32 to vector<8x1xi32>
    %1571 = arith.cmpi sgt, %2, %1570 : vector<8x1xi32>
    %cst_426 = arith.constant 0.000000e+00 : f32
    %1572 = vector.shape_cast %1571 : vector<8x1xi1> to vector<8x1xi1>
    %1573 = vector.broadcast %1572 : vector<8x1xi1> to vector<8x32xi1>
    %1574 = vector.broadcast %cst_426 : f32 to vector<8x32xf32>
    %1575 = arith.select %1573, %1569, %1574 : vector<8x32xi1>, vector<8x32xf32>
    %1576 = vector.shape_cast %1571 : vector<8x1xi1> to vector<8x1xi1>
    %1577 = vector.broadcast %1576 : vector<8x1xi1> to vector<8x32xi1>
    %1578 = arith.select %1577, %1569, %1379 : vector<8x32xi1>, vector<8x32xf32>
    %1579 = vector.shape_cast %1571 : vector<8x1xi1> to vector<8x1xi1>
    %1580 = vector.broadcast %1579 : vector<8x1xi1> to vector<8x32xi1>
    %1581 = arith.select %1580, %1567, %1382 : vector<8x32xi1>, vector<8x32xf32>
    %c3_427 = arith.constant 3 : index
    %1582 = arith.index_cast %1446 : i32 to index
    %c0_428 = arith.constant 0 : index
    %c0_429 = arith.constant 0 : index
    %1583 = vector.load %arg11[%c3_427, %1582, %c0_428, %c0_429] : memref<4x8x8x128xf32, #tpu.memory_space<vmem>>, vector<1x1x8x128xf32>
    %1584 = vector.shape_cast %1583 : vector<1x1x8x128xf32> to vector<8x128xf32>
    %1585 = arith.truncf %1424 : vector<8x32xf32> to vector<8x32xbf16>
    %c3_430 = arith.constant 3 : index
    %c0_431 = arith.constant 0 : index
    %c0_432 = arith.constant 0 : index
    %1586 = vector.load %arg4[%c3_430, %c0_431, %c0_432] : memref<4x32x128xbf16, #tpu.memory_space<vmem>>, vector<1x32x128xbf16>
    %1587 = vector.shape_cast %1586 : vector<1x32x128xbf16> to vector<32x128xbf16>
    %cst_433 = arith.constant dense<0.000000e+00> : vector<8x128xf32>
    %1588 = tpu.matmul %1585, %1587, %cst_433 {dimension_numbers = #tpu.dot_dimension_numbers<[1], [0], [0], [1], [0, 0, 1, 1], [], []>} : vector<8x32xbf16>, vector<32x128xbf16>, vector<8x128xf32> -> vector<8x128xf32>
    %1589 = arith.addf %1584, %1588 : vector<8x128xf32>
    %1590 = vector.extract_strided_slice %1589 {offsets = [0, 0], sizes = [8, 32], strides = [1, 1]} : vector<8x128xf32> to vector<8x32xf32>
    %1591 = arith.negf %1590 : vector<8x32xf32>
    %1592 = math.exp %1591 : vector<8x32xf32>
    %cst_434 = arith.constant 1.000000e+00 : f32
    %1593 = vector.broadcast %cst_434 : f32 to vector<8x32xf32>
    %1594 = arith.addf %1593, %1592 : vector<8x32xf32>
    %1595 = arith.divf %1593, %1594 : vector<8x32xf32>
    %1596 = vector.extract_strided_slice %1589 {offsets = [0, 32], sizes = [8, 32], strides = [1, 1]} : vector<8x128xf32> to vector<8x32xf32>
    %1597 = arith.negf %1596 : vector<8x32xf32>
    %1598 = math.exp %1597 : vector<8x32xf32>
    %cst_435 = arith.constant 1.000000e+00 : f32
    %1599 = vector.broadcast %cst_435 : f32 to vector<8x32xf32>
    %1600 = arith.addf %1599, %1598 : vector<8x32xf32>
    %1601 = arith.divf %1599, %1600 : vector<8x32xf32>
    %1602 = vector.extract_strided_slice %1589 {offsets = [0, 64], sizes = [8, 32], strides = [1, 1]} : vector<8x128xf32> to vector<8x32xf32>
    %1603 = math.tanh %1602 : vector<8x32xf32>
    %1604 = vector.extract_strided_slice %1589 {offsets = [0, 96], sizes = [8, 32], strides = [1, 1]} : vector<8x128xf32> to vector<8x32xf32>
    %1605 = arith.negf %1604 : vector<8x32xf32>
    %1606 = math.exp %1605 : vector<8x32xf32>
    %cst_436 = arith.constant 1.000000e+00 : f32
    %1607 = vector.broadcast %cst_436 : f32 to vector<8x32xf32>
    %1608 = arith.addf %1607, %1606 : vector<8x32xf32>
    %1609 = arith.divf %1607, %1608 : vector<8x32xf32>
    %1610 = arith.mulf %1601, %1427 : vector<8x32xf32>
    %1611 = arith.mulf %1595, %1603 : vector<8x32xf32>
    %1612 = arith.addf %1610, %1611 : vector<8x32xf32>
    %1613 = math.tanh %1612 : vector<8x32xf32>
    %1614 = arith.mulf %1609, %1613 : vector<8x32xf32>
    %1615 = vector.broadcast %1446 : i32 to vector<8x1xi32>
    %1616 = arith.cmpi sgt, %2, %1615 : vector<8x1xi32>
    %cst_437 = arith.constant 0.000000e+00 : f32
    %1617 = vector.shape_cast %1616 : vector<8x1xi1> to vector<8x1xi1>
    %1618 = vector.broadcast %1617 : vector<8x1xi1> to vector<8x32xi1>
    %1619 = vector.broadcast %cst_437 : f32 to vector<8x32xf32>
    %1620 = arith.select %1618, %1614, %1619 : vector<8x32xi1>, vector<8x32xf32>
    %1621 = vector.shape_cast %1616 : vector<8x1xi1> to vector<8x1xi1>
    %1622 = vector.broadcast %1621 : vector<8x1xi1> to vector<8x32xi1>
    %1623 = arith.select %1622, %1614, %1424 : vector<8x32xi1>, vector<8x32xf32>
    %1624 = vector.shape_cast %1616 : vector<8x1xi1> to vector<8x1xi1>
    %1625 = vector.broadcast %1624 : vector<8x1xi1> to vector<8x32xi1>
    %1626 = arith.select %1625, %1612, %1427 : vector<8x32xi1>, vector<8x32xf32>
    %1627 = vector.broadcast %0 : f32 to vector<8x32xf32>
    %1628 = arith.mulf %1485, %1627 : vector<8x32xf32>
    %1629 = vector.broadcast %1 : f32 to vector<8x32xf32>
    %1630 = arith.mulf %1530, %1629 : vector<8x32xf32>
    %1631 = arith.addf %1628, %1630 : vector<8x32xf32>
    %1632 = arith.index_cast %c7_i32_392 : i32 to index
    %c0_438 = arith.constant 0 : index
    %c0_439 = arith.constant 0 : index
    %1633 = vector.load %arg9[%1632, %c0_438, %c0_439] : memref<8x8x64xf32, #tpu.memory_space<vmem>>, vector<1x8x32xf32>
    %1634 = vector.shape_cast %1633 : vector<1x8x32xf32> to vector<8x32xf32>
    %1635 = vector.shape_cast %1631 : vector<8x32xf32> to vector<1x8x32xf32>
    tpu.vector_store %arg9[%1632, %c0_438, %c0_439], %1635 {strides = array<i32>} : memref<8x8x64xf32, #tpu.memory_space<vmem>>, vector<1x8x32xf32>,
    %1636 = vector.broadcast %0 : f32 to vector<8x32xf32>
    %1637 = arith.mulf %1575, %1636 : vector<8x32xf32>
    %1638 = vector.broadcast %1 : f32 to vector<8x32xf32>
    %1639 = arith.mulf %1620, %1638 : vector<8x32xf32>
    %1640 = arith.addf %1637, %1639 : vector<8x32xf32>
    %1641 = arith.index_cast %1446 : i32 to index
    %c0_440 = arith.constant 0 : index
    %c32_441 = arith.constant 32 : index
    %1642 = vector.load %arg9[%1641, %c0_440, %c32_441] : memref<8x8x64xf32, #tpu.memory_space<vmem>>, vector<1x8x32xf32>
    %1643 = vector.shape_cast %1642 : vector<1x8x32xf32> to vector<8x32xf32>
    %1644 = vector.shape_cast %1640 : vector<8x32xf32> to vector<1x8x32xf32>
    tpu.vector_store %arg9[%1641, %c0_440, %c32_441], %1644 {strides = array<i32>} : memref<8x8x64xf32, #tpu.memory_space<vmem>>, vector<1x8x32xf32>,
    %c8_i32 = arith.constant 8 : i32
    %c0_442 = arith.constant 0 : index
    %c0_443 = arith.constant 0 : index
    %c0_444 = arith.constant 0 : index
    %1645 = vector.load %arg9[%c0_442, %c0_443, %c0_444] : memref<8x8x64xf32, #tpu.memory_space<vmem>>, vector<8x8x64xf32>
    %1646 = vector.shape_cast %1645 : vector<8x8x64xf32> to vector<64x64xf32>
    %1647 = arith.truncf %1646 : vector<64x64xf32> to vector<64x64xbf16>
    %c0_445 = arith.constant 0 : index
    %c0_446 = arith.constant 0 : index
    %1648 = vector.load %arg6[%c0_445, %c0_446] : memref<64x2xbf16, #tpu.memory_space<vmem>>, vector<64x2xbf16>
    %cst_447 = arith.constant dense<0.000000e+00> : vector<64x2xf32>
    %1649 = tpu.matmul %1647, %1648, %cst_447 {dimension_numbers = #tpu.dot_dimension_numbers<[1], [0], [0], [1], [0, 0, 1, 1], [], []>} : vector<64x64xbf16>, vector<64x2xbf16>, vector<64x2xf32> -> vector<64x2xf32>
    %1650 = vector.shape_cast %1649 : vector<64x2xf32> to vector<8x8x2xf32>
    %c0_448 = arith.constant 0 : index
    %c0_449 = arith.constant 0 : index
    %1651 = vector.load %arg7[%c0_448, %c0_449] : memref<1x2xf32, #tpu.memory_space<vmem>>, vector<1x2xf32>
    %1652 = vector.shape_cast %1651 : vector<1x2xf32> to vector<1x1x2xf32>
    %1653 = vector.broadcast %1652 : vector<1x1x2xf32> to vector<8x8x2xf32>
    %1654 = arith.addf %1650, %1653 : vector<8x8x2xf32>
    %1655 = tpu.iota {dimensions = array<i32: 0>} : vector<8x8x1xi32>
    %1656 = vector.shape_cast %2 : vector<8x1xi32> to vector<1x8x1xi32>
    %1657 = vector.broadcast %1656 : vector<1x8x1xi32> to vector<8x8x1xi32>
    %1658 = arith.cmpi slt, %1655, %1657 : vector<8x8x1xi32>
    %cst_450 = arith.constant -1.000000e+30 : f32
    %1659 = vector.shape_cast %1658 : vector<8x8x1xi1> to vector<8x8x1xi1>
    %1660 = vector.broadcast %1659 : vector<8x8x1xi1> to vector<8x8x2xi1>
    %1661 = vector.broadcast %cst_450 : f32 to vector<8x8x2xf32>
    %1662 = arith.select %1660, %1654, %1661 : vector<8x8x2xi1>, vector<8x8x2xf32>
    %cst_451 = arith.constant dense<0xFF800000> : vector<8x2xf32>
    %1663 = vector.multi_reduction <maximumf>, %1662, %cst_451 [0] : vector<8x8x2xf32> to vector<8x2xf32>
    %1664 = vector.shape_cast %1663 : vector<8x2xf32> to vector<1x8x2xf32>
    %1665 = vector.broadcast %1664 : vector<1x8x2xf32> to vector<8x8x2xf32>
    %1666 = arith.subf %1662, %1665 : vector<8x8x2xf32>
    %1667 = math.exp %1666 : vector<8x8x2xf32>
    %cst_452 = arith.constant dense<0.000000e+00> : vector<8x2xf32>
    %1668 = vector.multi_reduction <add>, %1667, %cst_452 [0] : vector<8x8x2xf32> to vector<8x2xf32>
    %1669 = vector.shape_cast %1668 : vector<8x2xf32> to vector<1x8x2xf32>
    %1670 = tpu.reciprocal %1669 {approx = true} : vector<1x8x2xf32> -> vector<1x8x2xf32>
    %1671 = vector.broadcast %1670 : vector<1x8x2xf32> to vector<8x8x2xf32>
    %1672 = arith.mulf %1667, %1671 : vector<8x8x2xf32>
    %1673 = vector.extract_strided_slice %1672 {offsets = [0, 0, 0], sizes = [8, 8, 1], strides = [1, 1, 1]} : vector<8x8x2xf32> to vector<8x8x1xf32>
    %1674 = vector.broadcast %1673 : vector<8x8x1xf32> to vector<8x8x64xf32>
    %1675 = arith.mulf %1674, %1645 : vector<8x8x64xf32>
    %cst_453 = arith.constant dense<0.000000e+00> : vector<8x64xf32>
    %1676 = vector.multi_reduction <add>, %1675, %cst_453 [0] : vector<8x8x64xf32> to vector<8x64xf32>
    %1677 = vector.extract_strided_slice %1672 {offsets = [0, 0, 1], sizes = [8, 8, 1], strides = [1, 1, 1]} : vector<8x8x2xf32> to vector<8x8x1xf32>
    %1678 = vector.broadcast %1677 : vector<8x8x1xf32> to vector<8x8x64xf32>
    %1679 = arith.mulf %1678, %1645 : vector<8x8x64xf32>
    %cst_454 = arith.constant dense<0.000000e+00> : vector<8x64xf32>
    %1680 = vector.multi_reduction <add>, %1679, %cst_454 [0] : vector<8x8x64xf32> to vector<8x64xf32>
    %1681 = vector.broadcast %0 : f32 to vector<8x64xf32>
    %1682 = arith.mulf %1676, %1681 : vector<8x64xf32>
    %1683 = vector.broadcast %1 : f32 to vector<8x64xf32>
    %1684 = arith.mulf %1680, %1683 : vector<8x64xf32>
    %1685 = arith.addf %1682, %1684 : vector<8x64xf32>
    %c0_455 = arith.constant 0 : index
    %c0_456 = arith.constant 0 : index
    %1686 = vector.load %arg10[%c0_455, %c0_456] : memref<8x64xf32, #tpu.memory_space<vmem>>, vector<8x64xf32>
    tpu.vector_store %arg10[%c0_455, %c0_456], %1685 {strides = array<i32>} : memref<8x64xf32, #tpu.memory_space<vmem>>, vector<8x64xf32>,
    return
  }
  func.func @transform_0(%arg0: i32) -> (i32, i32, i32) {
    %c0_i32 = arith.constant 0 : i32
    %c0_i32_0 = arith.constant 0 : i32
    %c0_i32_1 = arith.constant 0 : i32
    return %c0_i32, %arg0, %c0_i32_0 : i32, i32, i32
  }
  func.func @transform_1(%arg0: i32) -> (i32, i32) {
    %c0_i32 = arith.constant 0 : i32
    %c0_i32_0 = arith.constant 0 : i32
    return %arg0, %c0_i32 : i32, i32
  }
  func.func @transform_2(%arg0: i32) -> (i32, i32, i32) {
    %c0_i32 = arith.constant 0 : i32
    %c0_i32_0 = arith.constant 0 : i32
    %c0_i32_1 = arith.constant 0 : i32
    %c0_i32_2 = arith.constant 0 : i32
    return %c0_i32, %c0_i32_0, %c0_i32_1 : i32, i32, i32
  }
  func.func @transform_3(%arg0: i32) -> (i32, i32, i32) {
    %c0_i32 = arith.constant 0 : i32
    %c0_i32_0 = arith.constant 0 : i32
    %c0_i32_1 = arith.constant 0 : i32
    %c0_i32_2 = arith.constant 0 : i32
    return %c0_i32, %c0_i32_0, %c0_i32_1 : i32, i32, i32
  }
  func.func @transform_4(%arg0: i32) -> (i32, i32, i32) {
    %c0_i32 = arith.constant 0 : i32
    %c0_i32_0 = arith.constant 0 : i32
    %c0_i32_1 = arith.constant 0 : i32
    %c0_i32_2 = arith.constant 0 : i32
    return %c0_i32, %c0_i32_0, %c0_i32_1 : i32, i32, i32
  }
  func.func @transform_5(%arg0: i32) -> (i32, i32) {
    %c0_i32 = arith.constant 0 : i32
    %c0_i32_0 = arith.constant 0 : i32
    %c0_i32_1 = arith.constant 0 : i32
    return %c0_i32, %c0_i32_0 : i32, i32
  }
  func.func @transform_6(%arg0: i32) -> (i32, i32) {
    %c0_i32 = arith.constant 0 : i32
    %c0_i32_0 = arith.constant 0 : i32
    %c0_i32_1 = arith.constant 0 : i32
    return %c0_i32, %c0_i32_0 : i32, i32
  }
  func.func @transform_7(%arg0: i32) -> (i32, i32) {
    %c0_i32 = arith.constant 0 : i32
    %c0_i32_0 = arith.constant 0 : i32
    %c0_i32_1 = arith.constant 0 : i32
    return %c0_i32, %c0_i32_0 : i32, i32
  }
  func.func @transform_8(%arg0: i32) -> (i32, i32, i32) {
    %c0_i32 = arith.constant 0 : i32
    %c0_i32_0 = arith.constant 0 : i32
    %c0_i32_1 = arith.constant 0 : i32
    return %c0_i32, %arg0, %c0_i32_0 : i32, i32, i32
  }
  func.func @transform_9(%arg0: i32) -> (i32, i32) {
    %c0_i32 = arith.constant 0 : i32
    %c0_i32_0 = arith.constant 0 : i32
    return %arg0, %c0_i32 : i32, i32
  }
}

</mosaic_0001>

<bundles_post_ra>
// kernel: tpu_custom_call.1
= control target key start
LH: loop header
LB: loop body
LE: loop exit
PB: predicated region body
PF: predicated region fallthrough
CT: control target
= control target key end

     0   :  { %16 = vsyncpa [#allocation5], 0  ;;  %s6496_s0 = inlined_call_operand.vmem [shape: bf16[8,8,32], index: 0, kind: input, shape index: {}]   ;;  %s6497_s1 = inlined_call_operand.vmem [shape: s32[8,1], index: 1, kind: input, shape index: {}]   ;;  %s6498_s2 = inlined_call_operand.hbm [shape: bf16[4,32,128], index: 2, kind: input, shape index: {}]   ;;  %s6499_s3 = inlined_call_operand.hbm [shape: bf16[4,32,128], index: 3, kind: input, shape index: {}]   ;;  %s6500_s4 = inlined_call_operand.vmem [shape: f32[4,1,128], index: 4, kind: input, shape index: {}]   ;;  %s6501_s5 = inlined_call_operand.vmem [shape: bf16[64,2], index: 5, kind: input, shape index: {}]   ;;  %s6502_s6 = inlined_call_operand.vmem [shape: f32[1,2], index: 6, kind: input, shape index: {}]   ;;  %s6503_s7 = inlined_call_operand.<no memory space> [shape: f32[1,1], index: 7, kind: input, shape index: {}]   ;;  %s6504_s8 = inlined_call_operand.hbm [shape: f32[8,8,64], index: 8, kind: output, shape index: {0}]   ;;  %s6505_s9 = inlined_call_operand.hbm [shape: f32[8,64], index: 9, kind: output, shape index: {1}]  }
   0x1   :  { %17 = vsyncpa [#allocation8], 0 }
   0x2   :  { %18 = vsyncpa [#allocation6], 0 }
   0x3   :  { %19 = vsyncpa [#allocation11], 0  ;;  %s5080_s30 = smov [#allocation4]   ;;  %s4984_s13 = scalar_lea.hbm %s6498_s2, 1024 }
   0x4   :  { %s29_s10 = sshll.u32 %s5080_s30, 4  ;;  %p4985_p0 = scmp.ne.s32.totalorder %s6498_s2, %s4984_s13  ;;  %s30_s10 = int_to_ptr.vmem [resolvable:$true] %s29_s10 }
   0x5   :  { %p4988_p1 = scmp.lt.u32.totalorder %s4984_s13, %s6498_s2 }
   0x7   :  { %p4990_p2 = pnand %p4988_p1, %p4985_p0 }
   0x9   :  { %4993 = shalt.err (!%p4990_p2)
}
   0xa   :  { %s4994_s18 = scalar_lea.vmem %s30_s10, 1024  ;;  %p4999_p4 = scmp.lt.s32.totalorder %s30_s10, %s30_s10 }
   0xb   :  { %p4995_p3 = scmp.ne.s32.totalorder %s30_s10, %s4994_s18  ;;  %p5000_p5 = scmp.lt.s32.totalorder %s4994_s18, %s4994_s18 }
   0xd   :  { %p5001_p6 = por %p5000_p5, %p4999_p4 }
   0xf   :  { %p5002_p7 = pnand %p5001_p6, %p4995_p3 }
  0x11   :  { %5005 = shalt.err (!%p5002_p7)
}
  0x12   :  { %s5081_s19 = smov 64   ;;  %s5082_s20 = smov 4  }
  0x13   :  { %35 = dma.hbm_to_vmem [thread:$0]  %s6498_s2, 1024, %s30_s10, [#allocation5], %s5081_s19, %s5081_s19, %s5082_s20  }
  0x14   :  { %s5083_s23 = smov [#allocation7]   ;;  %s5006_s27 = scalar_lea.hbm %s6499_s3, 1024 }
  0x15   :  { %s41_s24 = sshll.u32 %s5083_s23, 4  ;;  %p5007_p8 = scmp.ne.s32.totalorder %s6499_s3, %s5006_s27  ;;  %s42_s24 = int_to_ptr.vmem [resolvable:$true] %s41_s24 }
  0x16   :  { %p5010_p9 = scmp.lt.u32.totalorder %s5006_s27, %s6499_s3 }
  0x18   :  { %p5012_p10 = pnand %p5010_p9, %p5007_p8 }
  0x1a   :  { %5015 = shalt.err (!%p5012_p10)
}
  0x1b   :  { %s5016_s12 = scalar_lea.vmem %s42_s24, 1024  ;;  %p5021_p12 = scmp.lt.s32.totalorder %s42_s24, %s42_s24 }
  0x1c   :  { %p5017_p11 = scmp.ne.s32.totalorder %s42_s24, %s5016_s12  ;;  %p5022_p13 = scmp.lt.s32.totalorder %s5016_s12, %s5016_s12 }
  0x1e   :  { %p5023_p0 = por %p5022_p13, %p5021_p12 }
  0x20   :  { %p5024_p1 = pnand %p5023_p0, %p5017_p11 }
  0x22   :  { %5027 = shalt.err (!%p5024_p1)
}
  0x23   :  { %47 = dma.hbm_to_vmem [thread:$0]  %s6499_s3, 1024, %s42_s24, [#allocation8], %s5081_s19, %s5081_s19, %s5082_s20  }
  0x24   :  { %5072 = dma.done.wait [#allocation5], 1024  }
  0x25   :  { %5073 = vsyncadd [#allocation5], 4294966272 }
  0x26   :  { %5074 = dma.done.wait [#allocation8], 1024  }
  0x27   :  { %5075 = vsyncadd [#allocation8], 4294966272  ;;  %v6508_v0 = vmov 0   ;;  %v4629_v1 = vld [vmem:[#allocation4] sm:$0xff]   ;;  %v4631_v3 = vld [vmem:[#allocation4 + $0x8] sm:$0xff]   ;;  %vm117_vm0 = vcmask 261120  }
  0x28   :  { %4616 = vset.pattern.permute.xlu0 %v6508_v0  ;;  %4617 = vset.pattern.permute.xlu1 %v6508_v0  ;;  %v4630_v2 = vld [vmem:[#allocation4 + $0x20] sm:$0xff]   ;;  %v4632_v4 = vld [vmem:[#allocation4 + $0x28] sm:$0xff]   ;;  %v4635_v7 = vld [vmem:[#allocation4 + $0x10] sm:$0xff]   ;;  %v6506_v10 = vmov 0.0   ;;  %vm5086_vm1 = vmmov 0   ;;  %s64_s12 = ssub.f32 1.0, %s6503_s7 }
  0x29   :  { %4283 = vmatprep.subr.bf16.mxu1 %v4629_v1  ;;  %4307 = vmatprep.subr.bf16.mxu0 %v4630_v2  ;;  %v4633_v5 = vld [vmem:[%s6496_s0] sm:$0xff]   ;;  %v4634_v6 = vld [vmem:[%s6496_s0 + $0x8] sm:$0xff]   ;;  %v4636_v8 = vld [vmem:[%s6496_s0 + $0x10] sm:$0xff]  }
  0x2a   :  { %4284 = vmatpush3.bf16.msra.mxu1 %v4629_v1  ;;  %4308 = vmatpush3.bf16.msra.mxu0 %v4630_v2  ;;  %v4638_v9 = vld [vmem:[#allocation4 + $0x18] sm:$0xff]   ;;  %v4639_v11 = vld [vmem:[#allocation7] sm:$0xff]   ;;  %v4641_v12 = vld [vmem:[#allocation4 + $0x30] sm:$0xff]  }
  0x2b   :  { %4285 = vmatprep.subr.bf16.mxu1 %v4631_v3  ;;  %4309 = vmatprep.subr.bf16.mxu0 %v4632_v4  ;;  %v4640_v13 = vld [vmem:[#allocation7 + $0x8] sm:$0xff]   ;;  %v4637_v14 = vld [vmem:[%s6496_s0 + $0x18] sm:$0xff]   ;;  %v4642_v15 = vld [vmem:[#allocation7 + $0x20] sm:$0xff]  }
  0x2c   :  { %4287 = vmatprep.mubr.msk.bf16.mxu1 %vm117_vm0, %v4633_v5  ;;  %4311 = vmatprep.mubr.msk.bf16.mxu0 %vm117_vm0, %v4633_v5  ;;  %v4644_v16 = vld [vmem:[#allocation4 + $0x38] sm:$0xff]   ;;  %v4643_v17 = vld [vmem:[#allocation7 + $0x28] sm:$0xff]   ;;  %v4645_v18 = vld [vmem:[#allocation7 + $0x10] sm:$0xff]  }
  0x2d   :  { %v4646_v19 = vld [vmem:[#allocation7 + $0x18] sm:$0xff]   ;;  %v4647_v20 = vld [vmem:[#allocation7 + $0x30] sm:$0xff]   ;;  %v3987_v22 = vld [vmem:[%s6500_s4] ss:$0 sm:$0xff] }
  0x2e   :  { %4286 = vmatpush3.bf16.msra.mxu1 %v4631_v3  ;;  %4310 = vmatpush3.bf16.msra.mxu0 %v4632_v4  ;;  %v4648_v21 = vld [vmem:[#allocation7 + $0x38] sm:$0xff]   ;;  %v4007_v23 = vld [vmem:[%s6500_s4 + $0x2] ss:$0 sm:$0xff]  ;;  %v3999_v54 = vld [vmem:[%s6500_s4 + $0x1] ss:$0 sm:$0xff] }
  0x2f   :  { %4295 = vmatprep.subr.bf16.mxu1 %v4635_v7  ;;  %4331 = vmatprep.subr.bf16.mxu0 %v6506_v10 }
  0x31   :  { %4288 = vmatmul.mubr.msk.bf16.vlgmr.msra.gmra.mrb[0].mxu1 %vm117_vm0, %v4634_v6  ;;  %4312 = vmatmul.mubr.msk.bf16.vlgmr.msra.gmra.mrb[0].mxu0 %vm117_vm0, %v4634_v6 }
  0x32   :  { %4296 = vmatpush3.bf16.msra.mxu1 %v4635_v7  ;;  %4291 = vmatprep.mubr.msk.bf16.mxu1 %vm117_vm0, %v4636_v8 }
  0x33   :  { %4315 = vmatprep.mubr.msk.bf16.mxu0 %vm117_vm0, %v4636_v8  ;;  %4297 = vmatprep.subr.bf16.mxu1 %v4638_v9 }
  0x34   :  { %4332 = vmatpush3.bf16.msra.mxu0 %v4639_v11 }
  0x35   :  { %4333 = vmatprep.subr.bf16.mxu0 %v6506_v10 }
  0x36   :  { %4298 = vmatpush3.bf16.msra.mxu1 %v4638_v9 }
  0x37   :  { %4319 = vmatprep.subr.bf16.mxu1 %v4641_v12 }
  0x38   :  { %4334 = vmatpush3.bf16.msra.mxu0 %v4640_v13 }
  0x39   :  { %4292 = vmatmul.mubr.msk.bf16.gmra.mrb[4].mxu1 %vm117_vm0, %v4637_v14  ;;  %4347 = vmatprep.subr.bf16.mxu0 %v6506_v10 }
  0x3a   :  { %4316 = vmatmul.mubr.msk.bf16.gmra.mrb[4].mxu0 %vm117_vm0, %v4637_v14  ;;  %4299 = vmatprep.mubr.msk.bf16.mxu1 %vm117_vm0, %v4633_v5 }
  0x3b   :  { %4335 = vmatprep.mubr.msk.bf16.mxu0 %vm5086_vm1, %v6506_v10 }
  0x41   :  { %4300 = vmatmul.mubr.msk.bf16.vlgmr.msra.gmra.mrb[8].mxu1 %vm117_vm0, %v4634_v6 }
  0x42   :  { %4336 = vmatmul.mubr.bf16.vlgmr.msra.gmra.mrb[8].mxu0 %v6508_v0  ;;  %4320 = vmatpush3.bf16.msra.mxu1 %v4641_v12 }
  0x43   :  { %4348 = vmatpush3.bf16.msra.mxu0 %v4642_v15  ;;  %4303 = vmatprep.mubr.msk.bf16.mxu1 %vm117_vm0, %v4636_v8 }
  0x44   :  { %4349 = vmatprep.subr.bf16.mxu0 %v6506_v10  ;;  %4351 = vmatprep.mubr.msk.bf16.mxu0 %vm5086_vm1, %v6506_v10 }
  0x45   :  { %4321 = vmatprep.subr.bf16.mxu1 %v4644_v16 }
  0x46   :  { %4322 = vmatpush3.bf16.msra.mxu1 %v4644_v16 }
  0x47   :  { %4350 = vmatpush3.bf16.msra.mxu0 %v4643_v17  ;;  %4339 = vmatprep.subr.bf16.mxu1 %v6506_v10 }
  0x48   :  { %4363 = vmatprep.subr.bf16.mxu0 %v6506_v10 }
  0x49   :  { %4304 = vmatmul.mubr.msk.bf16.gmra.mrb[12].mxu1 %vm117_vm0, %v4637_v14 }
  0x4a   :  { %4352 = vmatmul.mubr.bf16.vlgmr.msra.gmra.mrb[12].mxu0 %v6508_v0  ;;  %4323 = vmatprep.mubr.msk.bf16.mxu1 %vm117_vm0, %v4633_v5 }
  0x4b   :  { %4367 = vmatprep.mubr.msk.bf16.mxu0 %vm5086_vm1, %v6506_v10 }
  0x51   :  { %4324 = vmatmul.mubr.msk.bf16.vlgmr.msra.gmra.mrb[16].mxu1 %vm117_vm0, %v4634_v6 }
  0x52   :  { %4340 = vmatpush3.bf16.msra.mxu1 %v4645_v18  ;;  %4327 = vmatprep.mubr.msk.bf16.mxu1 %vm117_vm0, %v4636_v8 }
  0x53   :  { %4341 = vmatprep.subr.bf16.mxu1 %v6506_v10 }
  0x56   :  { %4342 = vmatpush3.bf16.msra.mxu1 %v4646_v19 }
  0x57   :  { %4355 = vmatprep.subr.bf16.mxu1 %v6506_v10 }
  0x59   :  { %4328 = vmatmul.mubr.msk.bf16.gmra.mrb[20].mxu1 %vm117_vm0, %v4637_v14 }
  0x5a   :  { %4343 = vmatprep.mubr.msk.bf16.mxu1 %vm5086_vm1, %v6506_v10 }
  0x61   :  { %4344 = vmatmul.mubr.bf16.vlgmr.msra.gmra.mrb[24].mxu1 %v6508_v0 }
  0x62   :  { %4356 = vmatpush3.bf16.msra.mxu1 %v4647_v20  ;;  %4359 = vmatprep.mubr.msk.bf16.mxu1 %vm5086_vm1, %v6506_v10 }
  0x63   :  { %4357 = vmatprep.subr.bf16.mxu1 %v6506_v10 }
  0x66   :  { %4358 = vmatpush3.bf16.msra.mxu1 %v4648_v21  ;;  %v4015_v21 = vld [vmem:[%s6500_s4 + $0x3] ss:$0 sm:$0xff]  ;;  %s5087_s4 = smov 32  }
  0x67   :  { %4371 = vmatprep.subr.bf16.mxu1 %v6506_v10 }
  0x69   :  { %4360 = vmatmul.mubr.bf16.vlgmr.msra.gmra.mrb[28].mxu1 %v6508_v0 }
  0x6a   :  { %4375 = vmatprep.mubr.msk.bf16.mxu1 %vm5086_vm1, %v6506_v10 }
 0x104   :  { %v4289_v24 = vpop.f32.mrb[0].mxu1  ;;  %v4313_v27 = vpop.f32.mrb[0].mxu0 }
 0x105   :  { %v5233_v25 = vadd.f32 %v4289_v24, %v3987_v22  ;;  %v164_v26 = vpop.f32.mrb[1].mxu1  ;;  %v5235_v29 = vadd.f32 %v4313_v27, %v4007_v23  ;;  %v361_v30 = vpop.f32.mrb[1].mxu0 }
 0x106   :  { %v4290_v28 = vpop.f32.mrb[2].mxu1  ;;  %v5239_v33 = vadd.f32 %v4007_v23, %v361_v30  ;;  %v4314_v34 = vpop.f32.mrb[2].mxu0  ;;  %v165_v55 = vadd.f32 %v3987_v22, %v164_v26 }
 0x107   :  { %v5237_v31 = vadd.f32 %v4290_v28, %v3987_v22  ;;  %v167_v32 = vpop.f32.mrb[3].mxu1  ;;  %v5243_v36 = vadd.f32 %v4314_v34, %v4007_v23  ;;  %v364_v37 = vpop.f32.mrb[3].mxu0 }
 0x108   :  { %v5241_v35 = vadd.f32 %v3987_v22, %v167_v32  ;;  %v5245_v38 = vadd.f32 %v4007_v23, %v364_v37 }
 0x10c   :  { %v4293_v39 = vpop.f32.mrb[4].mxu1 }
 0x10d   :  { %v5247_v40 = vadd.f32 %v4293_v39, %v3987_v22  ;;  %v180_v41 = vpop.f32.mrb[5].mxu1  ;;  %v4317_v42 = vpop.f32.mrb[4].mxu0 }
 0x10e   :  { %v5249_v43 = vadd.f32 %v3987_v22, %v180_v41  ;;  %v4294_v44 = vpop.f32.mrb[6].mxu1  ;;  %v5251_v45 = vadd.f32 %v4317_v42, %v4007_v23  ;;  %v377_v46 = vpop.f32.mrb[5].mxu0 }
 0x10f   :  { %v5253_v47 = vadd.f32 %v4294_v44, %v3987_v22  ;;  %v183_v48 = vpop.f32.mrb[7].mxu1  ;;  %v5255_v49 = vadd.f32 %v4007_v23, %v377_v46  ;;  %v4318_v50 = vpop.f32.mrb[6].mxu0 }
 0x110   :  { %v5257_v51 = vadd.f32 %v3987_v22, %v183_v48  ;;  %v380_v52 = vpop.f32.mrb[7].mxu0  ;;  %v389_v5 = vadd.f32 %v4318_v50, %v4007_v23 }
 0x111   :  { %v5259_v53 = vadd.f32 %v4007_v23, %v380_v52 }
 0x114   :  { %v4301_v56 = vpop.f32.mrb[8].mxu1 }
 0x115   :  { %v5264_v57 = vadd.f32 %v4301_v56, %v3999_v54  ;;  %v554_v58 = vpop.f32.mrb[8].mxu0  ;;  %v262_v59 = vpop.f32.mrb[9].mxu1 }
 0x116   :  { %v560_v60 = vadd.f32 %v554_v58, %v165_v55  ;;  %v4302_v61 = vpop.f32.mrb[10].mxu1  ;;  %v4337_v62 = vpop.f32.mrb[9].mxu0  ;;  %v263_v50 = vadd.f32 %v3999_v54, %v262_v59 }
 0x117   :  { %v5266_v63 = vadd.f32 %v4302_v61, %v3999_v54  ;;  %v265_v1 = vpop.f32.mrb[11].mxu1  ;;  %v557_v2 = vpop.f32.mrb[10].mxu0 }
 0x118   :  { %v5268_v3 = vadd.f32 %v3999_v54, %v265_v1  ;;  %v4338_v4 = vpop.f32.mrb[11].mxu0  ;;  %4709 = vtanh.f32 %v560_v60 }
 0x11c   :  { %v4305_v6 = vpop.f32.mrb[12].mxu1 }
 0x11d   :  { %v5270_v7 = vadd.f32 %v4305_v6, %v3999_v54  ;;  %v731_v8 = vpop.f32.mrb[12].mxu0  ;;  %v278_v9 = vpop.f32.mrb[13].mxu1 }
 0x11e   :  { %v737_v11 = vadd.f32 %v731_v8, %v389_v5  ;;  %v5272_v12 = vadd.f32 %v3999_v54, %v278_v9  ;;  %v4306_v13 = vpop.f32.mrb[14].mxu1  ;;  %v4353_v14 = vpop.f32.mrb[13].mxu0 }
 0x11f   :  { %v5274_v15 = vadd.f32 %v4306_v13, %v3999_v54  ;;  %v281_v16 = vpop.f32.mrb[15].mxu1  ;;  %v734_v17 = vpop.f32.mrb[14].mxu0 }
 0x120   :  { %v5276_v18 = vadd.f32 %v3999_v54, %v281_v16  ;;  %4711 = vtanh.f32 %v737_v11  ;;  %v4354_v19 = vpop.f32.mrb[15].mxu0  ;;  %v4024_v54 = vmul.f32 -1.442695, %v560_v60  ;;  %v4030_v59 = vmul.f32 -1.442695, %v737_v11  ;;  %v5306_v60 = vld [vmem:[%s6497_s1] sm:$0xff] }
 0x121   :  { %vm585_vm2 = vcmp.gt.s32.totalorder %v5306_v60, 0  ;;  %vm762_vm3 = vcmp.gt.s32.totalorder %v5306_v60, 7  ;;  %vm966_vm6 = vcmp.gt.s32.totalorder %v5306_v60, 1  ;;  %vm1158_vm7 = vcmp.gt.s32.totalorder %v5306_v60, 6 }
 0x122   :  { %v4710_v20 = vpop.eup %4709  ;;  %vm1368_vm10 = vcmp.gt.s32.totalorder %v5306_v60, 2  ;;  %vm1560_vm11 = vcmp.gt.s32.totalorder %v5306_v60, 5 }
 0x123   :  { %570 = vrot.lane.b32.xlu0 %v4710_v20, %s5081_s19 }
 0x124   :  { %v4325_v22 = vpop.f32.mrb[16].mxu1 }
 0x125   :  { %v5282_v23 = vadd.f32 %v4325_v22, %v4015_v21  ;;  %v460_v24 = vpop.f32.mrb[17].mxu1 }
 0x126   :  { %v5284_v26 = vadd.f32 %v4015_v21, %v460_v24  ;;  %v4326_v27 = vpop.f32.mrb[18].mxu1 }
 0x127   :  { %v5286_v28 = vadd.f32 %v4326_v27, %v4015_v21  ;;  %v463_v30 = vpop.f32.mrb[19].mxu1 }
 0x128   :  { %v5288_v32 = vadd.f32 %v4015_v21, %v463_v30 }
 0x12a   :  { %v4712_v34 = vpop.eup %4711 }
 0x12b   :  { %747 = vrot.lane.b32.xlu1 %v4712_v34, %s5081_s19  ;;  %v586_v34 = vsel %vm585_vm2, 1, %v6508_v0 }
 0x12c   :  { %v4329_v37 = vpop.f32.mrb[20].mxu1 }
 0x12d   :  { %v5291_v39 = vadd.f32 %v4329_v37, %v4015_v21  ;;  %v476_v41 = vpop.f32.mrb[21].mxu1 }
 0x12e   :  { %v5293_v42 = vadd.f32 %v4015_v21, %v476_v41  ;;  %v4330_v44 = vpop.f32.mrb[22].mxu1  ;;  %v763_v41 = vsel %vm762_vm3, 1, %v6508_v0 }
 0x12f   :  { %v479_v46 = vpop.f32.mrb[23].mxu1  ;;  %v488_v62 = vadd.f32 %v4330_v44, %v4015_v21 }
 0x130   :  { %v5295_v48 = vadd.f32 %v4015_v21, %v479_v46 }
 0x134   :  { %v645_v52 = vpop.f32.mrb[24].mxu1 }
 0x135   :  { %v651_v55 = vadd.f32 %v645_v52, %v263_v50  ;;  %v4345_v56 = vpop.f32.mrb[25].mxu1 }
 0x136   :  { %v648_v58 = vpop.f32.mrb[26].mxu1 }
 0x137   :  { %4713 = vtanh.f32 %v651_v55  ;;  %v4346_v61 = vpop.f32.mrb[27].mxu1  ;;  %v4027_v20 = vmul.f32 -1.442695, %v651_v55 }
 0x13c   :  { %v823_v1 = vpop.f32.mrb[28].mxu1 }
 0x13d   :  { %v829_v2 = vadd.f32 %v823_v1, %v488_v62  ;;  %v4361_v4 = vpop.f32.mrb[29].mxu1 }
 0x13e   :  { %v826_v5 = vpop.f32.mrb[30].mxu1 }
 0x13f   :  { %4715 = vtanh.f32 %v829_v2  ;;  %v4362_v6 = vpop.f32.mrb[31].mxu1  ;;  %v4033_v24 = vmul.f32 -1.442695, %v829_v2 }
 0x140   :  { %4717 = vpow2.f32 %v4024_v54 }
 0x141   :  { %v4714_v8 = vpop.eup %4713  ;;  %4719 = vpow2.f32 %v4030_v59 }
 0x142   :  { %661 = vrot.lane.b32.xlu0 %v4714_v8, %s5081_s19 }
 0x149   :  { %v4716_v9 = vpop.eup %4715 }
 0x14a   :  { %839 = vrot.lane.b32.xlu1 %v4716_v9, %s5081_s19  ;;  %v4718_v13 = vpop.eup %4717 }
 0x14b   :  { %v564_v14 = vadd.f32 1.0, %v4718_v13  ;;  %v4720_v16 = vpop.eup %4719 }
 0x14c   :  { %v741_v17 = vadd.f32 1.0, %v4720_v16 }
 0x14d   :  { %4721 = vrcp.f32 %v564_v14 }
 0x14e   :  { %4723 = vrcp.f32 %v741_v17 }
 0x14f   :  { %4725 = vpow2.f32 %v4027_v20 }
 0x150   :  { %4727 = vpow2.f32 %v4033_v24 }
 0x157   :  { %v5299_v19 = vpop.eup %4721 }
 0x158   :  { %v5308_v11 = vpop.eup %4723  ;;  %v568_v1 = vmul.f32 0.0, %v5299_v19 }
 0x159   :  { %v4726_v37 = vpop.eup %4725  ;;  %v745_v54 = vmul.f32 0.0, %v5308_v11 }
 0x15a   :  { %v655_v44 = vadd.f32 1.0, %v4726_v37  ;;  %v4728_v46 = vpop.eup %4727 }
 0x15b   :  { %v833_v50 = vadd.f32 1.0, %v4728_v46 }
 0x15c   :  { %4729 = vrcp.f32 %v655_v44 }
 0x15d   :  { %4731 = vrcp.f32 %v833_v50 }
 0x166   :  { %v4730_v52 = vpop.eup %4729 }
 0x167   :  { %v4732_v58 = vpop.eup %4731  ;;  %v659_v6 = vmul.f32 0.0, %v4730_v52 }
 0x168   :  { %v837_v14 = vmul.f32 0.0, %v4732_v58 }
 0x195   :  { %v571_v21 = vpop.permute.xlu0 %570 }
 0x196   :  { %v573_v22 = vmul.f32 %v5299_v19, %v571_v21  ;;  %v4649_v21 = vld [vmem:[#allocation7] sm:$0xff]  }
 0x197   :  { %4364 = vmatpush3.bf16.msra.mxu0 %v4649_v21  ;;  %v4656_v21 = vld [vmem:[#allocation7 + $0x38] sm:$0xff]  }
 0x198   :  { %575 = vrot.lane.b32.xlu0 %v573_v22, %s5087_s4  ;;  %v4650_v22 = vld [vmem:[#allocation7 + $0x8] sm:$0xff]   ;;  %4365 = vmatprep.subr.bf16.mxu0 %v6506_v10 }
 0x19b   :  { %4366 = vmatpush3.bf16.msra.mxu0 %v4650_v22 }
 0x19c   :  { %4379 = vmatprep.subr.bf16.mxu0 %v6506_v10 }
 0x19d   :  { %v748_v27 = vpop.permute.xlu1 %747 }
 0x19e   :  { %v750_v30 = vmul.f32 %v5308_v11, %v748_v27 }
 0x1a0   :  { %752 = vrot.lane.b32.xlu0 %v750_v30, %s5087_s4  ;;  %v4651_v30 = vld [vmem:[#allocation7 + $0x10] sm:$0xff]  }
 0x1a1   :  { %4372 = vmatpush3.bf16.msra.mxu1 %v4651_v30 }
 0x1a2   :  { %4373 = vmatprep.subr.bf16.mxu1 %v6506_v10 }
 0x1a4   :  { %588 = vperm.xlu0 %4616, %v586_v34   ;;  %v4652_v34 = vld [vmem:[#allocation7 + $0x18] sm:$0xff]  }
 0x1a5   :  { %4374 = vmatpush3.bf16.msra.mxu1 %v4652_v34 }
 0x1a6   :  { %4387 = vmatprep.subr.bf16.mxu1 %v6506_v10 }
 0x1a8   :  { %765 = vperm.xlu0 %4616, %v763_v41  }
 0x1b4   :  { %v662_v55 = vpop.permute.xlu0 %661 }
 0x1b5   :  { %v664_v56 = vmul.f32 %v4730_v52, %v662_v55 }
 0x1b7   :  { %666 = vrot.lane.b32.xlu1 %v664_v56, %s5087_s4 }
 0x1bc   :  { %v840_v61 = vpop.permute.xlu1 %839 }
 0x1bd   :  { %v842_v62 = vmul.f32 %v4732_v58, %v840_v61 }
 0x1bf   :  { %844 = vrot.lane.b32.xlu1 %v842_v62, %s5087_s4 }
 0x20a   :  { %v576_v2 = vpop.permute.xlu0 %575 }
 0x20b   :  { %v5319_v4 = vadd.f32 %v576_v2, %v568_v1 }
 0x20d   :  { %4733 = vtanh.f32 %v5319_v4 }
 0x212   :  { %v753_v8 = vpop.permute.xlu0 %752 }
 0x213   :  { %v5326_v13 = vadd.f32 %v753_v8, %v745_v54  ;;  %v4653_v54 = vld [vmem:[#allocation7 + $0x20] sm:$0xff]  }
 0x217   :  { %v4734_v5 = vpop.eup %4733 }
 0x218   :  { %581 = vrot.lane.b32.xlu1 %v4734_v5, %s5081_s19 }
 0x223   :  { %v5339_v37 = vpop.permute.xlu0 %588 }
 0x224   :  { %vm590_vm4 = vcmp.eq.s32.totalorder %v5339_v37, 1 }
 0x227   :  { %v5351_v61 = vpop.permute.xlu0 %765 }
 0x228   :  { %6512 = vst [vmem:[#allocation16_spill] sm:$0xff] %v5351_v61  ;;  %vm767_vm5 = vcmp.eq.s32.totalorder %v5351_v61, 1 }
 0x229   :  { %v667_v9 = vpop.permute.xlu1 %666 }
 0x22a   :  { %v5324_v59 = vadd.f32 %v667_v9, %v659_v6 }
 0x22c   :  { %4735 = vtanh.f32 %v5324_v59 }
 0x22d   :  { %4737 = vtanh.f32 %v5326_v13 }
 0x231   :  { %v845_v16 = vpop.permute.xlu1 %844 }
 0x232   :  { %v5330_v17 = vadd.f32 %v845_v16, %v837_v14  ;;  %v4654_v16 = vld [vmem:[#allocation7 + $0x28] sm:$0xff]  }
 0x234   :  { %4739 = vtanh.f32 %v5330_v17 }
 0x236   :  { %v4736_v20 = vpop.eup %4735 }
 0x237   :  { %672 = vrot.lane.b32.xlu1 %v4736_v20, %s5081_s19  ;;  %v4738_v24 = vpop.eup %4737 }
 0x23b   :  { %758 = vrot.lane.b32.xlu1 %v4738_v24, %s5081_s19 }
 0x23e   :  { %v4740_v27 = vpop.eup %4739 }
 0x23f   :  { %850 = vrot.lane.b32.xlu0 %v4740_v27, %s5081_s19 }
 0x28a   :  { %v582_v41 = vpop.permute.xlu1 %581 }
 0x28b   :  { %v584_v44 = vmul.f32 %v5299_v19, %v582_v41 }
 0x28d   :  { %v5346_v46 = vsel %vm590_vm4, %v584_v44, 0.0 }
 0x28e   :  { %v878_v50 = vpack.c.bf16 %v5346_v46, %v5346_v46 }
 0x290   :  { %884 = vrot.lane.b32.xlu1 %v878_v50, %s5087_s4 }
 0x2a9   :  { %v673_v55 = vpop.permute.xlu1 %672 }
 0x2aa   :  { %v675_v56 = vmul.f32 %v4730_v52, %v673_v55 }
 0x2ac   :  { %v5355_v62 = vsel %vm590_vm4, %v675_v56, 0.0 }
 0x2ad   :  { %v759_v19 = vpop.permute.xlu1 %758  ;;  %v977_v1 = vpack.c.bf16 %v5355_v62, %v5355_v62 }
 0x2ae   :  { %v761_v2 = vmul.f32 %v5308_v11, %v759_v19 }
 0x2af   :  { %983 = vrot.lane.b32.xlu0 %v977_v1, %s5087_s4 }
 0x2b0   :  { %v5364_v5 = vsel %vm767_vm5, %v761_v2, 0.0 }
 0x2b1   :  { %v851_v52 = vpop.permute.xlu0 %850  ;;  %v1070_v6 = vpack.c.bf16 %v5364_v5, %v5364_v5 }
 0x2b2   :  { %v853_v8 = vmul.f32 %v4732_v58, %v851_v52  ;;  %v4655_v58 = vld [vmem:[#allocation7 + $0x30] sm:$0xff]  }
 0x2b3   :  { %1076 = vrot.lane.b32.xlu1 %v1070_v6, %s5087_s4 }
 0x2b4   :  { %v5371_v9 = vsel %vm767_vm5, %v853_v8, 0.0 }
 0x2b5   :  { %v1169_v11 = vpack.c.bf16 %v5371_v9, %v5371_v9 }
 0x2b7   :  { %1175 = vrot.lane.b32.xlu0 %v1169_v11, %s5087_s4 }
 0x302   :  { %v885_v14 = vpop.permute.xlu1 %884 }
 0x303   :  { %4368 = vmatmul.mubr.msk.bf16.vlgmr.msra.gmra.mrb[16].mxu0 %vm117_vm0, %v885_v14 }
 0x304   :  { %4380 = vmatpush3.bf16.msra.mxu0 %v4653_v54  ;;  %4383 = vmatprep.mubr.msk.bf16.mxu0 %vm5086_vm1, %v6506_v10 }
 0x305   :  { %4381 = vmatprep.subr.bf16.mxu0 %v6506_v10 }
 0x308   :  { %4382 = vmatpush3.bf16.msra.mxu0 %v4654_v16 }
 0x309   :  { %4395 = vmatprep.subr.bf16.mxu0 %v6506_v10 }
 0x321   :  { %v984_v20 = vpop.permute.xlu0 %983 }
 0x322   :  { %4376 = vmatmul.mubr.msk.bf16.vlgmr.msra.gmra.mrb[32].mxu1 %vm117_vm0, %v984_v20 }
 0x323   :  { %4388 = vmatpush3.bf16.msra.mxu1 %v4655_v58  ;;  %4391 = vmatprep.mubr.msk.bf16.mxu1 %vm5086_vm1, %v6506_v10 }
 0x324   :  { %4389 = vmatprep.subr.bf16.mxu1 %v6506_v10 }
 0x325   :  { %v1077_v22 = vpop.permute.xlu1 %1076 }
 0x326   :  { %4384 = vmatmul.mubr.msk.bf16.vlgmr.msra.gmra.mrb[20].mxu0 %vm117_vm0, %v1077_v22 }
 0x327   :  { %4390 = vmatpush3.bf16.msra.mxu1 %v4656_v21  ;;  %4399 = vmatprep.mubr.msk.bf16.mxu0 %vm5086_vm1, %v6506_v10 }
 0x328   :  { %4403 = vmatprep.subr.bf16.mxu1 %v6506_v10 }
 0x329   :  { %v1176_v24 = vpop.permute.xlu0 %1175 }
 0x32a   :  { %4392 = vmatmul.mubr.msk.bf16.vlgmr.msra.gmra.mrb[36].mxu1 %vm117_vm0, %v1176_v24 }
 0x32b   :  { %4407 = vmatprep.mubr.msk.bf16.mxu1 %vm5086_vm1, %v6506_v10 }
 0x3d6   :  { %v935_v27 = vpop.f32.mrb[16].mxu0 }
 0x3d7   :  { %v941_v30 = vadd.f32 %v935_v27, %v5241_v35  ;;  %v4369_v34 = vpop.f32.mrb[17].mxu0 }
 0x3d8   :  { %v938_v41 = vpop.f32.mrb[18].mxu0 }
 0x3d9   :  { %4741 = vtanh.f32 %v941_v30  ;;  %v4370_v44 = vpop.f32.mrb[19].mxu0 }
 0x3e3   :  { %v4742_v50 = vpop.eup %4741 }
 0x3e4   :  { %951 = vrot.lane.b32.xlu1 %v4742_v50, %s5081_s19 }
 0x3f5   :  { %v1034_v55 = vpop.f32.mrb[32].mxu1 }
 0x3f6   :  { %v1040_v56 = vadd.f32 %v1034_v55, %v5268_v3  ;;  %v4377_v19 = vpop.f32.mrb[33].mxu1 }
 0x3f7   :  { %v1037_v1 = vpop.f32.mrb[34].mxu1 }
 0x3f8   :  { %4743 = vtanh.f32 %v1040_v56  ;;  %v4378_v2 = vpop.f32.mrb[35].mxu1 }
 0x3f9   :  { %v1127_v52 = vpop.f32.mrb[20].mxu0 }
 0x3fa   :  { %v1133_v6 = vadd.f32 %v1127_v52, %v5251_v45  ;;  %v4385_v8 = vpop.f32.mrb[21].mxu0  ;;  %v4037_v45 = vmul.f32 -1.442695, %v941_v30 }
 0x3fb   :  { %v1130_v11 = vpop.f32.mrb[22].mxu0 }
 0x3fc   :  { %4745 = vtanh.f32 %v1133_v6  ;;  %v4386_v35 = vpop.f32.mrb[23].mxu0  ;;  %v4045_v50 = vmul.f32 -1.442695, %v1133_v6 }
 0x3fd   :  { %v1226_v54 = vpop.f32.mrb[36].mxu1 }
 0x3fe   :  { %v1232_v14 = vadd.f32 %v1226_v54, %v5291_v39  ;;  %v4393_v16 = vpop.f32.mrb[37].mxu1  ;;  %v4041_v39 = vmul.f32 -1.442695, %v1040_v56 }
 0x3ff   :  { %v1229_v58 = vpop.f32.mrb[38].mxu1 }
 0x400   :  { %4747 = vtanh.f32 %v1232_v14  ;;  %v4394_v20 = vpop.f32.mrb[39].mxu1  ;;  %v4049_v55 = vmul.f32 -1.442695, %v1232_v14 }
 0x401   :  { %4749 = vpow2.f32 %v4037_v45  ;;  %v967_v20 = vsel %vm966_vm6, 1, %v6508_v0  ;;  %vm3668_vm6 = vcmask 523264  }
 0x402   :  { %v4744_v21 = vpop.eup %4743 }
 0x403   :  { %1050 = vrot.lane.b32.xlu0 %v4744_v21, %s5081_s19 }
 0x406   :  { %v4746_v3 = vpop.eup %4745 }
 0x407   :  { %1143 = vrot.lane.b32.xlu1 %v4746_v3, %s5081_s19  ;;  %v5421_v3 = vsel %vm590_vm4, %v5319_v4, 0.0  ;;  %v5434_v4 = vsel %vm590_vm4, %v5324_v59, 0.0  ;;  %v5453_v59 = vsel %vm767_vm5, %v5330_v17, 0.0 }
 0x40a   :  { %v4748_v22 = vpop.eup %4747 }
 0x40b   :  { %1242 = vrot.lane.b32.xlu0 %v4748_v22, %s5081_s19  ;;  %v4750_v24 = vpop.eup %4749 }
 0x40c   :  { %v945_v27 = vadd.f32 1.0, %v4750_v24 }
 0x40e   :  { %4751 = vrcp.f32 %v945_v27 }
 0x40f   :  { %4753 = vpow2.f32 %v4041_v39  ;;  %v1159_v39 = vsel %vm1158_vm7, 1, %v6508_v0 }
 0x410   :  { %4755 = vpow2.f32 %v4045_v50 }
 0x411   :  { %4757 = vpow2.f32 %v4049_v55  ;;  %v5443_v55 = vsel %vm767_vm5, %v5326_v13, 0.0 }
 0x418   :  { %v5400_v34 = vpop.eup %4751 }
 0x419   :  { %v4754_v19 = vpop.eup %4753  ;;  %v949_v22 = vmul.f32 %v5400_v34, %v5421_v3 }
 0x41a   :  { %v1044_v1 = vadd.f32 1.0, %v4754_v19  ;;  %v4756_v30 = vpop.eup %4755 }
 0x41b   :  { %v1137_v2 = vadd.f32 1.0, %v4756_v30  ;;  %v4758_v52 = vpop.eup %4757 }
 0x41c   :  { %4759 = vrcp.f32 %v1044_v1  ;;  %v1236_v8 = vadd.f32 1.0, %v4758_v52 }
 0x41d   :  { %4761 = vrcp.f32 %v1137_v2 }
 0x41e   :  { %4763 = vrcp.f32 %v1236_v8 }
 0x426   :  { %v5404_v56 = vpop.eup %4759 }
 0x427   :  { %v5408_v6 = vpop.eup %4761 }
 0x428   :  { %v5413_v16 = vpop.eup %4763  ;;  %v1141_v19 = vmul.f32 %v5408_v6, %v5443_v55 }
 0x429   :  { %v1240_v2 = vmul.f32 %v5413_v16, %v5453_v59 }
 0x456   :  { %v952_v41 = vpop.permute.xlu1 %951 }
 0x457   :  { %v954_v44 = vmul.f32 %v5400_v34, %v952_v41  ;;  %v1048_v41 = vmul.f32 %v5404_v56, %v5434_v4 }
 0x459   :  { %956 = vrot.lane.b32.xlu1 %v954_v44, %s5087_s4 }
 0x475   :  { %v1051_v11 = vpop.permute.xlu0 %1050 }
 0x476   :  { %v1053_v35 = vmul.f32 %v5404_v56, %v1051_v11  ;;  %v4657_v11 = vld [vmem:[#allocation7] sm:$0xff]  }
 0x477   :  { %4396 = vmatpush3.bf16.msra.mxu0 %v4657_v11 }
 0x478   :  { %1055 = vrot.lane.b32.xlu0 %v1053_v35, %s5087_s4  ;;  %v4658_v35 = vld [vmem:[#allocation7 + $0x8] sm:$0xff]   ;;  %4397 = vmatprep.subr.bf16.mxu0 %v6506_v10 }
 0x479   :  { %v1144_v54 = vpop.permute.xlu1 %1143 }
 0x47a   :  { %v1146_v14 = vmul.f32 %v5408_v6, %v1144_v54 }
 0x47b   :  { %4398 = vmatpush3.bf16.msra.mxu0 %v4658_v35 }
 0x47c   :  { %1148 = vrot.lane.b32.xlu1 %v1146_v14, %s5087_s4  ;;  %4411 = vmatprep.subr.bf16.mxu0 %v6506_v10  ;;  %v4659_v14 = vld [vmem:[#allocation7 + $0x10] sm:$0xff]  }
 0x47d   :  { %v1243_v58 = vpop.permute.xlu0 %1242  ;;  %4404 = vmatpush3.bf16.msra.mxu1 %v4659_v14 }
 0x47e   :  { %v1245_v21 = vmul.f32 %v5413_v16, %v1243_v58  ;;  %v4660_v58 = vld [vmem:[#allocation7 + $0x18] sm:$0xff]   ;;  %4405 = vmatprep.subr.bf16.mxu1 %v6506_v10 }
 0x480   :  { %969 = vperm.xlu1 %4617, %v967_v20   ;;  %1247 = vrot.lane.b32.xlu0 %v1245_v21, %s5087_s4 }
 0x481   :  { %4406 = vmatpush3.bf16.msra.mxu1 %v4660_v58 }
 0x482   :  { %4419 = vmatprep.subr.bf16.mxu1 %v6506_v10 }
 0x4cb   :  { %v957_v45 = vpop.permute.xlu1 %956 }
 0x4cc   :  { %v5425_v24 = vadd.f32 %v957_v45, %v949_v22 }
 0x4ce   :  { %4765 = vtanh.f32 %v5425_v24 }
 0x4d8   :  { %v4766_v27 = vpop.eup %4765 }
 0x4d9   :  { %962 = vrot.lane.b32.xlu0 %v4766_v27, %s5081_s19 }
 0x4dd   :  { %1161 = vperm.xlu0 %4616, %v1159_v39  }
 0x4ea   :  { %v1056_v44 = vpop.permute.xlu0 %1055 }
 0x4eb   :  { %v5438_v50 = vadd.f32 %v1056_v44, %v1048_v41  ;;  %v5489_v44 = vstv %s6503_s7 }
 0x4ed   :  { %4767 = vtanh.f32 %v5438_v50 }
 0x4ee   :  { %v1149_v1 = vpop.permute.xlu1 %1148 }
 0x4ef   :  { %v5448_v30 = vadd.f32 %v1149_v1, %v1141_v19  ;;  %v5491_v19 = vstv %s64_s12 }
 0x4f1   :  { %4769 = vtanh.f32 %v5448_v30 }
 0x4f2   :  { %v1248_v13 = vpop.permute.xlu0 %1247 }
 0x4f3   :  { %v5458_v52 = vadd.f32 %v1248_v13, %v1240_v2 }
 0x4f5   :  { %4771 = vtanh.f32 %v5458_v52 }
 0x4f7   :  { %v4768_v8 = vpop.eup %4767 }
 0x4f8   :  { %1061 = vrot.lane.b32.xlu1 %v4768_v8, %s5081_s19 }
 0x4fb   :  { %v4770_v54 = vpop.eup %4769 }
 0x4fc   :  { %1154 = vrot.lane.b32.xlu1 %v4770_v54, %s5081_s19 }
 0x4ff   :  { %v4772_v17 = vpop.eup %4771  ;;  %v5467_v20 = vpop.permute.xlu1 %969 }
 0x500   :  { %1253 = vrot.lane.b32.xlu0 %v4772_v17, %s5081_s19  ;;  %vm971_vm8 = vcmp.eq.s32.totalorder %v5467_v20, 1 }
 0x54b   :  { %v963_v21 = vpop.permute.xlu0 %962 }
 0x54c   :  { %v965_v22 = vmul.f32 %v5400_v34, %v963_v21 }
 0x54e   :  { %v5475_v45 = vsel %vm971_vm8, %v965_v22, %v5346_v46  ;;  %v972_v34 = vsel %vm971_vm8, %v965_v22, 0.0 }
 0x54f   :  { %v1280_v27 = vpack.c.bf16 %v5475_v45, %v5475_v45  ;;  %v1260_v8 = vmul.f32 %v972_v34, %v5489_v44 }
 0x551   :  { %1286 = vrot.lane.b32.xlu1 %v1280_v27, %s5087_s4 }
 0x55c   :  { %v5493_v1 = vpop.permute.xlu0 %1161 }
 0x55d   :  { %vm1163_vm9 = vcmp.eq.s32.totalorder %v5493_v1, 1 }
 0x55e   :  { %v5606_v60 = vsel %vm1163_vm9, %v5448_v30, %v5443_v55 }
 0x56a   :  { %v1062_v39 = vpop.permute.xlu1 %1061 }
 0x56b   :  { %v1064_v41 = vmul.f32 %v5404_v56, %v1062_v39 }
 0x56d   :  { %v1065_v2 = vsel %vm971_vm8, %v1064_v41, 0.0  ;;  %v5500_v13 = vsel %vm971_vm8, %v1064_v41, %v5355_v62 }
 0x56e   :  { %v1261_v56 = vmul.f32 %v1065_v2, %v5491_v19  ;;  %v1155_v11 = vpop.permute.xlu1 %1154  ;;  %v1379_v35 = vpack.c.bf16 %v5500_v13, %v5500_v13 }
 0x56f   :  { %v1157_v54 = vmul.f32 %v5408_v6, %v1155_v11  ;;  %v4662_v11 = vld [vmem:[#allocation7 + $0x28] sm:$0xff]  }
 0x570   :  { %v5508_v17 = vadd.f32 %v1261_v56, %v1260_v8  ;;  %1385 = vrot.lane.b32.xlu0 %v1379_v35, %s5087_s4  ;;  %v4661_v8 = vld [vmem:[#allocation7 + $0x20] sm:$0xff]   ;;  %v4663_v35 = vld [vmem:[#allocation7 + $0x30] sm:$0xff]  }
 0x571   :  { %v5514_v14 = vsel %vm1163_vm9, %v1157_v54, %v5364_v5  ;;  %v1164_v22 = vsel %vm1163_vm9, %v1157_v54, 0.0 }
 0x572   :  { %v1254_v58 = vpop.permute.xlu0 %1253  ;;  %v1472_v21 = vpack.c.bf16 %v5514_v14, %v5514_v14  ;;  %v1269_v34 = vmul.f32 %v1164_v22, %v5489_v44 }
 0x573   :  { %v1256_v6 = vmul.f32 %v5413_v16, %v1254_v58  ;;  %v4664_v58 = vld [vmem:[#allocation7 + $0x38] sm:$0xff]  }
 0x574   :  { %1478 = vrot.lane.b32.xlu1 %v1472_v21, %s5087_s4 }
 0x575   :  { %v1257_v27 = vsel %vm1163_vm9, %v1256_v6, 0.0  ;;  %v5527_v39 = vsel %vm1163_vm9, %v1256_v6, %v5371_v9 }
 0x576   :  { %v1270_v41 = vmul.f32 %v1257_v27, %v5491_v19  ;;  %v1571_v2 = vpack.c.bf16 %v5527_v39, %v5527_v39 }
 0x578   :  { %1577 = vrot.lane.b32.xlu0 %v1571_v2, %s5087_s4  ;;  %v5534_v16 = vadd.f32 %v1270_v41, %v1269_v34 }
 0x57a   :  { %6513 = vst [vmem:[#allocation17_spill] sm:$0xff] %v5534_v16 }
 0x5c3   :  { %v1287_v56 = vpop.permute.xlu1 %1286 }
 0x5c4   :  { %4400 = vmatmul.mubr.msk.bf16.vlgmr.msra.gmra.mrb[24].mxu0 %vm117_vm0, %v1287_v56 }
 0x5c5   :  { %4412 = vmatpush3.bf16.msra.mxu0 %v4661_v8  ;;  %4415 = vmatprep.mubr.msk.bf16.mxu0 %vm5086_vm1, %v6506_v10 }
 0x5c6   :  { %4413 = vmatprep.subr.bf16.mxu0 %v6506_v10 }
 0x5c9   :  { %4414 = vmatpush3.bf16.msra.mxu0 %v4662_v11 }
 0x5ca   :  { %4427 = vmatprep.subr.bf16.mxu0 %v6506_v10 }
 0x5e2   :  { %v1386_v54 = vpop.permute.xlu0 %1385 }
 0x5e3   :  { %4408 = vmatmul.mubr.msk.bf16.vlgmr.msra.gmra.mrb[40].mxu1 %vm117_vm0, %v1386_v54 }
 0x5e4   :  { %4420 = vmatpush3.bf16.msra.mxu1 %v4663_v35  ;;  %4423 = vmatprep.mubr.msk.bf16.mxu1 %vm5086_vm1, %v6506_v10 }
 0x5e5   :  { %4421 = vmatprep.subr.bf16.mxu1 %v6506_v10 }
 0x5e6   :  { %v1479_v21 = vpop.permute.xlu1 %1478 }
 0x5e7   :  { %4416 = vmatmul.mubr.msk.bf16.vlgmr.msra.gmra.mrb[28].mxu0 %vm117_vm0, %v1479_v21 }
 0x5e8   :  { %4422 = vmatpush3.bf16.msra.mxu1 %v4664_v58  ;;  %4431 = vmatprep.mubr.msk.bf16.mxu0 %vm5086_vm1, %v6506_v10 }
 0x5e9   :  { %4435 = vmatprep.subr.bf16.mxu1 %v6506_v10 }
 0x5ea   :  { %v1578_v22 = vpop.permute.xlu0 %1577 }
 0x5eb   :  { %4424 = vmatmul.mubr.msk.bf16.vlgmr.msra.gmra.mrb[44].mxu1 %vm117_vm0, %v1578_v22 }
 0x5ec   :  { %4439 = vmatprep.mubr.msk.bf16.mxu1 %vm5086_vm1, %v6506_v10 }
 0x697   :  { %v1337_v6 = vpop.f32.mrb[24].mxu0 }
 0x698   :  { %v1343_v27 = vadd.f32 %v1337_v6, %v5233_v25  ;;  %v4401_v34 = vpop.f32.mrb[25].mxu0 }
 0x699   :  { %v1340_v41 = vpop.f32.mrb[26].mxu0 }
 0x69a   :  { %4773 = vtanh.f32 %v1343_v27  ;;  %v4402_v2 = vpop.f32.mrb[27].mxu0 }
 0x6a4   :  { %v4774_v8 = vpop.eup %4773 }
 0x6a5   :  { %1353 = vrot.lane.b32.xlu1 %v4774_v8, %s5081_s19 }
 0x6b6   :  { %v1436_v56 = vpop.f32.mrb[40].mxu1 }
 0x6b7   :  { %v1442_v11 = vadd.f32 %v1436_v56, %v5264_v57  ;;  %v4409_v35 = vpop.f32.mrb[41].mxu1 }
 0x6b8   :  { %v1439_v54 = vpop.f32.mrb[42].mxu1 }
 0x6b9   :  { %4775 = vtanh.f32 %v1442_v11  ;;  %v4410_v58 = vpop.f32.mrb[43].mxu1 }
 0x6ba   :  { %v1529_v21 = vpop.f32.mrb[28].mxu0 }
 0x6bb   :  { %v1535_v22 = vadd.f32 %v1529_v21, %v5259_v53  ;;  %v4417_v10 = vpop.f32.mrb[29].mxu0 }
 0x6bc   :  { %v1532_v0 = vpop.f32.mrb[30].mxu0  ;;  %v4053_v10 = vmul.f32 -1.442695, %v1343_v27 }
 0x6bd   :  { %4777 = vtanh.f32 %v1535_v22  ;;  %v4418_v25 = vpop.f32.mrb[31].mxu0 }
 0x6be   :  { %v1628_v6 = vpop.f32.mrb[44].mxu1 }
 0x6bf   :  { %v1634_v34 = vadd.f32 %v1628_v6, %v5295_v48  ;;  %v4425_v41 = vpop.f32.mrb[45].mxu1  ;;  %v4057_v48 = vmul.f32 -1.442695, %v1442_v11 }
 0x6c0   :  { %v1631_v2 = vpop.f32.mrb[46].mxu1 }
 0x6c1   :  { %4779 = vtanh.f32 %v1634_v34  ;;  %v4426_v8 = vpop.f32.mrb[47].mxu1  ;;  %v4065_v21 = vmul.f32 -1.442695, %v1634_v34 }
 0x6c2   :  { %4781 = vpow2.f32 %v4053_v10 }
 0x6c3   :  { %v4776_v16 = vpop.eup %4775 }
 0x6c4   :  { %1452 = vrot.lane.b32.xlu0 %v4776_v16, %s5081_s19  ;;  %v4061_v16 = vmul.f32 -1.442695, %v1535_v22 }
 0x6c7   :  { %v4778_v57 = vpop.eup %4777 }
 0x6c8   :  { %1545 = vrot.lane.b32.xlu1 %v4778_v57, %s5081_s19 }
 0x6cb   :  { %v4780_v56 = vpop.eup %4779 }
 0x6cc   :  { %1644 = vrot.lane.b32.xlu0 %v4780_v56, %s5081_s19  ;;  %v4782_v0 = vpop.eup %4781 }
 0x6cd   :  { %v1347_v53 = vadd.f32 1.0, %v4782_v0 }
 0x6cf   :  { %4783 = vrcp.f32 %v1347_v53 }
 0x6d0   :  { %4785 = vpow2.f32 %v4057_v48  ;;  %v6514_v48 = vmov 0  }
 0x6d1   :  { %4787 = vpow2.f32 %v4061_v16  ;;  %v5582_v16 = vsel %vm971_vm8, %v5425_v24, %v5421_v3  ;;  %v5596_v3 = vsel %vm971_vm8, %v5438_v50, %v5434_v4  ;;  %v5617_v50 = vsel %vm1163_vm9, %v5458_v52, %v5453_v59  ;;  %v4667_v52 = vld [vmem:[#allocation7 + $0x10] sm:$0xff]  }
 0x6d2   :  { %4789 = vpow2.f32 %v4065_v21  ;;  %4436 = vmatpush3.bf16.msra.mxu1 %v4667_v52 }
 0x6d9   :  { %v5560_v35 = vpop.eup %4783 }
 0x6da   :  { %v4786_v25 = vpop.eup %4785  ;;  %v1351_v21 = vmul.f32 %v5560_v35, %v5582_v16 }
 0x6db   :  { %v1446_v6 = vadd.f32 1.0, %v4786_v25  ;;  %v4788_v27 = vpop.eup %4787 }
 0x6dc   :  { %v1539_v41 = vadd.f32 1.0, %v4788_v27  ;;  %v4790_v2 = vpop.eup %4789 }
 0x6dd   :  { %4791 = vrcp.f32 %v1446_v6  ;;  %v1638_v8 = vadd.f32 1.0, %v4790_v2 }
 0x6de   :  { %4793 = vrcp.f32 %v1539_v41  ;;  %v1561_v41 = vsel %vm1560_vm11, 1, %v6514_v48 }
 0x6df   :  { %4795 = vrcp.f32 %v1638_v8 }
 0x6e7   :  { %v5564_v11 = vpop.eup %4791 }
 0x6e8   :  { %v5568_v22 = vpop.eup %4793  ;;  %v1450_v24 = vmul.f32 %v5564_v11, %v5596_v3 }
 0x6e9   :  { %v5573_v0 = vpop.eup %4795 }
 0x6ea   :  { %v1642_v55 = vmul.f32 %v5573_v0, %v5617_v50 }
 0x717   :  { %v1354_v54 = vpop.permute.xlu1 %1353 }
 0x718   :  { %v1356_v58 = vmul.f32 %v5560_v35, %v1354_v54  ;;  %v1369_v54 = vsel %vm1368_vm10, 1, %v6514_v48 }
 0x71a   :  { %1358 = vrot.lane.b32.xlu1 %v1356_v58, %s5087_s4 }
 0x736   :  { %v1453_v57 = vpop.permute.xlu0 %1452 }
 0x737   :  { %v1455_v56 = vmul.f32 %v5564_v11, %v1453_v57  ;;  %v1543_v57 = vmul.f32 %v5568_v22, %v5606_v60 }
 0x739   :  { %1457 = vrot.lane.b32.xlu0 %v1455_v56, %s5087_s4 }
 0x73a   :  { %v1546_v34 = vpop.permute.xlu1 %1545 }
 0x73b   :  { %v1548_v10 = vmul.f32 %v5568_v22, %v1546_v34 }
 0x73d   :  { %1550 = vrot.lane.b32.xlu1 %v1548_v10, %s5087_s4 }
 0x73e   :  { %v1645_v53 = vpop.permute.xlu0 %1644 }
 0x73f   :  { %v1647_v58 = vmul.f32 %v5573_v0, %v1645_v53  ;;  %v4665_v53 = vld [vmem:[#allocation7] sm:$0xff]  }
 0x740   :  { %4428 = vmatpush3.bf16.msra.mxu0 %v4665_v53 }
 0x741   :  { %1371 = vperm.xlu1 %4617, %v1369_v54   ;;  %1649 = vrot.lane.b32.xlu0 %v1647_v58, %s5087_s4  ;;  %v4666_v54 = vld [vmem:[#allocation7 + $0x8] sm:$0xff]  }
 0x78c   :  { %v1359_v25 = vpop.permute.xlu1 %1358 }
 0x78d   :  { %v5586_v6 = vadd.f32 %v1359_v25, %v1351_v21  ;;  %v6515_v21 = vmov 0.0   ;;  %v4668_v25 = vld [vmem:[#allocation7 + $0x18] sm:$0xff]  }
 0x78e   :  { %4429 = vmatprep.subr.bf16.mxu0 %v6515_v21  ;;  %4437 = vmatprep.subr.bf16.mxu1 %v6515_v21 }
 0x78f   :  { %4797 = vtanh.f32 %v5586_v6  ;;  %4430 = vmatpush3.bf16.msra.mxu0 %v4666_v54  ;;  %4438 = vmatpush3.bf16.msra.mxu1 %v4668_v25 }
 0x790   :  { %4443 = vmatprep.subr.bf16.mxu0 %v6515_v21  ;;  %4451 = vmatprep.subr.bf16.mxu1 %v6515_v21 }
 0x799   :  { %v4798_v27 = vpop.eup %4797 }
 0x79a   :  { %1364 = vrot.lane.b32.xlu0 %v4798_v27, %s5081_s19 }
 0x79e   :  { %1563 = vperm.xlu0 %4616, %v1561_v41  }
 0x7ab   :  { %v1458_v2 = vpop.permute.xlu0 %1457 }
 0x7ac   :  { %v5600_v8 = vadd.f32 %v1458_v2, %v1450_v24 }
 0x7ae   :  { %4799 = vtanh.f32 %v5600_v8 }
 0x7af   :  { %v1551_v56 = vpop.permute.xlu1 %1550 }
 0x7b0   :  { %v5611_v4 = vadd.f32 %v1551_v56, %v1543_v57 }
 0x7b2   :  { %4801 = vtanh.f32 %v5611_v4 }
 0x7b3   :  { %v1650_v30 = vpop.permute.xlu0 %1649 }
 0x7b4   :  { %v5622_v34 = vadd.f32 %v1650_v30, %v1642_v55 }
 0x7b6   :  { %4803 = vtanh.f32 %v5622_v34 }
 0x7b8   :  { %v4800_v10 = vpop.eup %4799 }
 0x7b9   :  { %1463 = vrot.lane.b32.xlu1 %v4800_v10, %s5081_s19 }
 0x7bc   :  { %v4802_v58 = vpop.eup %4801 }
 0x7bd   :  { %1556 = vrot.lane.b32.xlu1 %v4802_v58, %s5081_s19 }
 0x7c0   :  { %v4804_v59 = vpop.eup %4803  ;;  %v5631_v27 = vpop.permute.xlu1 %1371 }
 0x7c1   :  { %1655 = vrot.lane.b32.xlu0 %v4804_v59, %s5081_s19  ;;  %vm1373_vm12 = vcmp.eq.s32.totalorder %v5631_v27, 1 }
 0x80c   :  { %v1365_v41 = vpop.permute.xlu0 %1364 }
 0x80d   :  { %v1367_v24 = vmul.f32 %v5560_v35, %v1365_v41 }
 0x80f   :  { %v5639_v2 = vsel %vm1373_vm12, %v1367_v24, %v5475_v45  ;;  %v1374_v55 = vsel %vm1373_vm12, %v1367_v24, 0.0 }
 0x810   :  { %v1682_v57 = vpack.c.bf16 %v5639_v2, %v5639_v2  ;;  %v1662_v53 = vmul.f32 %v1374_v55, %v5489_v44 }
 0x812   :  { %1688 = vrot.lane.b32.xlu1 %v1682_v57, %s5087_s4 }
 0x81d   :  { %v5647_v10 = vpop.permute.xlu0 %1563 }
 0x81e   :  { %vm1565_vm13 = vcmp.eq.s32.totalorder %v5647_v10, 1 }
 0x82b   :  { %v1464_v56 = vpop.permute.xlu1 %1463 }
 0x82c   :  { %v1466_v30 = vmul.f32 %v5564_v11, %v1464_v56 }
 0x82e   :  { %v1467_v35 = vsel %vm1373_vm12, %v1466_v30, 0.0  ;;  %v5654_v45 = vsel %vm1373_vm12, %v1466_v30, %v5500_v13 }
 0x82f   :  { %v1663_v54 = vmul.f32 %v1467_v35, %v5491_v19  ;;  %v1557_v58 = vpop.permute.xlu1 %1556  ;;  %v1781_v59 = vpack.c.bf16 %v5654_v45, %v5654_v45  ;;  %v4669_v35 = vld [vmem:[#allocation7 + $0x20] sm:$0xff]  }
 0x830   :  { %v1559_v11 = vmul.f32 %v5568_v22, %v1557_v58 }
 0x831   :  { %v5662_v52 = vadd.f32 %v1663_v54, %v1662_v53  ;;  %1787 = vrot.lane.b32.xlu0 %v1781_v59, %s5087_s4  ;;  %v4670_v54 = vld [vmem:[#allocation7 + $0x28] sm:$0xff]   ;;  %v4672_v59 = vld [vmem:[#allocation7 + $0x38] sm:$0xff]  }
 0x832   :  { %v5668_v13 = vsel %vm1565_vm13, %v1559_v11, %v5514_v14  ;;  %v1566_v24 = vsel %vm1565_vm13, %v1559_v11, 0.0 }
 0x833   :  { %v1656_v25 = vpop.permute.xlu0 %1655  ;;  %v1874_v41 = vpack.c.bf16 %v5668_v13, %v5668_v13  ;;  %v1671_v14 = vmul.f32 %v1566_v24, %v5489_v44 }
 0x834   :  { %v1658_v22 = vmul.f32 %v5573_v0, %v1656_v25 }
 0x835   :  { %1880 = vrot.lane.b32.xlu1 %v1874_v41, %s5087_s4 }
 0x836   :  { %v1659_v57 = vsel %vm1565_vm13, %v1658_v22, 0.0  ;;  %v5681_v56 = vsel %vm1565_vm13, %v1658_v22, %v5527_v39  ;;  %v4671_v39 = vld [vmem:[#allocation7 + $0x30] sm:$0xff]  }
 0x837   :  { %v1672_v55 = vmul.f32 %v1659_v57, %v5491_v19  ;;  %v1973_v30 = vpack.c.bf16 %v5681_v56, %v5681_v56 }
 0x839   :  { %1979 = vrot.lane.b32.xlu0 %v1973_v30, %s5087_s4  ;;  %v5688_v0 = vadd.f32 %v1672_v55, %v1671_v14 }
 0x884   :  { %v1689_v53 = vpop.permute.xlu1 %1688 }
 0x885   :  { %4432 = vmatmul.mubr.msk.bf16.vlgmr.msra.gmra.mrb[32].mxu0 %vm117_vm0, %v1689_v53 }
 0x886   :  { %4444 = vmatpush3.bf16.msra.mxu0 %v4669_v35  ;;  %4447 = vmatprep.mubr.msk.bf16.mxu0 %vm5086_vm1, %v6515_v21 }
 0x887   :  { %4445 = vmatprep.subr.bf16.mxu0 %v6515_v21 }
 0x88a   :  { %4446 = vmatpush3.bf16.msra.mxu0 %v4670_v54 }
 0x88b   :  { %4459 = vmatprep.subr.bf16.mxu0 %v6515_v21 }
 0x8a3   :  { %v1788_v58 = vpop.permute.xlu0 %1787 }
 0x8a4   :  { %4440 = vmatmul.mubr.msk.bf16.vlgmr.msra.gmra.mrb[48].mxu1 %vm117_vm0, %v1788_v58 }
 0x8a5   :  { %4452 = vmatpush3.bf16.msra.mxu1 %v4671_v39  ;;  %4455 = vmatprep.mubr.msk.bf16.mxu1 %vm5086_vm1, %v6515_v21 }
 0x8a6   :  { %4453 = vmatprep.subr.bf16.mxu1 %v6515_v21 }
 0x8a7   :  { %v1881_v11 = vpop.permute.xlu1 %1880 }
 0x8a8   :  { %4448 = vmatmul.mubr.msk.bf16.vlgmr.msra.gmra.mrb[36].mxu0 %vm117_vm0, %v1881_v11 }
 0x8a9   :  { %4454 = vmatpush3.bf16.msra.mxu1 %v4672_v59  ;;  %4463 = vmatprep.mubr.msk.bf16.mxu0 %vm5086_vm1, %v6515_v21 }
 0x8aa   :  { %4467 = vmatprep.subr.bf16.mxu1 %v6515_v21 }
 0x8ab   :  { %v1980_v25 = vpop.permute.xlu0 %1979 }
 0x8ac   :  { %4456 = vmatmul.mubr.msk.bf16.vlgmr.msra.gmra.mrb[52].mxu1 %vm117_vm0, %v1980_v25 }
 0x8ad   :  { %4471 = vmatprep.mubr.msk.bf16.mxu1 %vm5086_vm1, %v6515_v21 }
 0x958   :  { %v1739_v41 = vpop.f32.mrb[32].mxu0 }
 0x959   :  { %v1745_v24 = vadd.f32 %v1739_v41, %v5237_v31  ;;  %v4433_v22 = vpop.f32.mrb[33].mxu0 }
 0x95a   :  { %v1742_v57 = vpop.f32.mrb[34].mxu0 }
 0x95b   :  { %4805 = vtanh.f32 %v1745_v24  ;;  %v4434_v14 = vpop.f32.mrb[35].mxu0 }
 0x965   :  { %v4806_v55 = vpop.eup %4805 }
 0x966   :  { %1755 = vrot.lane.b32.xlu1 %v4806_v55, %s5081_s19 }
 0x977   :  { %v1838_v30 = vpop.f32.mrb[48].mxu1 }
 0x978   :  { %v1844_v35 = vadd.f32 %v1838_v30, %v5266_v63  ;;  %v4441_v53 = vpop.f32.mrb[49].mxu1 }
 0x979   :  { %v1841_v54 = vpop.f32.mrb[50].mxu1 }
 0x97a   :  { %4807 = vtanh.f32 %v1844_v35  ;;  %v4442_v39 = vpop.f32.mrb[51].mxu1 }
 0x97b   :  { %v1931_v58 = vpop.f32.mrb[36].mxu0 }
 0x97c   :  { %v1937_v59 = vadd.f32 %v1931_v58, %v5255_v49  ;;  %v4449_v11 = vpop.f32.mrb[37].mxu0  ;;  %v4069_v49 = vmul.f32 -1.442695, %v1745_v24 }
 0x97d   :  { %v1934_v25 = vpop.f32.mrb[38].mxu0 }
 0x97e   :  { %4809 = vtanh.f32 %v1937_v59  ;;  %v4450_v31 = vpop.f32.mrb[39].mxu0 }
 0x97f   :  { %v2030_v41 = vpop.f32.mrb[52].mxu1 }
 0x980   :  { %v2036_v22 = vadd.f32 %v2030_v41, %v5293_v42  ;;  %v4457_v57 = vpop.f32.mrb[53].mxu1  ;;  %v4073_v42 = vmul.f32 -1.442695, %v1844_v35 }
 0x981   :  { %v2033_v14 = vpop.f32.mrb[54].mxu1 }
 0x982   :  { %4811 = vtanh.f32 %v2036_v22  ;;  %v4458_v55 = vpop.f32.mrb[55].mxu1  ;;  %v4081_v25 = vmul.f32 -1.442695, %v2036_v22 }
 0x983   :  { %4813 = vpow2.f32 %v4069_v49 }
 0x984   :  { %v4808_v61 = vpop.eup %4807 }
 0x985   :  { %1854 = vrot.lane.b32.xlu0 %v4808_v61, %s5081_s19  ;;  %v4077_v61 = vmul.f32 -1.442695, %v1937_v59 }
 0x988   :  { %v4810_v63 = vpop.eup %4809 }
 0x989   :  { %1947 = vrot.lane.b32.xlu1 %v4810_v63, %s5081_s19 }
 0x98c   :  { %v4812_v30 = vpop.eup %4811 }
 0x98d   :  { %2046 = vrot.lane.b32.xlu0 %v4812_v30, %s5081_s19  ;;  %v4814_v53 = vpop.eup %4813 }
 0x98e   :  { %v1749_v54 = vadd.f32 1.0, %v4814_v53  ;;  %v4983_v53 = vld [vmem:[%s6497_s1] sm:$0xff] }
 0x98f   :  { %vm1770_vm14 = vcmp.gt.s32.totalorder %v4983_v53, 3  ;;  %vm1962_vm15 = vcmp.gt.s32.totalorder %v4983_v53, 4 }
 0x990   :  { %4815 = vrcp.f32 %v1749_v54 }
 0x991   :  { %4817 = vpow2.f32 %v4073_v42 }
 0x992   :  { %4819 = vpow2.f32 %v4077_v61  ;;  %v5738_v61 = vsel %vm1373_vm12, %v5586_v6, %v5582_v16  ;;  %v5751_v16 = vsel %vm1373_vm12, %v5600_v8, %v5596_v3  ;;  %v5772_v8 = vsel %vm1565_vm13, %v5622_v34, %v5617_v50  ;;  %v4675_v34 = vld [vmem:[#allocation7 + $0x10] sm:$0xff]  }
 0x993   :  { %4821 = vpow2.f32 %v4081_v25  ;;  %4468 = vmatpush3.bf16.msra.mxu1 %v4675_v34 }
 0x994   :  { %4469 = vmatprep.subr.bf16.mxu1 %v6515_v21 }
 0x99a   :  { %v5714_v39 = vpop.eup %4815 }
 0x99b   :  { %v4818_v31 = vpop.eup %4817  ;;  %v1753_v25 = vmul.f32 %v5714_v39, %v5738_v61 }
 0x99c   :  { %v1848_v41 = vadd.f32 1.0, %v4818_v31  ;;  %v4820_v24 = vpop.eup %4819 }
 0x99d   :  { %v1941_v57 = vadd.f32 1.0, %v4820_v24  ;;  %v4822_v14 = vpop.eup %4821 }
 0x99e   :  { %4823 = vrcp.f32 %v1848_v41  ;;  %v2040_v55 = vadd.f32 1.0, %v4822_v14 }
 0x99f   :  { %4825 = vrcp.f32 %v1941_v57  ;;  %v1963_v57 = vsel %vm1962_vm15, 1, %v6514_v48 }
 0x9a0   :  { %4827 = vrcp.f32 %v2040_v55 }
 0x9a8   :  { %v5718_v35 = vpop.eup %4823 }
 0x9a9   :  { %v5722_v59 = vpop.eup %4825  ;;  %v1852_v6 = vmul.f32 %v5718_v35, %v5751_v16 }
 0x9aa   :  { %v5729_v54 = vpop.eup %4827 }
 0x9d8   :  { %v1756_v58 = vpop.permute.xlu1 %1755 }
 0x9d9   :  { %v1758_v11 = vmul.f32 %v5714_v39, %v1756_v58  ;;  %v1771_v58 = vsel %vm1770_vm14, 1, %v6514_v48 }
 0x9db   :  { %1760 = vrot.lane.b32.xlu1 %v1758_v11, %s5087_s4 }
 0x9f7   :  { %v1855_v63 = vpop.permute.xlu0 %1854 }
 0x9f8   :  { %v1857_v30 = vmul.f32 %v5718_v35, %v1855_v63  ;;  %v5761_v63 = vsel %vm1565_vm13, %v5611_v4, %v5606_v60  ;;  %v2044_v60 = vmul.f32 %v5729_v54, %v5772_v8 }
 0x9fa   :  { %1859 = vrot.lane.b32.xlu0 %v1857_v30, %s5087_s4  ;;  %v1945_v30 = vmul.f32 %v5722_v59, %v5761_v63 }
 0x9fb   :  { %v1948_v22 = vpop.permute.xlu1 %1947 }
 0x9fc   :  { %v1950_v49 = vmul.f32 %v5722_v59, %v1948_v22 }
 0x9fe   :  { %1952 = vrot.lane.b32.xlu1 %v1950_v49, %s5087_s4 }
 0x9ff   :  { %v2047_v42 = vpop.permute.xlu0 %2046 }
 0xa00   :  { %v2049_v11 = vmul.f32 %v5729_v54, %v2047_v42  ;;  %v4673_v42 = vld [vmem:[#allocation7] sm:$0xff]  }
 0xa01   :  { %4460 = vmatpush3.bf16.msra.mxu0 %v4673_v42 }
 0xa02   :  { %1773 = vperm.xlu1 %4617, %v1771_v58   ;;  %2051 = vrot.lane.b32.xlu0 %v2049_v11, %s5087_s4  ;;  %v4674_v58 = vld [vmem:[#allocation7 + $0x8] sm:$0xff]  }
 0xa03   :  { %4461 = vmatprep.subr.bf16.mxu0 %v6515_v21 }
 0xa05   :  { %4462 = vmatpush3.bf16.msra.mxu0 %v4674_v58 }
 0xa06   :  { %4475 = vmatprep.subr.bf16.mxu0 %v6515_v21 }
 0xa4d   :  { %v1761_v31 = vpop.permute.xlu1 %1760 }
 0xa4e   :  { %v5742_v41 = vadd.f32 %v1761_v31, %v1753_v25  ;;  %v4676_v25 = vld [vmem:[#allocation7 + $0x18] sm:$0xff]  }
 0xa4f   :  { %4470 = vmatpush3.bf16.msra.mxu1 %v4676_v25 }
 0xa50   :  { %4829 = vtanh.f32 %v5742_v41  ;;  %4483 = vmatprep.subr.bf16.mxu1 %v6515_v21 }
 0xa5a   :  { %v4830_v24 = vpop.eup %4829 }
 0xa5b   :  { %1766 = vrot.lane.b32.xlu0 %v4830_v24, %s5081_s19 }
 0xa5f   :  { %1965 = vperm.xlu0 %4616, %v1963_v57  }
 0xa6c   :  { %v1860_v14 = vpop.permute.xlu0 %1859 }
 0xa6d   :  { %v5755_v55 = vadd.f32 %v1860_v14, %v1852_v6 }
 0xa6f   :  { %4831 = vtanh.f32 %v5755_v55 }
 0xa70   :  { %v1953_v22 = vpop.permute.xlu1 %1952 }
 0xa71   :  { %v5766_v3 = vadd.f32 %v1953_v22, %v1945_v30 }
 0xa73   :  { %4833 = vtanh.f32 %v5766_v3 }
 0xa74   :  { %v2052_v4 = vpop.permute.xlu0 %2051 }
 0xa75   :  { %v5777_v49 = vadd.f32 %v2052_v4, %v2044_v60 }
 0xa77   :  { %4835 = vtanh.f32 %v5777_v49 }
 0xa79   :  { %v4832_v53 = vpop.eup %4831 }
 0xa7a   :  { %1865 = vrot.lane.b32.xlu1 %v4832_v53, %s5081_s19 }
 0xa7d   :  { %v4834_v11 = vpop.eup %4833 }
 0xa7e   :  { %1958 = vrot.lane.b32.xlu1 %v4834_v11, %s5081_s19 }
 0xa81   :  { %v4836_v50 = vpop.eup %4835  ;;  %v5786_v31 = vpop.permute.xlu1 %1773 }
 0xa82   :  { %2057 = vrot.lane.b32.xlu0 %v4836_v50, %s5081_s19  ;;  %vm1775_vm2 = vcmp.eq.s32.totalorder %v5786_v31, 1 }
 0xacd   :  { %v1767_v24 = vpop.permute.xlu0 %1766 }
 0xace   :  { %v1769_v57 = vmul.f32 %v5714_v39, %v1767_v24 }
 0xad0   :  { %v5794_v6 = vsel %vm1775_vm2, %v1769_v57, %v5639_v2  ;;  %v1776_v22 = vsel %vm1775_vm2, %v1769_v57, 0.0 }
 0xad1   :  { %v2084_v14 = vpack.c.bf16 %v5794_v6, %v5794_v6  ;;  %v2064_v53 = vmul.f32 %v1776_v22, %v5489_v44 }
 0xad3   :  { %2090 = vrot.lane.b32.xlu1 %v2084_v14, %s5087_s4 }
 0xade   :  { %v5802_v4 = vpop.permute.xlu0 %1965 }
 0xadf   :  { %vm1967_vm3 = vcmp.eq.s32.totalorder %v5802_v4, 1 }
 0xaec   :  { %v1866_v30 = vpop.permute.xlu1 %1865 }
 0xaed   :  { %v1868_v60 = vmul.f32 %v5718_v35, %v1866_v30 }
 0xaef   :  { %v1869_v39 = vsel %vm1775_vm2, %v1868_v60, 0.0  ;;  %v5809_v2 = vsel %vm1775_vm2, %v1868_v60, %v5654_v45  ;;  %v4677_v60 = vld [vmem:[#allocation7 + $0x20] sm:$0xff]  }
 0xaf0   :  { %v2065_v42 = vmul.f32 %v1869_v39, %v5491_v19  ;;  %v1959_v58 = vpop.permute.xlu1 %1958  ;;  %v2177_v11 = vpack.c.bf16 %v5809_v2, %v5809_v2 }
 0xaf1   :  { %v1961_v35 = vmul.f32 %v5722_v59, %v1959_v58  ;;  %v4680_v58 = vld [vmem:[#allocation7 + $0x38] sm:$0xff]  }
 0xaf2   :  { %v5817_v50 = vadd.f32 %v2065_v42, %v2064_v53  ;;  %2183 = vrot.lane.b32.xlu0 %v2177_v11, %s5087_s4  ;;  %v4678_v53 = vld [vmem:[#allocation7 + $0x28] sm:$0xff]  }
 0xaf3   :  { %v5823_v45 = vsel %vm1967_vm3, %v1961_v35, %v5668_v13  ;;  %v1968_v24 = vsel %vm1967_vm3, %v1961_v35, 0.0 }
 0xaf4   :  { %v2058_v34 = vpop.permute.xlu0 %2057  ;;  %v2270_v25 = vpack.c.bf16 %v5823_v45, %v5823_v45  ;;  %v2073_v13 = vmul.f32 %v1968_v24, %v5489_v44 }
 0xaf5   :  { %v2060_v59 = vmul.f32 %v5729_v54, %v2058_v34 }
 0xaf6   :  { %2276 = vrot.lane.b32.xlu1 %v2270_v25, %s5087_s4 }
 0xaf7   :  { %v2061_v57 = vsel %vm1967_vm3, %v2060_v59, 0.0  ;;  %v5836_v14 = vsel %vm1967_vm3, %v2060_v59, %v5681_v56  ;;  %v4679_v56 = vld [vmem:[#allocation7 + $0x30] sm:$0xff]  }
 0xaf8   :  { %v2074_v30 = vmul.f32 %v2061_v57, %v5491_v19  ;;  %v2363_v22 = vpack.c.bf16 %v5836_v14, %v5836_v14 }
 0xafa   :  { %2369 = vrot.lane.b32.xlu0 %v2363_v22, %s5087_s4  ;;  %v5843_v54 = vadd.f32 %v2074_v30, %v2073_v13 }
 0xb45   :  { %v2091_v39 = vpop.permute.xlu1 %2090 }
 0xb46   :  { %4464 = vmatmul.mubr.msk.bf16.vlgmr.msra.gmra.mrb[40].mxu0 %vm117_vm0, %v2091_v39 }
 0xb47   :  { %4476 = vmatpush3.bf16.msra.mxu0 %v4677_v60  ;;  %4479 = vmatprep.mubr.msk.bf16.mxu0 %vm5086_vm1, %v6515_v21 }
 0xb48   :  { %4477 = vmatprep.subr.bf16.mxu0 %v6515_v21 }
 0xb4b   :  { %4478 = vmatpush3.bf16.msra.mxu0 %v4678_v53 }
 0xb4c   :  { %4491 = vmatprep.subr.bf16.mxu0 %v6515_v21 }
 0xb64   :  { %v2184_v42 = vpop.permute.xlu0 %2183 }
 0xb65   :  { %4472 = vmatmul.mubr.msk.bf16.vlgmr.msra.gmra.mrb[56].mxu1 %vm117_vm0, %v2184_v42 }
 0xb66   :  { %4484 = vmatpush3.bf16.msra.mxu1 %v4679_v56  ;;  %4487 = vmatprep.mubr.msk.bf16.mxu1 %vm5086_vm1, %v6515_v21 }
 0xb67   :  { %4485 = vmatprep.subr.bf16.mxu1 %v6515_v21 }
 0xb68   :  { %v2277_v11 = vpop.permute.xlu1 %2276 }
 0xb69   :  { %4480 = vmatmul.mubr.msk.bf16.vlgmr.msra.gmra.mrb[44].mxu0 %vm117_vm0, %v2277_v11 }
 0xb6a   :  { %4486 = vmatpush3.bf16.msra.mxu1 %v4680_v58  ;;  %4495 = vmatprep.mubr.msk.bf16.mxu0 %vm5086_vm1, %v6515_v21 }
 0xb6b   :  { %4499 = vmatprep.subr.bf16.mxu1 %v6515_v21 }
 0xb6c   :  { %v2370_v35 = vpop.permute.xlu0 %2369 }
 0xb6d   :  { %4488 = vmatmul.mubr.msk.bf16.vlgmr.msra.gmra.mrb[60].mxu1 %vm117_vm0, %v2370_v35 }
 0xb6e   :  { %4503 = vmatprep.mubr.msk.bf16.mxu1 %vm5086_vm1, %v6515_v21 }
 0xc19   :  { %v2141_v34 = vpop.f32.mrb[40].mxu0 }
 0xc1a   :  { %v2147_v25 = vadd.f32 %v2141_v34, %v5249_v43  ;;  %v4465_v24 = vpop.f32.mrb[41].mxu0 }
 0xc1b   :  { %v2144_v59 = vpop.f32.mrb[42].mxu0 }
 0xc1c   :  { %4837 = vtanh.f32 %v2147_v25  ;;  %v4466_v57 = vpop.f32.mrb[43].mxu0 }
 0xc26   :  { %v4838_v13 = vpop.eup %4837 }
 0xc27   :  { %2157 = vrot.lane.b32.xlu1 %v4838_v13, %s5081_s19 }
 0xc38   :  { %v2234_v30 = vpop.f32.mrb[56].mxu1 }
 0xc39   :  { %v2240_v22 = vadd.f32 %v2234_v30, %v5272_v12  ;;  %v4473_v60 = vpop.f32.mrb[57].mxu1 }
 0xc3a   :  { %v2237_v39 = vpop.f32.mrb[58].mxu1 }
 0xc3b   :  { %4839 = vtanh.f32 %v2240_v22  ;;  %v4474_v53 = vpop.f32.mrb[59].mxu1 }
 0xc3c   :  { %v2327_v56 = vpop.f32.mrb[44].mxu0 }
 0xc3d   :  { %v2333_v42 = vadd.f32 %v2327_v56, %v5243_v36  ;;  %v4481_v58 = vpop.f32.mrb[45].mxu0  ;;  %v4085_v36 = vmul.f32 -1.442695, %v2147_v25 }
 0xc3e   :  { %v2330_v11 = vpop.f32.mrb[46].mxu0 }
 0xc3f   :  { %4841 = vtanh.f32 %v2333_v42  ;;  %v4482_v43 = vpop.f32.mrb[47].mxu0  ;;  %v4093_v11 = vmul.f32 -1.442695, %v2333_v42 }
 0xc40   :  { %v2420_v35 = vpop.f32.mrb[60].mxu1 }
 0xc41   :  { %v2426_v34 = vadd.f32 %v2420_v35, %v5286_v28  ;;  %v4489_v24 = vpop.f32.mrb[61].mxu1  ;;  %v4089_v28 = vmul.f32 -1.442695, %v2240_v22 }
 0xc42   :  { %v2423_v59 = vpop.f32.mrb[62].mxu1 }
 0xc43   :  { %4843 = vtanh.f32 %v2426_v34  ;;  %v4490_v57 = vpop.f32.mrb[63].mxu1  ;;  %v4097_v43 = vmul.f32 -1.442695, %v2426_v34 }
 0xc44   :  { %4845 = vpow2.f32 %v4085_v36 }
 0xc45   :  { %v4840_v13 = vpop.eup %4839 }
 0xc46   :  { %2250 = vrot.lane.b32.xlu0 %v4840_v13, %s5081_s19 }
 0xc49   :  { %v4842_v12 = vpop.eup %4841 }
 0xc4a   :  { %2343 = vrot.lane.b32.xlu1 %v4842_v12, %s5081_s19 }
 0xc4d   :  { %v4844_v30 = vpop.eup %4843 }
 0xc4e   :  { %2436 = vrot.lane.b32.xlu0 %v4844_v30, %s5081_s19  ;;  %v4846_v60 = vpop.eup %4845 }
 0xc4f   :  { %v2151_v39 = vadd.f32 1.0, %v4846_v60 }
 0xc51   :  { %4847 = vrcp.f32 %v2151_v39 }
 0xc52   :  { %4849 = vpow2.f32 %v4089_v28 }
 0xc53   :  { %4851 = vpow2.f32 %v4093_v11 }
 0xc54   :  { %4853 = vpow2.f32 %v4097_v43 }
 0xc5b   :  { %v5869_v53 = vpop.eup %4847 }
 0xc5c   :  { %v4850_v35 = vpop.eup %4849 }
 0xc5d   :  { %v2244_v24 = vadd.f32 1.0, %v4850_v35  ;;  %v4852_v25 = vpop.eup %4851 }
 0xc5e   :  { %v2337_v59 = vadd.f32 1.0, %v4852_v25  ;;  %v4854_v57 = vpop.eup %4853 }
 0xc5f   :  { %4855 = vrcp.f32 %v2244_v24  ;;  %v2430_v13 = vadd.f32 1.0, %v4854_v57  ;;  %v5895_v24 = vsel %vm1775_vm2, %v5755_v55, %v5751_v16  ;;  %v5914_v16 = vsel %vm1967_vm3, %v5777_v49, %v5772_v8  ;;  %v4683_v49 = vld [vmem:[#allocation7 + $0x10] sm:$0xff]  }
 0xc60   :  { %4857 = vrcp.f32 %v2337_v59  ;;  %v5904_v59 = vsel %vm1967_vm3, %v5766_v3, %v5761_v63  ;;  %4500 = vmatpush3.bf16.msra.mxu1 %v4683_v49 }
 0xc61   :  { %4859 = vrcp.f32 %v2430_v13  ;;  %4501 = vmatprep.subr.bf16.mxu1 %v6515_v21 }
 0xc69   :  { %v4856_v22 = vpop.eup %4855 }
 0xc6a   :  { %v4858_v36 = vpop.eup %4857 }
 0xc6b   :  { %v5875_v34 = vpop.eup %4859  ;;  %v2341_v57 = vmul.f32 %v4858_v36, %v5904_v59 }
 0xc6c   :  { %v2434_v55 = vmul.f32 %v5875_v34, %v5914_v16 }
 0xc99   :  { %v2158_v56 = vpop.permute.xlu1 %2157 }
 0xc9a   :  { %v2160_v58 = vmul.f32 %v5869_v53, %v2158_v56  ;;  %v5883_v56 = vsel %vm1775_vm2, %v5742_v41, %v5738_v61  ;;  %v2248_v61 = vmul.f32 %v4856_v22, %v5895_v24 }
 0xc9c   :  { %2162 = vrot.lane.b32.xlu1 %v2160_v58, %s5087_s4  ;;  %v2155_v58 = vmul.f32 %v5869_v53, %v5883_v56 }
 0xcb8   :  { %v2251_v12 = vpop.permute.xlu0 %2250 }
 0xcb9   :  { %v2253_v30 = vmul.f32 %v4856_v22, %v2251_v12 }
 0xcbb   :  { %2255 = vrot.lane.b32.xlu0 %v2253_v30, %s5087_s4 }
 0xcbc   :  { %v2344_v60 = vpop.permute.xlu1 %2343 }
 0xcbd   :  { %v2346_v42 = vmul.f32 %v4858_v36, %v2344_v60  ;;  %v4681_v60 = vld [vmem:[#allocation7] sm:$0xff]  }
 0xcbe   :  { %4492 = vmatpush3.bf16.msra.mxu0 %v4681_v60 }
 0xcbf   :  { %2348 = vrot.lane.b32.xlu1 %v2346_v42, %s5087_s4  ;;  %v4682_v42 = vld [vmem:[#allocation7 + $0x8] sm:$0xff]   ;;  %4493 = vmatprep.subr.bf16.mxu0 %v6515_v21 }
 0xcc0   :  { %v2437_v39 = vpop.permute.xlu0 %2436 }
 0xcc1   :  { %v2439_v28 = vmul.f32 %v5875_v34, %v2437_v39 }
 0xcc2   :  { %4494 = vmatpush3.bf16.msra.mxu0 %v4682_v42 }
 0xcc3   :  { %2441 = vrot.lane.b32.xlu0 %v2439_v28, %s5087_s4  ;;  %4507 = vmatprep.subr.bf16.mxu0 %v6515_v21  ;;  %v4684_v28 = vld [vmem:[#allocation7 + $0x18] sm:$0xff]  }
 0xcc4   :  { %4502 = vmatpush3.bf16.msra.mxu1 %v4684_v28 }
 0xcc5   :  { %4515 = vmatprep.subr.bf16.mxu1 %v6515_v21 }
 0xd0e   :  { %v2163_v11 = vpop.permute.xlu1 %2162 }
 0xd0f   :  { %v5887_v43 = vadd.f32 %v2163_v11, %v2155_v58 }
 0xd11   :  { %4861 = vtanh.f32 %v5887_v43 }
 0xd1b   :  { %v4862_v35 = vpop.eup %4861 }
 0xd1c   :  { %2168 = vrot.lane.b32.xlu1 %v4862_v35, %s5081_s19 }
 0xd2d   :  { %v2256_v41 = vpop.permute.xlu0 %2255 }
 0xd2e   :  { %v5898_v25 = vadd.f32 %v2256_v41, %v2248_v61 }
 0xd30   :  { %4863 = vtanh.f32 %v5898_v25 }
 0xd31   :  { %v2349_v13 = vpop.permute.xlu1 %2348 }
 0xd32   :  { %v5908_v12 = vadd.f32 %v2349_v13, %v2341_v57 }
 0xd34   :  { %4865 = vtanh.f32 %v5908_v12 }
 0xd35   :  { %v2442_v63 = vpop.permute.xlu0 %2441 }
 0xd36   :  { %v5919_v3 = vadd.f32 %v2442_v63, %v2434_v55 }
 0xd38   :  { %4867 = vtanh.f32 %v5919_v3 }
 0xd3a   :  { %v4864_v30 = vpop.eup %4863 }
 0xd3b   :  { %2261 = vrot.lane.b32.xlu0 %v4864_v30, %s5081_s19 }
 0xd3e   :  { %v4866_v39 = vpop.eup %4865 }
 0xd3f   :  { %2354 = vrot.lane.b32.xlu1 %v4866_v39, %s5081_s19 }
 0xd42   :  { %v4868_v8 = vpop.eup %4867 }
 0xd43   :  { %2447 = vrot.lane.b32.xlu0 %v4868_v8, %s5081_s19 }
 0xd8e   :  { %v2169_v58 = vpop.permute.xlu1 %2168 }
 0xd8f   :  { %v2171_v11 = vmul.f32 %v5869_v53, %v2169_v58 }
 0xd91   :  { %v5933_v35 = vsel %vm1967_vm3, %v2171_v11, %v5794_v6  ;;  %v2172_v57 = vsel %vm1967_vm3, %v2171_v11, 0.0 }
 0xd92   :  { %v2472_v61 = vpack.c.bf16 %v5933_v35, %v5933_v35  ;;  %v2454_v6 = vmul.f32 %v2172_v57, %v5489_v44 }
 0xd94   :  { %2478 = vrot.lane.b32.xlu1 %v2472_v61, %s5087_s4 }
 0xdad   :  { %v2262_v41 = vpop.permute.xlu0 %2261 }
 0xdae   :  { %v2264_v13 = vmul.f32 %v4856_v22, %v2262_v41  ;;  %v4685_v41 = vld [vmem:[#allocation7 + $0x20] sm:$0xff]  }
 0xdb0   :  { %v2265_v55 = vsel %vm1967_vm3, %v2264_v13, 0.0  ;;  %v5945_v53 = vsel %vm1967_vm3, %v2264_v13, %v5809_v2  ;;  %v4686_v13 = vld [vmem:[#allocation7 + $0x28] sm:$0xff]  }
 0xdb1   :  { %v2455_v63 = vmul.f32 %v2265_v55, %v5491_v19  ;;  %v2355_v30 = vpop.permute.xlu1 %2354  ;;  %v2565_v60 = vpack.c.bf16 %v5945_v53, %v5945_v53 }
 0xdb2   :  { %v2357_v42 = vmul.f32 %v4858_v36, %v2355_v30 }
 0xdb3   :  { %v5951_v39 = vadd.f32 %v2455_v63, %v2454_v6  ;;  %2571 = vrot.lane.b32.xlu0 %v2565_v60, %s5087_s4  ;;  %v4688_v6 = vld [vmem:[#allocation7 + $0x38] sm:$0xff]  }
 0xdb4   :  { %v5957_v22 = vsel %vm1775_vm2, %v2357_v42, %v5823_v45  ;;  %v2358_v49 = vsel %vm1775_vm2, %v2357_v42, 0.0 }
 0xdb5   :  { %v2448_v2 = vpop.permute.xlu0 %2447  ;;  %v2658_v8 = vpack.c.bf16 %v5957_v22, %v5957_v22  ;;  %v2462_v45 = vmul.f32 %v2358_v49, %v5489_v44 }
 0xdb6   :  { %v2450_v28 = vmul.f32 %v5875_v34, %v2448_v2 }
 0xdb7   :  { %2664 = vrot.lane.b32.xlu1 %v2658_v8, %s5087_s4 }
 0xdb8   :  { %v2451_v36 = vsel %vm1775_vm2, %v2450_v28, 0.0  ;;  %v5970_v58 = vsel %vm1775_vm2, %v2450_v28, %v5836_v14  ;;  %v4687_v14 = vld [vmem:[#allocation7 + $0x30] sm:$0xff]  }
 0xdb9   :  { %v2463_v11 = vmul.f32 %v2451_v36, %v5491_v19  ;;  %v2751_v61 = vpack.c.bf16 %v5970_v58, %v5970_v58 }
 0xdbb   :  { %2757 = vrot.lane.b32.xlu0 %v2751_v61, %s5087_s4  ;;  %v5977_v34 = vadd.f32 %v2463_v11, %v2462_v45 }
 0xe06   :  { %v2479_v57 = vpop.permute.xlu1 %2478 }
 0xe07   :  { %4496 = vmatmul.mubr.msk.bf16.vlgmr.msra.gmra.mrb[48].mxu0 %vm117_vm0, %v2479_v57 }
 0xe08   :  { %4508 = vmatpush3.bf16.msra.mxu0 %v4685_v41  ;;  %4511 = vmatprep.mubr.msk.bf16.mxu0 %vm5086_vm1, %v6515_v21 }
 0xe09   :  { %4509 = vmatprep.subr.bf16.mxu0 %v6515_v21 }
 0xe0c   :  { %4510 = vmatpush3.bf16.msra.mxu0 %v4686_v13 }
 0xe0d   :  { %4523 = vmatprep.subr.bf16.mxu0 %v6515_v21 }
 0xe25   :  { %v2572_v55 = vpop.permute.xlu0 %2571 }
 0xe26   :  { %4504 = vmatmul.mubr.msk.bf16.vlgmr.msra.gmra.mrb[64].mxu1 %vm117_vm0, %v2572_v55 }
 0xe27   :  { %4516 = vmatpush3.bf16.msra.mxu1 %v4687_v14  ;;  %4519 = vmatprep.mubr.msk.bf16.mxu1 %vm5086_vm1, %v6515_v21 }
 0xe28   :  { %4517 = vmatprep.subr.bf16.mxu1 %v6515_v21 }
 0xe29   :  { %v2665_v63 = vpop.permute.xlu1 %2664 }
 0xe2a   :  { %4512 = vmatmul.mubr.msk.bf16.vlgmr.msra.gmra.mrb[52].mxu0 %vm117_vm0, %v2665_v63 }
 0xe2b   :  { %4518 = vmatpush3.bf16.msra.mxu1 %v4688_v6  ;;  %4527 = vmatprep.mubr.msk.bf16.mxu0 %vm5086_vm1, %v6515_v21 }
 0xe2c   :  { %4531 = vmatprep.subr.bf16.mxu1 %v6515_v21 }
 0xe2d   :  { %v2758_v30 = vpop.permute.xlu0 %2757 }
 0xe2e   :  { %4520 = vmatmul.mubr.msk.bf16.vlgmr.msra.gmra.mrb[68].mxu1 %vm117_vm0, %v2758_v30 }
 0xe2f   :  { %4535 = vmatprep.mubr.msk.bf16.mxu1 %vm5086_vm1, %v6515_v21 }
 0xeda   :  { %v2529_v60 = vpop.f32.mrb[48].mxu0 }
 0xedb   :  { %v2535_v42 = vadd.f32 %v2529_v60, %v5257_v51  ;;  %v4497_v2 = vpop.f32.mrb[49].mxu0 }
 0xedc   :  { %v2532_v8 = vpop.f32.mrb[50].mxu0 }
 0xedd   :  { %4869 = vtanh.f32 %v2535_v42  ;;  %v4498_v49 = vpop.f32.mrb[51].mxu0 }
 0xee7   :  { %v4870_v28 = vpop.eup %4869 }
 0xee8   :  { %2545 = vrot.lane.b32.xlu1 %v4870_v28, %s5081_s19 }
 0xef9   :  { %v2622_v36 = vpop.f32.mrb[64].mxu1 }
 0xefa   :  { %v2628_v45 = vadd.f32 %v2622_v36, %v5276_v18  ;;  %v4505_v11 = vpop.f32.mrb[65].mxu1 }
 0xefb   :  { %v2625_v61 = vpop.f32.mrb[66].mxu1 }
 0xefc   :  { %4871 = vtanh.f32 %v2628_v45  ;;  %v4506_v41 = vpop.f32.mrb[67].mxu1 }
 0xefd   :  { %v2715_v57 = vpop.f32.mrb[52].mxu0 }
 0xefe   :  { %v2721_v13 = vadd.f32 %v2715_v57, %v5235_v29  ;;  %v4513_v14 = vpop.f32.mrb[53].mxu0  ;;  %v4101_v29 = vmul.f32 -1.442695, %v2535_v42 }
 0xeff   :  { %v2718_v55 = vpop.f32.mrb[54].mxu0 }
 0xf00   :  { %4873 = vtanh.f32 %v2721_v13  ;;  %v4514_v51 = vpop.f32.mrb[55].mxu0  ;;  %v4109_v57 = vmul.f32 -1.442695, %v2721_v13 }
 0xf01   :  { %v2808_v6 = vpop.f32.mrb[68].mxu1 }
 0xf02   :  { %v2814_v63 = vadd.f32 %v2808_v6, %v5282_v23  ;;  %v4521_v30 = vpop.f32.mrb[69].mxu1  ;;  %v4105_v23 = vmul.f32 -1.442695, %v2628_v45 }
 0xf03   :  { %v2811_v60 = vpop.f32.mrb[70].mxu1 }
 0xf04   :  { %4875 = vtanh.f32 %v2814_v63  ;;  %v4522_v2 = vpop.f32.mrb[71].mxu1  ;;  %v4113_v14 = vmul.f32 -1.442695, %v2814_v63 }
 0xf05   :  { %4877 = vpow2.f32 %v4101_v29 }
 0xf06   :  { %v4872_v8 = vpop.eup %4871 }
 0xf07   :  { %2638 = vrot.lane.b32.xlu0 %v4872_v8, %s5081_s19 }
 0xf0a   :  { %v4874_v18 = vpop.eup %4873 }
 0xf0b   :  { %2731 = vrot.lane.b32.xlu1 %v4874_v18, %s5081_s19 }
 0xf0e   :  { %v4876_v49 = vpop.eup %4875 }
 0xf0f   :  { %2824 = vrot.lane.b32.xlu0 %v4876_v49, %s5081_s19  ;;  %v4878_v28 = vpop.eup %4877 }
 0xf10   :  { %v2539_v36 = vadd.f32 1.0, %v4878_v28 }
 0xf12   :  { %4879 = vrcp.f32 %v2539_v36  ;;  %v6017_v36 = vsel %vm1967_vm3, %v5887_v43, %v5883_v56 }
 0xf13   :  { %4881 = vpow2.f32 %v4105_v23 }
 0xf14   :  { %4883 = vpow2.f32 %v4109_v57 }
 0xf15   :  { %4885 = vpow2.f32 %v4113_v14  ;;  %v6029_v14 = vsel %vm1967_vm3, %v5898_v25, %v5895_v24  ;;  %v6048_v24 = vsel %vm1775_vm2, %v5919_v3, %v5914_v16  ;;  %v4691_v3 = vld [vmem:[#allocation7 + $0x10] sm:$0xff]  }
 0xf16   :  { %4532 = vmatpush3.bf16.msra.mxu1 %v4691_v3 }
 0xf17   :  { %4533 = vmatprep.subr.bf16.mxu1 %v6515_v21 }
 0xf1c   :  { %v6003_v11 = vpop.eup %4879 }
 0xf1d   :  { %v4882_v55 = vpop.eup %4881  ;;  %v2543_v23 = vmul.f32 %v6003_v11, %v6017_v36 }
 0xf1e   :  { %v2632_v51 = vadd.f32 1.0, %v4882_v55  ;;  %v4884_v42 = vpop.eup %4883 }
 0xf1f   :  { %v2725_v6 = vadd.f32 1.0, %v4884_v42  ;;  %v4886_v30 = vpop.eup %4885 }
 0xf20   :  { %4887 = vrcp.f32 %v2632_v51  ;;  %v2818_v60 = vadd.f32 1.0, %v4886_v30  ;;  %v6038_v51 = vsel %vm1775_vm2, %v5908_v12, %v5904_v59 }
 0xf21   :  { %4889 = vrcp.f32 %v2725_v6 }
 0xf22   :  { %4891 = vrcp.f32 %v2818_v60 }
 0xf2a   :  { %v4888_v45 = vpop.eup %4887 }
 0xf2b   :  { %v4890_v18 = vpop.eup %4889  ;;  %v2636_v56 = vmul.f32 %v4888_v45, %v6029_v14 }
 0xf2c   :  { %v6009_v63 = vpop.eup %4891  ;;  %v2729_v42 = vmul.f32 %v4890_v18, %v6038_v51 }
 0xf2d   :  { %v2822_v25 = vmul.f32 %v6009_v63, %v6048_v24 }
 0xf5a   :  { %v2546_v61 = vpop.permute.xlu1 %2545 }
 0xf5b   :  { %v2548_v41 = vmul.f32 %v6003_v11, %v2546_v61 }
 0xf5d   :  { %2550 = vrot.lane.b32.xlu1 %v2548_v41, %s5087_s4 }
 0xf79   :  { %v2639_v2 = vpop.permute.xlu0 %2638 }
 0xf7a   :  { %v2641_v8 = vmul.f32 %v4888_v45, %v2639_v2  ;;  %v4689_v2 = vld [vmem:[#allocation7] sm:$0xff]  }
 0xf7b   :  { %4524 = vmatpush3.bf16.msra.mxu0 %v4689_v2 }
 0xf7c   :  { %2643 = vrot.lane.b32.xlu0 %v2641_v8, %s5087_s4  ;;  %v4690_v8 = vld [vmem:[#allocation7 + $0x8] sm:$0xff]   ;;  %4525 = vmatprep.subr.bf16.mxu0 %v6515_v21 }
 0xf7d   :  { %v2732_v49 = vpop.permute.xlu1 %2731 }
 0xf7e   :  { %v2734_v13 = vmul.f32 %v4890_v18, %v2732_v49 }
 0xf7f   :  { %4526 = vmatpush3.bf16.msra.mxu0 %v4690_v8 }
 0xf80   :  { %2736 = vrot.lane.b32.xlu1 %v2734_v13, %s5087_s4  ;;  %4539 = vmatprep.subr.bf16.mxu0 %v6515_v21  ;;  %v4692_v13 = vld [vmem:[#allocation7 + $0x18] sm:$0xff]  }
 0xf81   :  { %v2825_v29 = vpop.permute.xlu0 %2824  ;;  %4534 = vmatpush3.bf16.msra.mxu1 %v4692_v13 }
 0xf82   :  { %v2827_v28 = vmul.f32 %v6009_v63, %v2825_v29  ;;  %4547 = vmatprep.subr.bf16.mxu1 %v6515_v21 }
 0xf84   :  { %2829 = vrot.lane.b32.xlu0 %v2827_v28, %s5087_s4 }
 0xfcf   :  { %v2551_v61 = vpop.permute.xlu1 %2550 }
 0xfd0   :  { %v6021_v41 = vadd.f32 %v2551_v61, %v2543_v23 }
 0xfd2   :  { %4893 = vtanh.f32 %v6021_v41 }
 0xfdc   :  { %v4894_v57 = vpop.eup %4893 }
 0xfdd   :  { %2556 = vrot.lane.b32.xlu1 %v4894_v57, %s5081_s19 }
 0xfee   :  { %v2644_v43 = vpop.permute.xlu0 %2643 }
 0xfef   :  { %v6032_v55 = vadd.f32 %v2644_v43, %v2636_v56 }
 0xff1   :  { %4895 = vtanh.f32 %v6032_v55 }
 0xff2   :  { %v2737_v6 = vpop.permute.xlu1 %2736 }
 0xff3   :  { %v6042_v30 = vadd.f32 %v2737_v6, %v2729_v42 }
 0xff5   :  { %4897 = vtanh.f32 %v6042_v30 }
 0xff6   :  { %v2830_v59 = vpop.permute.xlu0 %2829 }
 0xff7   :  { %v6053_v12 = vadd.f32 %v2830_v59, %v2822_v25 }
 0xff9   :  { %4899 = vtanh.f32 %v6053_v12 }
 0xffb   :  { %v4896_v60 = vpop.eup %4895 }
 0xffc   :  { %2649 = vrot.lane.b32.xlu0 %v4896_v60, %s5081_s19 }
 0xfff   :  { %v4898_v49 = vpop.eup %4897 }
0x1000   :  { %2742 = vrot.lane.b32.xlu1 %v4898_v49, %s5081_s19 }
0x1003   :  { %v4900_v16 = vpop.eup %4899 }
0x1004   :  { %2835 = vrot.lane.b32.xlu0 %v4900_v16, %s5081_s19 }
0x104f   :  { %v2557_v29 = vpop.permute.xlu1 %2556 }
0x1050   :  { %v2559_v28 = vmul.f32 %v6003_v11, %v2557_v29 }
0x1052   :  { %v6067_v23 = vsel %vm1565_vm13, %v2559_v28, %v5933_v35  ;;  %v2560_v56 = vsel %vm1565_vm13, %v2559_v28, 0.0  ;;  %v4693_v28 = vld [vmem:[#allocation7 + $0x20] sm:$0xff]  }
0x1053   :  { %v2860_v61 = vpack.c.bf16 %v6067_v23, %v6067_v23  ;;  %v2842_v35 = vmul.f32 %v2560_v56, %v5489_v44 }
0x1055   :  { %2866 = vrot.lane.b32.xlu1 %v2860_v61, %s5087_s4 }
0x106e   :  { %v2650_v57 = vpop.permute.xlu0 %2649 }
0x106f   :  { %v2652_v43 = vmul.f32 %v4888_v45, %v2650_v57  ;;  %v4694_v57 = vld [vmem:[#allocation7 + $0x28] sm:$0xff]  }
0x1071   :  { %v2653_v42 = vsel %vm1565_vm13, %v2652_v43, 0.0  ;;  %v6079_v11 = vsel %vm1565_vm13, %v2652_v43, %v5945_v53  ;;  %v4696_v43 = vld [vmem:[#allocation7 + $0x38] sm:$0xff]  }
0x1072   :  { %v2843_v6 = vmul.f32 %v2653_v42, %v5491_v19  ;;  %v2953_v25 = vpack.c.bf16 %v6079_v11, %v6079_v11  ;;  %v2743_v59 = vpop.permute.xlu1 %2742 }
0x1073   :  { %v2745_v60 = vmul.f32 %v4890_v18, %v2743_v59 }
0x1074   :  { %v6085_v2 = vadd.f32 %v2843_v6, %v2842_v35  ;;  %2959 = vrot.lane.b32.xlu0 %v2953_v25, %s5087_s4 }
0x1075   :  { %v6091_v45 = vsel %vm1373_vm12, %v2745_v60, %v5957_v22  ;;  %v2746_v49 = vsel %vm1373_vm12, %v2745_v60, 0.0 }
0x1076   :  { %v3046_v53 = vpack.c.bf16 %v6091_v45, %v6091_v45  ;;  %v2836_v8 = vpop.permute.xlu0 %2835  ;;  %v2850_v22 = vmul.f32 %v2746_v49, %v5489_v44 }
0x1077   :  { %v2838_v16 = vmul.f32 %v6009_v63, %v2836_v8 }
0x1078   :  { %3052 = vrot.lane.b32.xlu1 %v3046_v53, %s5087_s4 }
0x1079   :  { %v2839_v18 = vsel %vm1373_vm12, %v2838_v16, 0.0  ;;  %v6104_v3 = vsel %vm1373_vm12, %v2838_v16, %v5970_v58  ;;  %v4695_v58 = vld [vmem:[#allocation7 + $0x30] sm:$0xff]  }
0x107a   :  { %v2851_v13 = vmul.f32 %v2839_v18, %v5491_v19  ;;  %v3139_v29 = vpack.c.bf16 %v6104_v3, %v6104_v3 }
0x107c   :  { %3145 = vrot.lane.b32.xlu0 %v3139_v29, %s5087_s4  ;;  %v6111_v63 = vadd.f32 %v2851_v13, %v2850_v22 }
0x10c7   :  { %v2867_v61 = vpop.permute.xlu1 %2866 }
0x10c8   :  { %4528 = vmatmul.mubr.msk.bf16.vlgmr.msra.gmra.mrb[56].mxu0 %vm117_vm0, %v2867_v61 }
0x10c9   :  { %4540 = vmatpush3.bf16.msra.mxu0 %v4693_v28  ;;  %4543 = vmatprep.mubr.msk.bf16.mxu0 %vm5086_vm1, %v6515_v21 }
0x10ca   :  { %4541 = vmatprep.subr.bf16.mxu0 %v6515_v21 }
0x10cd   :  { %4542 = vmatpush3.bf16.msra.mxu0 %v4694_v57 }
0x10ce   :  { %4555 = vmatprep.subr.bf16.mxu0 %v6515_v21 }
0x10e6   :  { %v2960_v56 = vpop.permute.xlu0 %2959 }
0x10e7   :  { %4536 = vmatmul.mubr.msk.bf16.vlgmr.msra.gmra.mrb[72].mxu1 %vm117_vm0, %v2960_v56 }
0x10e8   :  { %4548 = vmatpush3.bf16.msra.mxu1 %v4695_v58  ;;  %4551 = vmatprep.mubr.msk.bf16.mxu1 %vm5086_vm1, %v6515_v21 }
0x10e9   :  { %4549 = vmatprep.subr.bf16.mxu1 %v6515_v21 }
0x10ea   :  { %v3053_v42 = vpop.permute.xlu1 %3052 }
0x10eb   :  { %4544 = vmatmul.mubr.msk.bf16.vlgmr.msra.gmra.mrb[60].mxu0 %vm117_vm0, %v3053_v42 }
0x10ec   :  { %4550 = vmatpush3.bf16.msra.mxu1 %v4696_v43  ;;  %4559 = vmatprep.mubr.msk.bf16.mxu0 %vm5086_vm1, %v6515_v21 }
0x10ed   :  { %4563 = vmatprep.subr.bf16.mxu1 %v6515_v21 }
0x10ee   :  { %v3146_v35 = vpop.permute.xlu0 %3145 }
0x10ef   :  { %4552 = vmatmul.mubr.msk.bf16.vlgmr.msra.gmra.mrb[76].mxu1 %vm117_vm0, %v3146_v35 }
0x10f0   :  { %4567 = vmatprep.mubr.msk.bf16.mxu1 %vm5086_vm1, %v6515_v21 }
0x119b   :  { %v2917_v6 = vpop.f32.mrb[56].mxu0 }
0x119c   :  { %v2923_v25 = vadd.f32 %v2917_v6, %v5247_v40  ;;  %v4529_v59 = vpop.f32.mrb[57].mxu0 }
0x119d   :  { %v2920_v60 = vpop.f32.mrb[58].mxu0 }
0x119e   :  { %4901 = vtanh.f32 %v2923_v25  ;;  %v4530_v53 = vpop.f32.mrb[59].mxu0 }
0x11a8   :  { %v4902_v8 = vpop.eup %4901 }
0x11a9   :  { %2933 = vrot.lane.b32.xlu1 %v4902_v8, %s5081_s19 }
0x11ba   :  { %v3010_v49 = vpop.f32.mrb[72].mxu1 }
0x11bb   :  { %v3016_v16 = vadd.f32 %v3010_v49, %v5270_v7  ;;  %v4537_v18 = vpop.f32.mrb[73].mxu1 }
0x11bc   :  { %v3013_v22 = vpop.f32.mrb[74].mxu1 }
0x11bd   :  { %4903 = vtanh.f32 %v3016_v16  ;;  %v4538_v13 = vpop.f32.mrb[75].mxu1 }
0x11be   :  { %v3103_v29 = vpop.f32.mrb[60].mxu0 }
0x11bf   :  { %v3109_v28 = vadd.f32 %v3103_v29, %v5245_v38  ;;  %v4545_v61 = vpop.f32.mrb[61].mxu0  ;;  %v4117_v38 = vmul.f32 -1.442695, %v2923_v25 }
0x11c0   :  { %v3106_v57 = vpop.f32.mrb[62].mxu0 }
0x11c1   :  { %4905 = vtanh.f32 %v3109_v28  ;;  %v4546_v40 = vpop.f32.mrb[63].mxu0  ;;  %v4125_v22 = vmul.f32 -1.442695, %v3109_v28 }
0x11c2   :  { %v3196_v58 = vpop.f32.mrb[76].mxu1 }
0x11c3   :  { %v3202_v56 = vadd.f32 %v3196_v58, %v5288_v32  ;;  %v4553_v43 = vpop.f32.mrb[77].mxu1  ;;  %v4121_v32 = vmul.f32 -1.442695, %v3016_v16 }
0x11c4   :  { %v3199_v42 = vpop.f32.mrb[78].mxu1 }
0x11c5   :  { %4907 = vtanh.f32 %v3202_v56  ;;  %v4554_v35 = vpop.f32.mrb[79].mxu1  ;;  %v4129_v13 = vmul.f32 -1.442695, %v3202_v56 }
0x11c6   :  { %4909 = vpow2.f32 %v4117_v38  ;;  %v6151_v38 = vsel %vm1565_vm13, %v6021_v41, %v6017_v36 }
0x11c7   :  { %v4904_v6 = vpop.eup %4903 }
0x11c8   :  { %3026 = vrot.lane.b32.xlu0 %v4904_v6, %s5081_s19 }
0x11cb   :  { %v4906_v7 = vpop.eup %4905 }
0x11cc   :  { %3119 = vrot.lane.b32.xlu1 %v4906_v7, %s5081_s19 }
0x11cf   :  { %v4908_v59 = vpop.eup %4907 }
0x11d0   :  { %3212 = vrot.lane.b32.xlu0 %v4908_v59, %s5081_s19  ;;  %v4910_v60 = vpop.eup %4909 }
0x11d1   :  { %v2927_v53 = vadd.f32 1.0, %v4910_v60 }
0x11d3   :  { %4911 = vrcp.f32 %v2927_v53 }
0x11d4   :  { %4913 = vpow2.f32 %v4121_v32 }
0x11d5   :  { %4915 = vpow2.f32 %v4125_v22 }
0x11d6   :  { %4917 = vpow2.f32 %v4129_v13  ;;  %v6172_v13 = vsel %vm1373_vm12, %v6042_v30, %v6038_v51 }
0x11dd   :  { %v6137_v8 = vpop.eup %4911 }
0x11de   :  { %v4914_v29 = vpop.eup %4913  ;;  %v2931_v60 = vmul.f32 %v6137_v8, %v6151_v38 }
0x11df   :  { %v3020_v61 = vadd.f32 1.0, %v4914_v29  ;;  %v4916_v25 = vpop.eup %4915 }
0x11e0   :  { %v3113_v57 = vadd.f32 1.0, %v4916_v25  ;;  %v4918_v40 = vpop.eup %4917 }
0x11e1   :  { %4919 = vrcp.f32 %v3020_v61  ;;  %v3206_v58 = vadd.f32 1.0, %v4918_v40  ;;  %v4697_v40 = vld [vmem:[#allocation7] sm:$0xff]  }
0x11e2   :  { %4921 = vrcp.f32 %v3113_v57  ;;  %4556 = vmatpush3.bf16.msra.mxu0 %v4697_v40 }
0x11e3   :  { %4923 = vrcp.f32 %v3206_v58  ;;  %v4698_v58 = vld [vmem:[#allocation7 + $0x8] sm:$0xff]   ;;  %4557 = vmatprep.subr.bf16.mxu0 %v6515_v21 }
0x11e6   :  { %4558 = vmatpush3.bf16.msra.mxu0 %v4698_v58 }
0x11e7   :  { %4571 = vmatprep.subr.bf16.mxu0 %v6515_v21 }
0x11eb   :  { %v4920_v16 = vpop.eup %4919 }
0x11ec   :  { %v4922_v35 = vpop.eup %4921 }
0x11ed   :  { %v6143_v56 = vpop.eup %4923  ;;  %v3117_v29 = vmul.f32 %v4922_v35, %v6172_v13 }
0x121b   :  { %v2934_v49 = vpop.permute.xlu1 %2933 }
0x121c   :  { %v2936_v18 = vmul.f32 %v6137_v8, %v2934_v49 }
0x121e   :  { %2938 = vrot.lane.b32.xlu1 %v2936_v18, %s5087_s4  ;;  %v6163_v18 = vsel %vm1565_vm13, %v6032_v55, %v6029_v14  ;;  %v6182_v14 = vsel %vm1373_vm12, %v6053_v12, %v6048_v24  ;;  %v4699_v12 = vld [vmem:[#allocation7 + $0x10] sm:$0xff]  }
0x121f   :  { %v3024_v36 = vmul.f32 %v4920_v16, %v6163_v18  ;;  %v3210_v55 = vmul.f32 %v6143_v56, %v6182_v14  ;;  %4564 = vmatpush3.bf16.msra.mxu1 %v4699_v12 }
0x1220   :  { %4565 = vmatprep.subr.bf16.mxu1 %v6515_v21 }
0x123a   :  { %v3027_v43 = vpop.permute.xlu0 %3026 }
0x123b   :  { %v3029_v42 = vmul.f32 %v4920_v16, %v3027_v43 }
0x123d   :  { %3031 = vrot.lane.b32.xlu0 %v3029_v42, %s5087_s4  ;;  %v4700_v42 = vld [vmem:[#allocation7 + $0x18] sm:$0xff]  }
0x123e   :  { %v3120_v6 = vpop.permute.xlu1 %3119  ;;  %4566 = vmatpush3.bf16.msra.mxu1 %v4700_v42 }
0x123f   :  { %v3122_v28 = vmul.f32 %v4922_v35, %v3120_v6  ;;  %4579 = vmatprep.subr.bf16.mxu1 %v6515_v21 }
0x1241   :  { %3124 = vrot.lane.b32.xlu1 %v3122_v28, %s5087_s4 }
0x1242   :  { %v3213_v7 = vpop.permute.xlu0 %3212 }
0x1243   :  { %v3215_v59 = vmul.f32 %v6143_v56, %v3213_v7 }
0x1245   :  { %3217 = vrot.lane.b32.xlu0 %v3215_v59, %s5087_s4 }
0x1290   :  { %v2939_v53 = vpop.permute.xlu1 %2938 }
0x1291   :  { %v6155_v32 = vadd.f32 %v2939_v53, %v2931_v60 }
0x1293   :  { %4925 = vtanh.f32 %v6155_v32 }
0x129d   :  { %v4926_v49 = vpop.eup %4925 }
0x129e   :  { %2944 = vrot.lane.b32.xlu1 %v4926_v49, %s5081_s19 }
0x12af   :  { %v3032_v41 = vpop.permute.xlu0 %3031 }
0x12b0   :  { %v6166_v22 = vadd.f32 %v3032_v41, %v3024_v36 }
0x12b2   :  { %4927 = vtanh.f32 %v6166_v22 }
0x12b3   :  { %v3125_v61 = vpop.permute.xlu1 %3124 }
0x12b4   :  { %v6176_v25 = vadd.f32 %v3125_v61, %v3117_v29 }
0x12b6   :  { %4929 = vtanh.f32 %v6176_v25 }
0x12b7   :  { %v3218_v51 = vpop.permute.xlu0 %3217 }
0x12b8   :  { %v6187_v30 = vadd.f32 %v3218_v51, %v3210_v55 }
0x12ba   :  { %4931 = vtanh.f32 %v6187_v30 }
0x12bc   :  { %v4928_v57 = vpop.eup %4927 }
0x12bd   :  { %3037 = vrot.lane.b32.xlu0 %v4928_v57, %s5081_s19 }
0x12c0   :  { %v4930_v43 = vpop.eup %4929 }
0x12c1   :  { %3130 = vrot.lane.b32.xlu1 %v4930_v43, %s5081_s19 }
0x12c4   :  { %v4932_v24 = vpop.eup %4931 }
0x12c5   :  { %3223 = vrot.lane.b32.xlu0 %v4932_v24, %s5081_s19 }
0x1310   :  { %v2945_v6 = vpop.permute.xlu1 %2944 }
0x1311   :  { %v2947_v28 = vmul.f32 %v6137_v8, %v2945_v6  ;;  %v4701_v6 = vld [vmem:[#allocation7 + $0x20] sm:$0xff]  }
0x1313   :  { %v2949_v7 = vsel %vm1163_vm9, %v2947_v28, %v6067_v23  ;;  %v2948_v53 = vsel %vm1163_vm9, %v2947_v28, 0.0  ;;  %v4702_v28 = vld [vmem:[#allocation7 + $0x28] sm:$0xff]  }
0x1314   :  { %v3248_v59 = vpack.c.bf16 %v2949_v7, %v2949_v7  ;;  %v3230_v8 = vmul.f32 %v2948_v53, %v5489_v44 }
0x1316   :  { %3254 = vrot.lane.b32.xlu1 %v3248_v59, %s5087_s4  ;;  %v4704_v59 = vld [vmem:[#allocation7 + $0x38] sm:$0xff]  }
0x132f   :  { %v3038_v60 = vpop.permute.xlu0 %3037 }
0x1330   :  { %v3040_v49 = vmul.f32 %v4920_v16, %v3038_v60 }
0x1332   :  { %v3041_v36 = vsel %vm1163_vm9, %v3040_v49, 0.0  ;;  %v3042_v41 = vsel %vm1163_vm9, %v3040_v49, %v6079_v11 }
0x1333   :  { %v3231_v29 = vmul.f32 %v3041_v36, %v5491_v19  ;;  %v3339_v23 = vpack.c.bf16 %v3042_v41, %v3042_v41  ;;  %v3131_v61 = vpop.permute.xlu1 %3130 }
0x1334   :  { %v3133_v55 = vmul.f32 %v4922_v35, %v3131_v61 }
0x1335   :  { %v6211_v51 = vadd.f32 %v3231_v29, %v3230_v8  ;;  %3345 = vrot.lane.b32.xlu0 %v3339_v23, %s5087_s4 }
0x1336   :  { %v3135_v16 = vsel %vm971_vm8, %v3133_v55, %v6091_v45  ;;  %v3134_v11 = vsel %vm971_vm8, %v3133_v55, 0.0 }
0x1337   :  { %v3429_v57 = vpack.c.bf16 %v3135_v16, %v3135_v16  ;;  %v3224_v40 = vpop.permute.xlu0 %3223  ;;  %v3238_v24 = vmul.f32 %v3134_v11, %v5489_v44 }
0x1338   :  { %v3226_v58 = vmul.f32 %v6143_v56, %v3224_v40 }
0x1339   :  { %3435 = vrot.lane.b32.xlu1 %v3429_v57, %s5087_s4 }
0x133a   :  { %v3227_v35 = vsel %vm971_vm8, %v3226_v58, 0.0  ;;  %v3228_v43 = vsel %vm971_vm8, %v3226_v58, %v6104_v3  ;;  %v4703_v3 = vld [vmem:[#allocation7 + $0x30] sm:$0xff]  }
0x133b   :  { %v3239_v45 = vmul.f32 %v3227_v35, %v5491_v19  ;;  %v3519_v12 = vpack.c.bf16 %v3228_v43, %v3228_v43 }
0x133d   :  { %3525 = vrot.lane.b32.xlu0 %v3519_v12, %s5087_s4  ;;  %v6229_v42 = vadd.f32 %v3239_v45, %v3238_v24 }
0x1388   :  { %v3255_v56 = vpop.permute.xlu1 %3254 }
0x1389   :  { %4560 = vmatmul.mubr.msk.bf16.vlgmr.msra.gmra.mrb[64].mxu0 %vm117_vm0, %v3255_v56 }
0x138a   :  { %4572 = vmatpush3.bf16.msra.mxu0 %v4701_v6  ;;  %4575 = vmatprep.mubr.msk.bf16.mxu0 %vm5086_vm1, %v6515_v21 }
0x138b   :  { %4573 = vmatprep.subr.bf16.mxu0 %v6515_v21 }
0x138e   :  { %4574 = vmatpush3.bf16.msra.mxu0 %v4702_v28 }
0x13a7   :  { %v3346_v7 = vpop.permute.xlu0 %3345 }
0x13a8   :  { %4568 = vmatmul.mubr.msk.bf16.vlgmr.msra.gmra.mrb[80].mxu1 %vm117_vm0, %v3346_v7 }
0x13a9   :  { %4580 = vmatpush3.bf16.msra.mxu1 %v4703_v3  ;;  %4583 = vmatprep.mubr.msk.bf16.mxu1 %vm5086_vm1, %v6515_v21  ;;  %vm874_vm1 = vcmask 523520  }
0x13aa   :  { %4581 = vmatprep.subr.bf16.mxu1 %v6515_v21 }
0x13ab   :  { %v3436_v60 = vpop.permute.xlu1 %3435 }
0x13ac   :  { %4576 = vmatmul.mubr.msk.bf16.vlgmr.msra.gmra.mrb[68].mxu0 %vm117_vm0, %v3436_v60 }
0x13ad   :  { %4582 = vmatpush3.bf16.msra.mxu1 %v4704_v59 }
0x13af   :  { %v3526_v53 = vpop.permute.xlu0 %3525 }
0x13b0   :  { %4584 = vmatmul.mubr.msk.bf16.vlgmr.msra.gmra.mrb[84].mxu1 %vm117_vm0, %v3526_v53 }
0x145c   :  { %v3305_v49 = vpop.f32.mrb[64].mxu0 }
0x145d   :  { %v3311_v36 = vadd.f32 %v3305_v49, %v5253_v47  ;;  %v4561_v41 = vpop.f32.mrb[65].mxu0 }
0x145e   :  { %v3308_v8 = vpop.f32.mrb[66].mxu0 }
0x145f   :  { %v4562_v29 = vpop.f32.mrb[67].mxu0 }
0x147b   :  { %v3396_v23 = vpop.f32.mrb[80].mxu1 }
0x147c   :  { %v3402_v61 = vadd.f32 %v3396_v23, %v5274_v15  ;;  %v4569_v55 = vpop.f32.mrb[81].mxu1 }
0x147d   :  { %v3399_v16 = vpop.f32.mrb[82].mxu1 }
0x147e   :  { %v4570_v57 = vpop.f32.mrb[83].mxu1  ;;  %v4137_v7 = vmul.f32 -1.442695, %v3402_v61 }
0x147f   :  { %v3486_v21 = vpop.f32.mrb[68].mxu0 }
0x1480   :  { %v3492_v40 = vadd.f32 %v3486_v21, %v5239_v33  ;;  %v4577_v11 = vpop.f32.mrb[69].mxu0 }
0x1481   :  { %v3489_v58 = vpop.f32.mrb[70].mxu0 }
0x1482   :  { %4933 = vtanh.f32 %v3492_v40  ;;  %v4578_v35 = vpop.f32.mrb[71].mxu0  ;;  %v4141_v28 = vmul.f32 -1.442695, %v3492_v40 }
0x1483   :  { %v3576_v43 = vpop.f32.mrb[84].mxu1  ;;  %4935 = vtanh.f32 %v3311_v36 }
0x1484   :  { %v3582_v24 = vadd.f32 %v3576_v43, %v5284_v26  ;;  %v4585_v47 = vpop.f32.mrb[85].mxu1  ;;  %v4133_v26 = vmul.f32 -1.442695, %v3311_v36 }
0x1485   :  { %v3579_v45 = vpop.f32.mrb[86].mxu1  ;;  %v3136_v47 = vsel %vm971_vm8, %v6176_v25, %v6172_v13 }
0x1486   :  { %4937 = vtanh.f32 %v3582_v24  ;;  %v4586_v12 = vpop.f32.mrb[87].mxu1  ;;  %v4145_v3 = vmul.f32 -1.442695, %v3582_v24 }
0x1487   :  { %4939 = vtanh.f32 %v3402_v61 }
0x1488   :  { %4941 = vpow2.f32 %v4141_v28 }
0x1489   :  { %4943 = vpow2.f32 %v4133_v26 }
0x148a   :  { %4945 = vpow2.f32 %v4145_v3 }
0x148b   :  { %4947 = vpow2.f32 %v4137_v7  ;;  %v3043_v7 = vsel %vm1163_vm9, %v6166_v22, %v6163_v18 }
0x148c   :  { %v4934_v15 = vpop.eup %4933 }
0x148d   :  { %3502 = vrot.lane.b32.xlu1 %v4934_v15, %s5081_s19  ;;  %v4936_v6 = vpop.eup %4935 }
0x1490   :  { %v4938_v56 = vpop.eup %4937 }
0x1491   :  { %3321 = vrot.lane.b32.xlu1 %v4936_v6, %s5081_s19  ;;  %3592 = vrot.lane.b32.xlu0 %v4938_v56, %s5081_s19  ;;  %v4940_v33 = vpop.eup %4939  ;;  %v2950_v6 = vsel %vm1163_vm9, %v6155_v32, %v6151_v38  ;;  %v3229_v56 = vsel %vm971_vm8, %v6187_v30, %v6182_v14 }
0x1492   :  { %v4942_v59 = vpop.eup %4941 }
0x1493   :  { %v4944_v60 = vpop.eup %4943  ;;  %v3496_v53 = vadd.f32 1.0, %v4942_v59  ;;  %v859_v59 = vmul.f32 %v5491_v19, %v5355_v62  ;;  %v4705_v62 = vld [vmem:[%s6501_s5] sm:$0xff]  }
0x1494   :  { %v4946_v49 = vpop.eup %4945  ;;  %v3315_v41 = vadd.f32 1.0, %v4944_v60  ;;  %4587 = vmatprep.subr.bf16.mxu0 %v4705_v62 }
0x1495   :  { %3412 = vrot.lane.b32.xlu0 %v4940_v33, %s5081_s19  ;;  %4949 = vrcp.f32 %v3496_v53  ;;  %v3586_v8 = vadd.f32 1.0, %v4946_v49  ;;  %v4948_v29 = vpop.eup %4947  ;;  %v857_v49 = vmul.f32 %v5489_v44, %v5346_v46  ;;  %v867_v46 = vmul.f32 %v5491_v19, %v5371_v9  ;;  %4588 = vmatpush3.bf16.msra.mxu0 %v4705_v62 }
0x1496   :  { %4951 = vrcp.f32 %v3315_v41  ;;  %v3406_v23 = vadd.f32 1.0, %v4948_v29 }
0x1497   :  { %4953 = vrcp.f32 %v3586_v8  ;;  %v860_v18 = vadd.f32 %v859_v59, %v857_v49 }
0x1498   :  { %4955 = vrcp.f32 %v3406_v23 }
0x149f   :  { %v6249_v55 = vpop.eup %4949 }
0x14a0   :  { %v6252_v61 = vpop.eup %4951  ;;  %v3500_v45 = vmul.f32 %v6249_v55, %v3136_v47 }
0x14a1   :  { %v6255_v57 = vpop.eup %4953  ;;  %v3319_v33 = vmul.f32 %v6252_v61, %v2950_v6 }
0x14a2   :  { %v6261_v35 = vpop.eup %4955  ;;  %v3590_v28 = vmul.f32 %v6255_v57, %v3229_v56 }
0x14a3   :  { %v3410_v38 = vmul.f32 %v6261_v35, %v3043_v7 }
0x14ff   :  { %v3503_v36 = vpop.permute.xlu1 %3502 }
0x1500   :  { %v3505_v16 = vmul.f32 %v6249_v55, %v3503_v36 }
0x1502   :  { %3507 = vrot.lane.b32.xlu1 %v3505_v16, %s5087_s4 }
0x1503   :  { %v3322_v21 = vpop.permute.xlu1 %3321  ;;  %v3593_v40 = vpop.permute.xlu0 %3592 }
0x1504   :  { %v3324_v11 = vmul.f32 %v6252_v61, %v3322_v21  ;;  %v3595_v58 = vmul.f32 %v6255_v57, %v3593_v40 }
0x1506   :  { %3326 = vrot.lane.b32.xlu1 %v3324_v11, %s5087_s4  ;;  %3597 = vrot.lane.b32.xlu0 %v3595_v58, %s5087_s4 }
0x1507   :  { %v3413_v43 = vpop.permute.xlu0 %3412 }
0x1508   :  { %v3415_v24 = vmul.f32 %v6261_v35, %v3413_v43  ;;  %v6517_v43 = vld [vmem:[#allocation17_spill] sm:$0xff] }
0x150a   :  { %3417 = vrot.lane.b32.xlu0 %v3415_v24, %s5087_s4 }
0x1574   :  { %v3508_v12 = vpop.permute.xlu1 %3507 }
0x1575   :  { %v3510_v15 = vadd.f32 %v3508_v12, %v3500_v45 }
0x1577   :  { %4957 = vtanh.f32 %v3510_v15 }
0x1578   :  { %v3327_v13 = vpop.permute.xlu1 %3326  ;;  %v3598_v25 = vpop.permute.xlu0 %3597 }
0x1579   :  { %v3329_v26 = vadd.f32 %v3327_v13, %v3319_v33  ;;  %v3600_v3 = vadd.f32 %v3598_v25, %v3590_v28 }
0x157b   :  { %4959 = vtanh.f32 %v3329_v26 }
0x157c   :  { %4961 = vtanh.f32 %v3600_v3  ;;  %v3418_v32 = vpop.permute.xlu0 %3417 }
0x157d   :  { %v3420_v14 = vadd.f32 %v3418_v32, %v3410_v38 }
0x157f   :  { %4963 = vtanh.f32 %v3420_v14 }
0x1581   :  { %v4958_v30 = vpop.eup %4957 }
0x1582   :  { %3513 = vrot.lane.b32.xlu1 %v4958_v30, %s5081_s19 }
0x1585   :  { %v4960_v60 = vpop.eup %4959 }
0x1586   :  { %v4962_v53 = vpop.eup %4961  ;;  %3332 = vrot.lane.b32.xlu1 %v4960_v60, %s5081_s19 }
0x1587   :  { %3603 = vrot.lane.b32.xlu0 %v4962_v53, %s5081_s19 }
0x1589   :  { %v4964_v22 = vpop.eup %4963 }
0x158a   :  { %862 = vrot.lane.b32.xlu1 %v860_v18, %s5087_s4 }
0x158b   :  { %3423 = vrot.lane.b32.xlu0 %v4964_v22, %s5081_s19 }
0x158e   :  { %1666 = vrot.lane.b32.xlu1 %v5662_v52, %s5087_s4  ;;  %v866_v52 = vmul.f32 %v5489_v44, %v5364_v5  ;;  %v4707_v5 = vld [vmem:[%s6501_s5 + $0x10] sm:$0xff]  }
0x158f   :  { %1264 = vrot.lane.b32.xlu0 %v5508_v17, %s5087_s4  ;;  %v4706_v17 = vld [vmem:[%s6501_s5 + $0x8] sm:$0xff]  }
0x1590   :  { %v868_v9 = vadd.f32 %v867_v46, %v866_v52  ;;  %4589 = vmatprep.subr.bf16.mxu0 %v4706_v17 }
0x1591   :  { %4590 = vmatpush3.bf16.msra.mxu0 %v4706_v17 }
0x1592   :  { %3242 = vrot.lane.b32.xlu1 %v6229_v42, %s5081_s19  ;;  %4591 = vmatprep.subr.bf16.mxu0 %v4707_v5 }
0x1593   :  { %2068 = vrot.lane.b32.xlu0 %v5817_v50, %s5087_s4 }
0x1595   :  { %4592 = vmatpush3.bf16.msra.mxu0 %v4707_v5 }
0x1596   :  { %2466 = vrot.lane.b32.xlu1 %v5977_v34, %s5081_s19 }
0x1597   :  { %2854 = vrot.lane.b32.xlu0 %v6111_v63, %s5081_s19  ;;  %v4708_v63 = vld [vmem:[%s6501_s5 + $0x18] sm:$0xff]  }
0x1598   :  { %4593 = vmatprep.subr.bf16.mxu0 %v4708_v63 }
0x1599   :  { %4594 = vmatpush3.bf16.msra.mxu0 %v4708_v63 }
0x159a   :  { %1675 = vrot.lane.b32.xlu1 %v5688_v0, %s5081_s19 }
0x159b   :  { %2077 = vrot.lane.b32.xlu0 %v5843_v54, %s5081_s19 }
0x159e   :  { %870 = vrot.lane.b32.xlu1 %v868_v9, %s5081_s19 }
0x15a2   :  { %2458 = vrot.lane.b32.xlu1 %v5951_v39, %s5087_s4 }
0x15a6   :  { %3234 = vrot.lane.b32.xlu1 %v6211_v51, %s5087_s4 }
0x15f4   :  { %v3514_v0 = vpop.permute.xlu1 %3513 }
0x15f5   :  { %v3516_v50 = vmul.f32 %v6249_v55, %v3514_v0  ;;  %v4154_v0 = vld [vmem:[%s6502_s6] ss:$0 sm:$0xff]  ;;  %s5089_s6 = smov [#allocation9]  }
0x15f6   :  { %s3960_s0 = sshll.u32 %s5089_s6, 4  ;;  %s3961_s0 = int_to_ptr.vmem [resolvable:$true] %s3960_s0 }
0x15f7   :  { %v3517_v39 = vsel %vm590_vm4, %v3516_v50, 0.0  ;;  %s5028_s21 = scalar_lea.vmem %s3961_s0, 1024  ;;  %p5033_p3 = scmp.lt.s32.totalorder %s3961_s0, %s3961_s0 }
0x15f8   :  { %v3333_v54 = vpop.permute.xlu1 %3332  ;;  %v3616_v8 = vmul.f32 %v3517_v39, %v5489_v44  ;;  %p5029_p2 = scmp.ne.s32.totalorder %s3961_s0, %s5028_s21  ;;  %p5034_p4 = scmp.lt.s32.totalorder %s5028_s21, %s5028_s21 }
0x15f9   :  { %v3604_v34 = vpop.permute.xlu0 %3603  ;;  %v3335_v21 = vmul.f32 %v6252_v61, %v3333_v54 }
0x15fa   :  { %v3606_v51 = vmul.f32 %v6255_v57, %v3604_v34  ;;  %p5035_p5 = por %p5034_p4, %p5033_p3 }
0x15fb   :  { %v3336_v24 = vsel %vm767_vm5, %v3335_v21, 0.0 }
0x15fc   :  { %v3607_v42 = vsel %vm590_vm4, %v3606_v51, 0.0  ;;  %v863_v41 = vpop.permute.xlu1 %862  ;;  %v3608_v45 = vmul.f32 %v3336_v24, %v5489_v44  ;;  %p5036_p6 = pnand %p5035_p5, %p5029_p2 }
0x15fd   :  { %v3617_v29 = vmul.f32 %v3607_v42, %v5491_v19  ;;  %865 = vst.msk [vmem:[#allocation9] sm:$0xff] %vm117_vm0, %v863_v41  ;;  %v3424_v23 = vpop.permute.xlu0 %3423 }
0x15fe   :  { %v3426_v36 = vmul.f32 %v6261_v35, %v3424_v23 }
0x15ff   :  { %v3618_v55 = vadd.f32 %v3617_v29, %v3616_v8 }
0x1600   :  { %v1667_v16 = vpop.permute.xlu1 %1666  ;;  %v3427_v11 = vsel %vm767_vm5, %v3426_v36, 0.0 }
0x1601   :  { %1670 = vst.msk [vmem:[#allocation9 + $0x10] sm:$0xff] %vm117_vm0, %v1667_v16  ;;  %3620 = vrot.lane.b32.xlu0 %v3618_v55, %s5081_s19  ;;  %v1265_v57 = vpop.permute.xlu0 %1264  ;;  %v3609_v61 = vmul.f32 %v3427_v11, %v5491_v19 }
0x1602   :  { %1268 = vst.msk [vmem:[#allocation9 + $0x8] sm:$0xff] %vm117_vm0, %v1265_v57 }
0x1603   :  { %v3610_v15 = vadd.f32 %v3609_v61, %v3608_v45 }
0x1604   :  { %v3243_v58 = vpop.permute.xlu1 %3242 }
0x1605   :  { %3245 = vst.msk [vmem:[#allocation9 + $0x8] sm:$0xff] %vm874_vm1, %v3243_v58  ;;  %1273 = vrot.lane.b32.xlu0 %v6517_v43, %s5081_s19  ;;  %v2069_v35 = vpop.permute.xlu0 %2068 }
0x1606   :  { %2072 = vst.msk [vmem:[#allocation9 + $0x18] sm:$0xff] %vm117_vm0, %v2069_v35 }
0x1608   :  { %v2467_v47 = vpop.permute.xlu1 %2466 }
0x1609   :  { %2469 = vst.msk [vmem:[#allocation9 + $0x18] sm:$0xff] %vm874_vm1, %v2467_v47  ;;  %2846 = vrot.lane.b32.xlu0 %v6085_v2, %s5087_s4  ;;  %v2855_v12 = vpop.permute.xlu0 %2854 }
0x160a   :  { %2857 = vst.msk [vmem:[#allocation9 + $0x10] sm:$0xff] %vm874_vm1, %v2855_v12 }
0x160c   :  { %v1676_v6 = vpop.permute.xlu1 %1675  ;;  %v6373_v32 = vld [vmem:[#allocation9 + $0x8] sm:$0xff] }
0x160d   :  { %1679 = vst.msk [vmem:[#allocation9 + $0x28] sm:$0xff] %vm874_vm1, %v1676_v6  ;;  %3612 = vrot.lane.b32.xlu0 %v3610_v15, %s5087_s4  ;;  %v2078_v56 = vpop.permute.xlu0 %2077 }
0x160e   :  { %2081 = vst.msk [vmem:[#allocation9 + $0x20] sm:$0xff] %vm874_vm1, %v2078_v56 }
0x1610   :  { %v871_v33 = vpop.permute.xlu1 %870  ;;  %v6369_v3 = vld [vmem:[#allocation9 + $0x18] sm:$0xff] }
0x1611   :  { %875 = vst.msk [vmem:[#allocation9 + $0x38] sm:$0xff] %vm874_vm1, %v871_v33  ;;  %v6367_v26 = vld [vmem:[#allocation9 + $0x10] sm:$0xff] }
0x1612   :  { %v3633_v30 = vpack.c.bf16 %v6369_v3, %v6367_v26 }
0x1614   :  { %v2459_v28 = vpop.permute.xlu1 %2458 }
0x1615   :  { %2461 = vst.msk [vmem:[#allocation9 + $0x20] sm:$0xff] %vm117_vm0, %v2459_v28 }
0x1618   :  { %v3235_v25 = vpop.permute.xlu1 %3234 }
0x161c   :  { %v6383_v60 = vld [vmem:[#allocation9 + $0x20] sm:$0xff] }
0x1673   :  { %v3621_v13 = vpop.permute.xlu0 %3620 }
0x1674   :  { %3623 = vst.msk [vmem:[#allocation9] sm:$0xff] %vm874_vm1, %v3621_v13 }
0x1677   :  { %v1274_v2 = vpop.permute.xlu0 %1273 }
0x1678   :  { %1277 = vst.msk [vmem:[#allocation9 + $0x30] sm:$0xff] %vm874_vm1, %v1274_v2 }
0x1679   :  { %3237 = vst.msk [vmem:[#allocation9 + $0x30] sm:$0xff] %vm117_vm0, %v3235_v25 }
0x167b   :  { %v2847_v7 = vpop.permute.xlu0 %2846  ;;  %v6371_v38 = vld [vmem:[#allocation9] sm:$0xff] }
0x167c   :  { %2849 = vst.msk [vmem:[#allocation9 + $0x28] sm:$0xff] %vm117_vm0, %v2847_v7  ;;  %v3632_v14 = vpack.c.bf16 %v6373_v32, %v6371_v38 }
0x167e   :  { %4595 = vmatprep.mubr.msk.bf16.mxu0 %vm3668_vm6, %v3632_v14 }
0x167f   :  { %4596 = vmatmul.mubr.msk.bf16.vlgmr.msra.gmra.mrb[72].mxu0 %vm3668_vm6, %v3633_v30  ;;  %v3613_v59 = vpop.permute.xlu0 %3612 }
0x1680   :  { %3615 = vst.msk [vmem:[#allocation9 + $0x38] sm:$0xff] %vm117_vm0, %v3613_v59  ;;  %v6390_v18 = vld [vmem:[#allocation9 + $0x30] sm:$0xff]  ;;  %vm3769_vm0 = vcmask 15360  }
0x1683   :  { %v6385_v53 = vld [vmem:[#allocation9 + $0x28] sm:$0xff] }
0x1684   :  { %v3634_v49 = vpack.c.bf16 %v6385_v53, %v6383_v60 }
0x1686   :  { %4599 = vmatprep.mubr.msk.bf16.mxu0 %vm3668_vm6, %v3634_v49 }
0x1687   :  { %v6392_v22 = vld [vmem:[#allocation9 + $0x38] sm:$0xff] }
0x1688   :  { %v3635_v46 = vpack.c.bf16 %v6392_v22, %v6390_v18 }
0x168a   :  { %4600 = vmatmul.mubr.msk.bf16.gmra.mrb[76].mxu0 %vm3668_vm6, %v3635_v46 }
0x1752   :  { %v4597_v62 = vpop.f32.mrb[72].mxu0 }
0x1753   :  { %v3715_v17 = vpop.f32.mrb[73].mxu0  ;;  %v3755_v5 = vadd.f32 %v4597_v62, %v4154_v0 }
0x1754   :  { %v4598_v52 = vpop.f32.mrb[74].mxu0  ;;  %v3753_v50 = vadd.f32 %v4154_v0, %v3715_v17 }
0x1755   :  { %v3718_v9 = vpop.f32.mrb[75].mxu0  ;;  %v3756_v54 = vadd.f32 %v4598_v52, %v4154_v0  ;;  %v3763_v34 = vsel %vm1373_vm12, %v3755_v5, -1e+30 }
0x1756   :  { %v3754_v63 = vadd.f32 %v4154_v0, %v3718_v9  ;;  %v3761_v41 = vsel %vm590_vm4, %v3753_v50, -1e+30  ;;  %v3772_v23 = vsel %vm3769_vm0, %v3763_v34, -inf }
0x1757   :  { %v3764_v55 = vsel %vm1775_vm2, %v3756_v54, -1e+30  ;;  %v3770_v58 = vsel %vm3769_vm0, %v3761_v41, -inf }
0x1758   :  { %v3762_v57 = vsel %vm971_vm8, %v3754_v63, -1e+30  ;;  %v3773_v35 = vsel %vm3769_vm0, %v3764_v55, -inf }
0x1759   :  { %v3771_v4 = vsel %vm3769_vm0, %v3762_v57, -inf }
0x175d   :  { %v4601_v39 = vpop.f32.mrb[76].mxu0 }
0x175e   :  { %v3759_v51 = vadd.f32 %v4601_v39, %v4154_v0  ;;  %v3731_v42 = vpop.f32.mrb[77].mxu0 }
0x175f   :  { %v3757_v8 = vadd.f32 %v4154_v0, %v3731_v42  ;;  %v4602_v29 = vpop.f32.mrb[78].mxu0 }
0x1760   :  { %v3767_v36 = vsel %vm1163_vm9, %v3759_v51, -1e+30  ;;  %v3760_v27 = vadd.f32 %v4602_v29, %v4154_v0  ;;  %v3734_v16 = vpop.f32.mrb[79].mxu0 }
0x1761   :  { %v3778_v21 = vsel %vm3769_vm0, %v3767_v36, -inf  ;;  %v3765_v37 = vsel %vm1967_vm3, %v3757_v8, -1e+30  ;;  %v3758_v11 = vadd.f32 %v4154_v0, %v3734_v16 }
0x1762   :  { %v3779_v43 = vmax.f32 %v3772_v23, %v3778_v21  ;;  %v3774_v31 = vsel %vm3769_vm0, %v3765_v37, -inf  ;;  %v3768_v1 = vsel %vm767_vm5, %v3760_v27, -1e+30 }
0x1763   :  { %v3775_v24 = vmax.f32 %v3770_v58, %v3774_v31  ;;  %v3780_v20 = vsel %vm3769_vm0, %v3768_v1, -inf  ;;  %v3766_v61 = vsel %vm1565_vm13, %v3758_v11, -1e+30 }
0x1764   :  { %v3781_v47 = vmax.f32 %v3773_v35, %v3780_v20  ;;  %v3776_v45 = vsel %vm3769_vm0, %v3766_v61, -inf }
0x1765   :  { %v3777_v12 = vmax.f32 %v3771_v4, %v3776_v45  ;;  %v5088_v45 = vmov 1  }
0x1766   :  { %v3783_v15 = vmax.f32 %v3779_v43, %v3781_v47 }
0x1767   :  { %v3782_v6 = vmax.f32 %v3775_v24, %v3777_v12 }
0x1769   :  { %v3784_v56 = vmax.f32 %v3782_v6, %v3783_v15 }
0x176b   :  { %v3785_v33 = vsub.f32 %v3761_v41, %v3784_v56  ;;  %v3786_v40 = vsub.f32 %v3762_v57, %v3784_v56  ;;  %v3787_v28 = vsub.f32 %v3763_v34, %v3784_v56  ;;  %v3788_v13 = vsub.f32 %v3764_v55, %v3784_v56 }
0x176c   :  { %v3789_v2 = vsub.f32 %v3765_v37, %v3784_v56  ;;  %v3790_v25 = vsub.f32 %v3766_v61, %v3784_v56  ;;  %v3791_v7 = vsub.f32 %v3767_v36, %v3784_v56  ;;  %v3792_v14 = vsub.f32 %v3768_v1, %v3784_v56 }
0x176d   :  { %v3793_v30 = vmul.f32 1.442695, %v3785_v33  ;;  %v3795_v10 = vmul.f32 1.442695, %v3786_v40  ;;  %v3797_v59 = vmul.f32 1.442695, %v3787_v28 }
0x176e   :  { %v3799_v49 = vmul.f32 1.442695, %v3788_v13  ;;  %v3801_v46 = vmul.f32 1.442695, %v3789_v2  ;;  %v3803_v62 = vmul.f32 1.442695, %v3790_v25 }
0x176f   :  { %4965 = vpow2.f32 %v3793_v30  ;;  %v3805_v17 = vmul.f32 1.442695, %v3791_v7  ;;  %v3807_v52 = vmul.f32 1.442695, %v3792_v14 }
0x1770   :  { %4967 = vpow2.f32 %v3795_v10 }
0x1771   :  { %4969 = vpow2.f32 %v3797_v59 }
0x1772   :  { %4971 = vpow2.f32 %v3799_v49 }
0x1773   :  { %4973 = vpow2.f32 %v3801_v46 }
0x1774   :  { %4975 = vpow2.f32 %v3803_v62 }
0x1775   :  { %4977 = vpow2.f32 %v3805_v17 }
0x1776   :  { %4979 = vpow2.f32 %v3807_v52 }
0x1779   :  { %v4966_v9 = vpop.eup %4965 }
0x177a   :  { %v4968_v0 = vpop.eup %4967  ;;  %v3809_v5 = vsel %vm3769_vm0, %v4966_v9, 0.0 }
0x177b   :  { %v4970_v50 = vpop.eup %4969  ;;  %v3810_v54 = vsel %vm3769_vm0, %v4968_v0, 0.0 }
0x177c   :  { %v4972_v34 = vpop.eup %4971  ;;  %v3811_v63 = vadd.f32 %v3810_v54, %v3809_v5  ;;  %v3812_v39 = vsel %vm3769_vm0, %v4970_v50, 0.0 }
0x177d   :  { %v4974_v51 = vpop.eup %4973  ;;  %v3814_v41 = vsel %vm3769_vm0, %v4972_v34, 0.0 }
0x177e   :  { %v3813_v42 = vadd.f32 %v3812_v39, %v3811_v63  ;;  %v4976_v8 = vpop.eup %4975  ;;  %v3816_v23 = vsel %vm3769_vm0, %v4974_v51, 0.0 }
0x177f   :  { %v4978_v55 = vpop.eup %4977  ;;  %v3818_v27 = vsel %vm3769_vm0, %v4976_v8, 0.0 }
0x1780   :  { %v3815_v29 = vadd.f32 %v3814_v41, %v3813_v42  ;;  %v4980_v16 = vpop.eup %4979  ;;  %v3820_v21 = vsel %vm3769_vm0, %v4978_v55, 0.0 }
0x1781   :  { %v3822_v11 = vsel %vm3769_vm0, %v4980_v16, 0.0 }
0x1782   :  { %v3817_v36 = vadd.f32 %v3816_v23, %v3815_v29 }
0x1784   :  { %v3819_v57 = vadd.f32 %v3818_v27, %v3817_v36 }
0x1786   :  { %v3821_v37 = vadd.f32 %v3820_v21, %v3819_v57 }
0x1788   :  { %v3823_v58 = vadd.f32 %v3822_v11, %v3821_v37 }
0x178a   :  { %4981 = vrcp.f32 %v3823_v58 }
0x1794   :  { %v4982_v43 = vpop.eup %4981 }
0x1795   :  { %v3826_v31 = vmul.f32 %v4982_v43, %v4968_v0  ;;  %v3825_v1 = vmul.f32 %v4982_v43, %v4966_v9  ;;  %v3828_v35 = vmul.f32 %v4982_v43, %v4972_v34  ;;  %v3827_v24 = vmul.f32 %v4982_v43, %v4970_v50 }
0x1796   :  { %v3829_v20 = vmul.f32 %v4982_v43, %v4974_v51  ;;  %v3831_v61 = vmul.f32 %v4982_v43, %v4978_v55  ;;  %v3832_v4 = vmul.f32 %v4982_v43, %v4980_v16  ;;  %v3830_v47 = vmul.f32 %v4982_v43, %v4976_v8 }
0x1797   :  { %3840 = vperm.xlu0 %4616, %v3826_v31   ;;  %3835 = vperm.xlu1 %4617, %v3825_v1  }
0x179b   :  { %4619 = vset.pattern.permute.xlu0 %v5088_v45  ;;  %4618 = vset.pattern.permute.xlu1 %v5088_v45 }
0x179c   :  { %3901 = vperm.xlu0 %4619, %v3826_v31   ;;  %3897 = vperm.xlu1 %4618, %v3825_v1  }
0x17a0   :  { %4622 = vset.pattern.permute.xlu0 %v6514_v48  ;;  %4620 = vset.pattern.permute.xlu1 %v6514_v48 }
0x17a1   :  { %3850 = vperm.xlu0 %4622, %v3828_v35   ;;  %3845 = vperm.xlu1 %4620, %v3827_v24  }
0x17a5   :  { %4624 = vset.pattern.permute.xlu0 %v5088_v45  ;;  %4621 = vset.pattern.permute.xlu1 %v5088_v45 }
0x17a6   :  { %3913 = vperm.xlu0 %4624, %v3829_v20   ;;  %3905 = vperm.xlu1 %4621, %v3827_v24  }
0x17aa   :  { %4626 = vset.pattern.permute.xlu0 %v6514_v48  ;;  %3909 = vperm.xlu1 %4621, %v3828_v35  }
0x17ab   :  { %3865 = vperm.xlu0 %4626, %v3831_v61  }
0x17ae   :  { %4623 = vset.pattern.permute.xlu1 %v6514_v48 }
0x17af   :  { %4628 = vset.pattern.permute.xlu0 %v5088_v45  ;;  %3855 = vperm.xlu1 %4623, %v3829_v20  }
0x17b0   :  { %3925 = vperm.xlu0 %4628, %v3832_v4  }
0x17b3   :  { %3860 = vperm.xlu1 %4623, %v3830_v47  }
0x17b7   :  { %4625 = vset.pattern.permute.xlu1 %v5088_v45 }
0x17b8   :  { %3917 = vperm.xlu1 %4625, %v3830_v47  }
0x17bc   :  { %3921 = vperm.xlu1 %4625, %v3831_v61  }
0x17c0   :  { %4627 = vset.pattern.permute.xlu1 %v6514_v48 }
0x17c1   :  { %3870 = vperm.xlu1 %4627, %v3832_v4  }
0x17c2   :  { %5039 = shalt.err (!%p5036_p6)
}
0x17c3   :  { %s5040_s24 = scalar_lea.hbm %s6504_s8, 1024 }
0x17c4   :  { %p5041_p7 = scmp.ne.s32.totalorder %s6504_s8, %s5040_s24  ;;  %p5044_p8 = scmp.lt.u32.totalorder %s5040_s24, %s6504_s8 }
0x17c6   :  { %p5046_p9 = pnand %p5044_p8, %p5041_p7 }
0x17c8   :  { %5049 = shalt.err (!%p5046_p9)
}
0x17c9   :  { %s5090_s28 = smov 128   ;;  %s5091_s29 = smov 8  }
0x17ca   :  { %3966 = dma.vmem_to_hbm [thread:$0]  %s3961_s0, 1024, %s6504_s8, [#allocation6], %s5090_s28, %s5090_s28, %s5091_s29  }
0x17cb   :  { %s5092_s8 = smov [#allocation10]  }
0x17cc   :  { %s3973_s12 = sshll.u32 %s5092_s8, 4  ;;  %s3974_s12 = int_to_ptr.vmem [resolvable:$true] %s3973_s12 }
0x17cd   :  { %s5050_s2 = scalar_lea.vmem %s3974_s12, 128  ;;  %p5055_p11 = scmp.lt.s32.totalorder %s3974_s12, %s3974_s12 }
0x17ce   :  { %p5051_p10 = scmp.ne.s32.totalorder %s3974_s12, %s5050_s2  ;;  %p5056_p12 = scmp.lt.s32.totalorder %s5050_s2, %s5050_s2 }
0x17d0   :  { %p5057_p13 = por %p5056_p12, %p5055_p11 }
0x17d2   :  { %p5058_p0 = pnand %p5057_p13, %p5051_p10 }
0x1816   :  { %v3836_v48 = vpop.permute.xlu1 %3835  ;;  %v3841_v15 = vpop.permute.xlu0 %3840 }
0x1817   :  { %v3874_v25 = vmul.f32 %v3841_v15, %v6373_v32  ;;  %v3873_v7 = vmul.f32 %v3836_v48, %v6371_v38 }
0x1819   :  { %v3882_v17 = vsel %vm3668_vm6, %v3874_v25, 0.0  ;;  %v3881_v52 = vsel %vm3668_vm6, %v3873_v7, 0.0 }
0x181a   :  { %v3883_v5 = vadd.f32 %v3882_v17, %v3881_v52 }
0x181b   :  { %v3898_v12 = vpop.permute.xlu1 %3897  ;;  %v3902_v56 = vpop.permute.xlu0 %3901 }
0x181c   :  { %v3929_v13 = vmul.f32 %v3902_v56, %v6373_v32  ;;  %v3928_v2 = vmul.f32 %v3898_v12, %v6371_v38 }
0x181e   :  { %v3937_v49 = vsel %vm3668_vm6, %v3929_v13, 0.0  ;;  %v3936_v46 = vsel %vm3668_vm6, %v3928_v2, 0.0 }
0x181f   :  { %v3938_v38 = vadd.f32 %v3937_v49, %v3936_v46 }
0x1820   :  { %v3846_v6 = vpop.permute.xlu1 %3845  ;;  %v3851_v40 = vpop.permute.xlu0 %3850 }
0x1821   :  { %v3875_v59 = vmul.f32 %v3846_v6, %v6367_v26  ;;  %v3876_v54 = vmul.f32 %v3851_v40, %v6369_v3 }
0x1823   :  { %v3884_v0 = vsel %vm3668_vm6, %v3875_v59, 0.0  ;;  %v3886_v23 = vsel %vm3668_vm6, %v3876_v54, 0.0 }
0x1824   :  { %v3885_v39 = vadd.f32 %v3884_v0, %v3883_v5 }
0x1825   :  { %v3906_v33 = vpop.permute.xlu1 %3905  ;;  %v3914_v14 = vpop.permute.xlu0 %3913 }
0x1826   :  { %v3930_v30 = vmul.f32 %v3906_v33, %v6367_v26  ;;  %v3932_v51 = vmul.f32 %v3914_v14, %v6383_v60  ;;  %v3887_v27 = vadd.f32 %v3886_v23, %v3885_v39 }
0x1828   :  { %v3939_v32 = vsel %vm3668_vm6, %v3930_v30, 0.0  ;;  %v3943_v36 = vsel %vm3668_vm6, %v3932_v51, 0.0 }
0x1829   :  { %v3910_v28 = vpop.permute.xlu1 %3909  ;;  %v3940_v34 = vadd.f32 %v3939_v32, %v3938_v38 }
0x182a   :  { %v3931_v62 = vmul.f32 %v3910_v28, %v6369_v3  ;;  %v3866_v26 = vpop.permute.xlu0 %3865 }
0x182b   :  { %v3879_v58 = vmul.f32 %v3866_v26, %v6390_v18 }
0x182c   :  { %v3941_v50 = vsel %vm3668_vm6, %v3931_v62, 0.0 }
0x182d   :  { %v3942_v42 = vadd.f32 %v3941_v50, %v3940_v34  ;;  %v3892_v20 = vsel %vm3668_vm6, %v3879_v58, 0.0 }
0x182e   :  { %v3856_v10 = vpop.permute.xlu1 %3855 }
0x182f   :  { %v3877_v63 = vmul.f32 %v3856_v10, %v6383_v60  ;;  %v3926_v3 = vpop.permute.xlu0 %3925  ;;  %v3944_v21 = vadd.f32 %v3943_v36, %v3942_v42 }
0x1831   :  { %v3888_v55 = vsel %vm3668_vm6, %v3877_v63, 0.0 }
0x1832   :  { %v3861_v9 = vpop.permute.xlu1 %3860  ;;  %v3889_v37 = vadd.f32 %v3888_v55, %v3887_v27 }
0x1833   :  { %v3878_v41 = vmul.f32 %v3861_v9, %v6385_v53 }
0x1835   :  { %v3890_v57 = vsel %vm3668_vm6, %v3878_v41, 0.0 }
0x1836   :  { %v3891_v31 = vadd.f32 %v3890_v57, %v3889_v37 }
0x1837   :  { %v3918_v8 = vpop.permute.xlu1 %3917 }
0x1838   :  { %v3933_v29 = vmul.f32 %v3918_v8, %v6385_v53  ;;  %v3935_v53 = vmul.f32 %v3926_v3, %v6392_v22  ;;  %v3893_v45 = vadd.f32 %v3892_v20, %v3891_v31 }
0x183a   :  { %v3945_v16 = vsel %vm3668_vm6, %v3933_v29, 0.0  ;;  %v3949_v61 = vsel %vm3668_vm6, %v3935_v53, 0.0 }
0x183b   :  { %v3922_v60 = vpop.permute.xlu1 %3921  ;;  %v3946_v43 = vadd.f32 %v3945_v16, %v3944_v21 }
0x183c   :  { %v3934_v11 = vmul.f32 %v3922_v60, %v6390_v18 }
0x183e   :  { %v3947_v1 = vsel %vm3668_vm6, %v3934_v11, 0.0 }
0x183f   :  { %v3948_v35 = vadd.f32 %v3947_v1, %v3946_v43 }
0x1840   :  { %v3871_v24 = vpop.permute.xlu1 %3870 }
0x1841   :  { %v3880_v4 = vmul.f32 %v3871_v24, %v6392_v22  ;;  %v3950_v47 = vadd.f32 %v3949_v61, %v3948_v35 }
0x1843   :  { %v3894_v48 = vsel %vm3668_vm6, %v3880_v4, 0.0  ;;  %v3952_v18 = vmul.f32 %v3950_v47, %v5491_v19 }
0x1844   :  { %v3895_v12 = vadd.f32 %v3894_v48, %v3893_v45 }
0x1846   :  { %v3951_v15 = vmul.f32 %v3895_v12, %v5489_v44 }
0x1848   :  { %v3953_v6 = vadd.f32 %v3952_v18, %v3951_v15 }
0x184a   :  { %3954 = vst.msk [vmem:[#allocation10] sm:$0xff] %vm3668_vm6, %v3953_v6 }
0x184b   :  { %5061 = shalt.err (!%p5058_p0)
}
0x184c   :  { %s5062_s3 = scalar_lea.hbm %s6505_s9, 128 }
0x184d   :  { %p5063_p1 = scmp.ne.s32.totalorder %s6505_s9, %s5062_s3  ;;  %p5066_p2 = scmp.lt.u32.totalorder %s5062_s3, %s6505_s9 }
0x184f   :  { %p5068_p3 = pnand %p5066_p2, %p5063_p1 }
0x1851   :  { %5071 = shalt.err (!%p5068_p3)
}
0x1852   :  { %3976 = dma.vmem_to_hbm [thread:$0]  %s3974_s12, 128, %s6505_s9, [#allocation11]  }
0x1853   :  { %5076 = dma.done.wait [#allocation6], 1024  }
0x1854   :  { %5077 = vsyncadd [#allocation6], 4294966272 }
0x1855   :  { %5078 = dma.done.wait [#allocation11], 128  }
0x1856   :  { %5079 = vsyncadd [#allocation11], 4294967168 }
0x1857   :  { %3983 = vsyncpa [#allocation5], 1 }
0x1858   :  { %3984 = vsyncpa [#allocation8], 1 }
0x1859   :  { %3985 = vsyncpa [#allocation6], 1 }
0x185a   :  { %3986 = vsyncpa [#allocation11], 1 }

</bundles_post_ra>
